<compile_context>
chip_gen: v5e
topology: v5e:2x2
jax: 0.10.0
libtpu: 0.0.40
codegen_flags: <defaults>
</compile_context>

<pallas_src>
import functools

import jax
import jax.numpy as jnp
from jax.experimental import pallas as pl
from jax.experimental.pallas import tpu as pltpu


def _mhsa_kernel(num_heads, head_dim, hd_pad,
                 xf_ref, xq_ref, wq_ref, wkv_ref, wo_ref, out_ref):
    f32, bf16 = jnp.float32, jnp.bfloat16
    C_pad = num_heads * hd_pad

    xf = xf_ref[0]                    # (C+1, N)  f32: full window (keys/values + ones row)
    xq = xq_ref[0]                    # (C+1, TQ) f32: this step's query window
    C = xq.shape[0] - 1
    N = xf.shape[-1]
    tq = xq.shape[-1]

    # --- Projections (bf16 MXU operands, f32 accumulation). ------------------
    # Softmax scale and all conv biases are pre-folded into the bf16 weights in
    # the wrapper (the bias column multiplies the constant ones row of x_aug),
    # so there are no separate bias operands / broadcast adds here.
    q = jnp.dot(wq_ref[...], xq.astype(bf16), preferred_element_type=f32)    # (C_pad, TQ)
    kv = jnp.dot(wkv_ref[...], xf.astype(bf16), preferred_element_type=f32)  # (2*C_pad, N)

    # head_dim is zero-padded to hd_pad rows per head -> these reshapes are
    # sublane-tile aligned (no relayout before the per-head matmuls).
    q_h = q.reshape(num_heads, hd_pad, tq).astype(bf16)
    k_h = kv[:C_pad].reshape(num_heads, hd_pad, N).astype(bf16)
    v_h = kv[C_pad:].reshape(num_heads, hd_pad, N).astype(bf16)

    # scores[h, n, m] = sum_d q[h, d, n] * k[h, d, m]   (pad rows are zero)
    scores = jnp.einsum('hdn,hdm->hnm', q_h, k_h,
                        preferred_element_type=f32)                          # (H, TQ, N) f32

    # Softmax numerator in f32.  The row-sum (denominator) is NOT an XLU
    # reduction: each head's v carries a constant-1 row, so the ctx matmul
    # below produces sum_m e on the (underused) MXU for free.
    m = jnp.max(scores, axis=-1, keepdims=True)
    e = jnp.exp(scores - m).astype(bf16)

    # ctx_un[h, d, n] = sum_m e[h, n, m] * v[h, d, m]
    ctx_un = jnp.einsum('hdm,hnm->hdn', v_h, e,
                        preferred_element_type=f32)                          # (H, hd_pad, TQ) f32
    denom = ctx_un[:, head_dim:head_dim + 1, :]        # carrier row == sum_m e
    ctx = ctx_un * pl.reciprocal(denom, approx=True)   # EUP divide, small multiply

    # Output projection (b_o rides on head 0's carrier column, which is ~1
    # after normalization) and residual add in f32.
    ctx2 = ctx.reshape(C_pad, tq).astype(bf16)
    out = jnp.dot(wo_ref[...], ctx2, preferred_element_type=f32) + xq[:C, :]
    out_ref[0] = out.astype(out_ref.dtype)


def _build_fused_weights(params, num_heads, head_dim, hd_pad):
    """Pad per-head rows to hd_pad, fold biases/scale, cast to bf16."""
    wq, bq, wk, bk, wv, bv, wo, bo = params
    C = wq.shape[0]
    scale = 1.0 / (head_dim ** 0.5)

    def pack(w, b, carrier_bias):
        # (C, C) weight + (C, 1) bias -> (num_heads * hd_pad, C + 1): rows grouped
        # head-major with hd_pad - head_dim zero pad rows per head.  The bias is
        # folded in as an extra input column (matched by the ones row of x_aug).
        wb = jnp.concatenate([w, b], axis=1).reshape(num_heads, head_dim, C + 1)
        pad = jnp.zeros((num_heads, hd_pad - head_dim, C + 1), w.dtype)
        if carrier_bias:
            # First pad row of every head: weights 0, bias 1 -> a constant-1
            # value row whose e-weighted sum equals the softmax denominator.
            pad = pad.at[:, 0, C].set(1.0)
        return jnp.concatenate([wb, pad], axis=1).reshape(num_heads * hd_pad, C + 1)

    wq_p = pack(wq * scale, bq * scale, carrier_bias=False)       # scale folded into q
    wk_p = pack(wk, bk, carrier_bias=False)
    wv_p = pack(wv, bv, carrier_bias=True)
    wkv_p = jnp.concatenate([wk_p, wv_p], axis=0)                 # (2*C_pad, C+1)

    # Output projection: pad wo's columns per head; the pad columns are zero so
    # the padded ctx rows never leak.  b_o is hooked onto head 0's carrier
    # column (that ctx row is ~1.0 after normalization).
    wo3 = wo.reshape(C, num_heads, head_dim)
    wo3 = jnp.concatenate(
        [wo3, jnp.zeros((C, num_heads, hd_pad - head_dim), wo.dtype)], axis=-1)
    wo3 = wo3.at[:, 0, head_dim].set(bo[:, 0])
    wo_p = wo3.reshape(C, num_heads * hd_pad)

    bf16 = jnp.bfloat16
    return wq_p.astype(bf16), wkv_p.astype(bf16), wo_p.astype(bf16)


def multi_head_self_attention(x, params, num_heads=8, tq=128):
    """x: (B, C, H, W) float32. params: (wq, bq, wk, bk, wv, bv, wo, bo)."""
    B, C, H, W = x.shape
    assert C % num_heads == 0, "in_channels must be divisible by num_heads"
    head_dim = C // num_heads
    N = H * W

    # Pad each head to a full sublane tile and always reserve >= 1 pad row for
    # the constant-1 carrier (softmax denominator / output-bias) row.
    hd_pad = max(8, ((head_dim + 1 + 7) // 8) * 8)
    C_pad = num_heads * hd_pad

    if N % tq != 0:
        tq = N                                  # fall back to a single query tile
    nq = N // tq

    # One-time small copy: append the constant ones row that carries the folded
    # biases (removes two lane-padded bias operands + two broadcast adds).
    x2 = x.reshape(B, C, N)
    x_aug = jnp.concatenate([x2, jnp.ones((B, 1, N), x.dtype)], axis=1)  # (B, C+1, N)

    wq_p, wkv_p, wo_p = _build_fused_weights(params, num_heads, head_dim, hd_pad)

    kernel = functools.partial(_mhsa_kernel, num_heads, head_dim, hd_pad)
    wmap = lambda b, i: (0, 0)                  # weights: constant block, no re-DMA

    out = pl.pallas_call(
        kernel,
        out_shape=jax.ShapeDtypeStruct((B, C, N), x.dtype),
        grid_spec=pltpu.PrefetchScalarGridSpec(
            num_scalar_prefetch=0,
            grid=(B, nq),
            in_specs=[
                pl.BlockSpec((1, C + 1, N), lambda b, i: (b, 0, 0)),   # x_aug (full: K/V)
                pl.BlockSpec((1, C + 1, tq), lambda b, i: (b, 0, i)),  # x_aug (query tile)
                pl.BlockSpec((C_pad, C + 1), wmap),                    # W_q  (scale+bias folded)
                pl.BlockSpec((2 * C_pad, C + 1), wmap),                # W_k|W_v (+carrier row)
                pl.BlockSpec((C, C_pad), wmap),                        # W_o  (+b_o column)
            ],
            out_specs=pl.BlockSpec((1, C, tq), lambda b, i: (b, 0, i)),
        ),
        compiler_params=pltpu.CompilerParams(
            # Both axes are fully independent: (B, N/TQ) steps split across
            # v7x's two TensorCores and give each core >= 2 pipelined steps.
            dimension_semantics=("parallel", "parallel"),
            vmem_limit_bytes=32 * 1024 * 1024,
        ),
    )(x_aug, x_aug, wq_p, wkv_p, wo_p)

    return out.reshape(B, C, H, W)


def _reference(x, params, num_heads=8):
    """Pure-JAX f32 reference following the torch code literally (sanity check)."""
    B, C, H, W = x.shape
    N = H * W
    d = C // num_heads
    wq, bq, wk, bk, wv, bv, wo, bo = params

    def conv1x1(w, b, xin):  # (C,C) @ (B,C,N) + (C,1)
        return jnp.einsum('oc,bcn->bon', w, xin) + b[None]

    x2 = x.reshape(B, C, N)
    q = conv1x1(wq, bq, x2).reshape(B, num_heads, d, N).transpose(0, 1, 3, 2)
    k = conv1x1(wk, bk, x2).reshape(B, num_heads, d, N).transpose(0, 1, 3, 2)
    v = conv1x1(wv, bv, x2).reshape(B, num_heads, d, N).transpose(0, 1, 3, 2)
    scores = jnp.einsum('bhnd,bhmd->bhnm', q, k) / (d ** 0.5)
    probs = jax.nn.softmax(scores, axis=-1)
    ctx = jnp.einsum('bhnm,bhmd->bhnd', probs, v)
    ctx = ctx.transpose(0, 1, 3, 2).reshape(B, C, N)
    out = conv1x1(wo, bo, ctx) + x2
    return out.reshape(B, C, H, W)


def _init_params(key, C):
    """Deterministic init mimicking PyTorch Conv2d default (uniform +/- 1/sqrt(fan_in))."""
    bound = 1.0 / (C ** 0.5)
    keys = jax.random.split(key, 8)

    def u(k, shape):
        return jax.random.uniform(k, shape, jnp.float32, -bound, bound)

    wq, wk, wv, wo = (u(keys[i], (C, C)) for i in range(4))
    bq, bk, bv, bo = (u(keys[4 + i], (C, 1)) for i in range(4))
    return (wq, bq, wk, bk, wv, bv, wo, bo)


if __name__ == "__main__":
    # C divisible by num_heads=8; H=W=16 so N=256 is a multiple of TQ=128
    # (lane-dense vregs / unmasked output stores, 2 query tiles per batch).
    B, C, H, W = 2, 32, 16, 16
    num_heads = 8

    key = jax.random.PRNGKey(0)
    kx, kp = jax.random.split(key)
    x = jax.random.normal(kx, (B, C, H, W), jnp.float32)
    params = _init_params(kp, C)

    out = multi_head_self_attention(x, params, num_heads=num_heads)
    out = jax.block_until_ready(out)

    ref = _reference(x, params, num_heads=num_heads)
    assert out.shape == (B, C, H, W)
    # Tolerance accounts for bf16 MXU operands (f32 accumulation) and the EUP
    # approximate-reciprocal softmax normalization; observed error is ~1e-3.
    assert jnp.allclose(out, ref, rtol=2e-2, atol=2e-2), "mismatch vs reference"

    print("KERNEL_OK")
</pallas_src>

<mosaic_0001>
module attributes {stable_mosaic.version = 11 : i64} {
  func.func @_mhsa_kernel(%arg0: i32, %arg1: i32, %arg2: memref<1x33x256xf32, #tpu.memory_space<vmem>>, %arg3: memref<1x33x128xf32, #tpu.memory_space<vmem>>, %arg4: memref<64x33xbf16, #tpu.memory_space<vmem>>, %arg5: memref<128x33xbf16, #tpu.memory_space<vmem>>, %arg6: memref<32x64xbf16, #tpu.memory_space<vmem>>, %arg7: memref<1x32x128xf32, #tpu.memory_space<vmem>>) attributes {dimension_semantics = [#tpu.dimension_semantics<parallel>, #tpu.dimension_semantics<parallel>], iteration_bounds = array<i64: 2, 2>, scalar_prefetch = 0 : i64, scratch_operands = 0 : i64, tpu.core_type = #tpu.core_type<tc>, window_params = [{transform_indices = @transform_0, window_bounds = array<i64: 1, 33, 256>}, {transform_indices = @transform_1, window_bounds = array<i64: 1, 33, 128>}, {pipeline_mode = #tpu.pipeline_mode<synchronous>, transform_indices = @transform_2, window_bounds = array<i64: 64, 33>}, {pipeline_mode = #tpu.pipeline_mode<synchronous>, transform_indices = @transform_3, window_bounds = array<i64: 128, 33>}, {pipeline_mode = #tpu.pipeline_mode<synchronous>, transform_indices = @transform_4, window_bounds = array<i64: 32, 64>}, {transform_indices = @transform_5, window_bounds = array<i64: 1, 32, 128>}]} {
    %c0 = arith.constant 0 : index
    %c0_0 = arith.constant 0 : index
    %c0_1 = arith.constant 0 : index
    %0 = vector.load %arg2[%c0, %c0_0, %c0_1] : memref<1x33x256xf32, #tpu.memory_space<vmem>>, vector<1x33x256xf32>
    %1 = vector.shape_cast %0 : vector<1x33x256xf32> to vector<33x256xf32>
    %c0_2 = arith.constant 0 : index
    %c0_3 = arith.constant 0 : index
    %c0_4 = arith.constant 0 : index
    %2 = vector.load %arg3[%c0_2, %c0_3, %c0_4] : memref<1x33x128xf32, #tpu.memory_space<vmem>>, vector<1x33x128xf32>
    %3 = vector.shape_cast %2 : vector<1x33x128xf32> to vector<33x128xf32>
    %c0_5 = arith.constant 0 : index
    %c0_6 = arith.constant 0 : index
    %4 = vector.load %arg4[%c0_5, %c0_6] : memref<64x33xbf16, #tpu.memory_space<vmem>>, vector<64x33xbf16>
    %5 = arith.truncf %3 : vector<33x128xf32> to vector<33x128xbf16>
    %cst = arith.constant dense<0.000000e+00> : vector<64x128xf32>
    %6 = tpu.matmul %4, %5, %cst {dimension_numbers = #tpu.dot_dimension_numbers<[1], [0], [0], [1], [0, 0, 1, 1], [], []>} : vector<64x33xbf16>, vector<33x128xbf16>, vector<64x128xf32> -> vector<64x128xf32>
    %c0_7 = arith.constant 0 : index
    %c0_8 = arith.constant 0 : index
    %7 = vector.load %arg5[%c0_7, %c0_8] : memref<128x33xbf16, #tpu.memory_space<vmem>>, vector<128x33xbf16>
    %8 = arith.truncf %1 : vector<33x256xf32> to vector<33x256xbf16>
    %cst_9 = arith.constant dense<0.000000e+00> : vector<128x256xf32>
    %9 = tpu.matmul %7, %8, %cst_9 {dimension_numbers = #tpu.dot_dimension_numbers<[1], [0], [0], [1], [0, 0, 1, 1], [], []>} : vector<128x33xbf16>, vector<33x256xbf16>, vector<128x256xf32> -> vector<128x256xf32>
    %10 = vector.shape_cast %6 : vector<64x128xf32> to vector<8x8x128xf32>
    %11 = arith.truncf %10 : vector<8x8x128xf32> to vector<8x8x128xbf16>
    %12 = vector.extract_strided_slice %9 {offsets = [0, 0], sizes = [64, 256], strides = [1, 1]} : vector<128x256xf32> to vector<64x256xf32>
    %13 = vector.shape_cast %12 : vector<64x256xf32> to vector<8x8x256xf32>
    %14 = arith.truncf %13 : vector<8x8x256xf32> to vector<8x8x256xbf16>
    %15 = vector.extract_strided_slice %9 {offsets = [64, 0], sizes = [64, 256], strides = [1, 1]} : vector<128x256xf32> to vector<64x256xf32>
    %16 = vector.shape_cast %15 : vector<64x256xf32> to vector<8x8x256xf32>
    %17 = arith.truncf %16 : vector<8x8x256xf32> to vector<8x8x256xbf16>
    "tpu.trace_start"() <{level = 10 : i32, message = "hdn,hdm->hnm"}> : () -> ()
    %cst_10 = arith.constant dense<0.000000e+00> : vector<8x128x256xf32>
    %18 = tpu.matmul %11, %14, %cst_10 {dimension_numbers = #tpu.dot_dimension_numbers<[1], [1], [2], [2], [0, 0, 0, 2, 1, 2], [0], [0]>} : vector<8x8x128xbf16>, vector<8x8x256xbf16>, vector<8x128x256xf32> -> vector<8x128x256xf32>
    "tpu.trace_stop"() : () -> ()
    %cst_11 = arith.constant dense<0xFF800000> : vector<8x128xf32>
    %19 = vector.multi_reduction <maximumf>, %18, %cst_11 [2] : vector<8x128x256xf32> to vector<8x128xf32>
    %20 = vector.shape_cast %19 : vector<8x128xf32> to vector<8x128x1xf32>
    %21 = vector.broadcast %20 : vector<8x128x1xf32> to vector<8x128x256xf32>
    %22 = arith.subf %18, %21 : vector<8x128x256xf32>
    %23 = math.exp %22 : vector<8x128x256xf32>
    %24 = arith.truncf %23 : vector<8x128x256xf32> to vector<8x128x256xbf16>
    "tpu.trace_start"() <{level = 10 : i32, message = "hdm,hnm->hdn"}> : () -> ()
    %cst_12 = arith.constant dense<0.000000e+00> : vector<8x8x128xf32>
    %25 = tpu.matmul %17, %24, %cst_12 {dimension_numbers = #tpu.dot_dimension_numbers<[2], [2], [1], [1], [0, 0, 0, 1, 1, 1], [0], [0]>} : vector<8x8x256xbf16>, vector<8x128x256xbf16>, vector<8x8x128xf32> -> vector<8x8x128xf32>
    "tpu.trace_stop"() : () -> ()
    %26 = vector.extract_strided_slice %25 {offsets = [0, 4, 0], sizes = [8, 1, 128], strides = [1, 1, 1]} : vector<8x8x128xf32> to vector<8x1x128xf32>
    %27 = tpu.reciprocal %26 {approx = true} : vector<8x1x128xf32> -> vector<8x1x128xf32>
    %28 = vector.broadcast %27 : vector<8x1x128xf32> to vector<8x8x128xf32>
    %29 = arith.mulf %25, %28 : vector<8x8x128xf32>
    %30 = vector.shape_cast %29 : vector<8x8x128xf32> to vector<64x128xf32>
    %31 = arith.truncf %30 : vector<64x128xf32> to vector<64x128xbf16>
    %c0_13 = arith.constant 0 : index
    %c0_14 = arith.constant 0 : index
    %32 = vector.load %arg6[%c0_13, %c0_14] : memref<32x64xbf16, #tpu.memory_space<vmem>>, vector<32x64xbf16>
    %cst_15 = arith.constant dense<0.000000e+00> : vector<32x128xf32>
    %33 = tpu.matmul %32, %31, %cst_15 {dimension_numbers = #tpu.dot_dimension_numbers<[1], [0], [0], [1], [0, 0, 1, 1], [], []>} : vector<32x64xbf16>, vector<64x128xbf16>, vector<32x128xf32> -> vector<32x128xf32>
    %34 = vector.extract_strided_slice %3 {offsets = [0, 0], sizes = [32, 128], strides = [1, 1]} : vector<33x128xf32> to vector<32x128xf32>
    %35 = arith.addf %33, %34 : vector<32x128xf32>
    %c0_16 = arith.constant 0 : index
    %c0_17 = arith.constant 0 : index
    %c0_18 = arith.constant 0 : index
    %36 = vector.load %arg7[%c0_16, %c0_17, %c0_18] : memref<1x32x128xf32, #tpu.memory_space<vmem>>, vector<1x32x128xf32>
    %37 = vector.shape_cast %36 : vector<1x32x128xf32> to vector<32x128xf32>
    %38 = vector.shape_cast %35 : vector<32x128xf32> to vector<1x32x128xf32>
    tpu.vector_store %arg7[%c0_16, %c0_17, %c0_18], %38 {strides = array<i32>} : memref<1x32x128xf32, #tpu.memory_space<vmem>>, vector<1x32x128xf32>,
    return
  }
  func.func @transform_0(%arg0: i32, %arg1: i32) -> (i32, i32, i32) {
    %c0_i32 = arith.constant 0 : i32
    %c0_i32_0 = arith.constant 0 : i32
    %c0_i32_1 = arith.constant 0 : i32
    return %arg0, %c0_i32, %c0_i32_0 : i32, i32, i32
  }
  func.func @transform_1(%arg0: i32, %arg1: i32) -> (i32, i32, i32) {
    %c0_i32 = arith.constant 0 : i32
    %c0_i32_0 = arith.constant 0 : i32
    return %arg0, %c0_i32, %arg1 : i32, i32, i32
  }
  func.func @transform_2(%arg0: i32, %arg1: i32) -> (i32, i32) {
    %c0_i32 = arith.constant 0 : i32
    %c0_i32_0 = arith.constant 0 : i32
    %c0_i32_1 = arith.constant 0 : i32
    return %c0_i32, %c0_i32_0 : i32, i32
  }
  func.func @transform_3(%arg0: i32, %arg1: i32) -> (i32, i32) {
    %c0_i32 = arith.constant 0 : i32
    %c0_i32_0 = arith.constant 0 : i32
    %c0_i32_1 = arith.constant 0 : i32
    return %c0_i32, %c0_i32_0 : i32, i32
  }
  func.func @transform_4(%arg0: i32, %arg1: i32) -> (i32, i32) {
    %c0_i32 = arith.constant 0 : i32
    %c0_i32_0 = arith.constant 0 : i32
    %c0_i32_1 = arith.constant 0 : i32
    return %c0_i32, %c0_i32_0 : i32, i32
  }
  func.func @transform_5(%arg0: i32, %arg1: i32) -> (i32, i32, i32) {
    %c0_i32 = arith.constant 0 : i32
    %c0_i32_0 = arith.constant 0 : i32
    return %arg0, %c0_i32, %arg1 : i32, i32, i32
  }
}

</mosaic_0001>

<bundles_post_ra>
// kernel: tpu_custom_call.1
= control target key start
LH: loop header
LB: loop body
LE: loop exit
PB: predicated region body
PF: predicated region fallthrough
CT: control target
= control target key end

     0   :  { %10 = vsyncpa [#allocation4], 0  ;;  %s7333_s0 = inlined_call_operand.vmem [shape: f32[2,33,256], index: 0, kind: input, shape index: {}]   ;;  %s7334_s1 = inlined_call_operand.vmem [shape: f32[2,33,256], index: 1, kind: input, shape index: {}]   ;;  %s7335_s2 = inlined_call_operand.vmem [shape: bf16[64,33], index: 2, kind: input, shape index: {}]   ;;  %s7336_s3 = inlined_call_operand.vmem [shape: bf16[128,33], index: 3, kind: input, shape index: {}]   ;;  %s7337_s4 = inlined_call_operand.vmem [shape: bf16[32,64], index: 4, kind: input, shape index: {}]   ;;  %s7338_s5 = inlined_call_operand.hbm [shape: f32[2,32,256], index: 5, kind: output, shape index: {}]  }
   0x1   :  { %12 = vsyncpa [#allocation4 + $0x1], 0  ;;  %s5213_s18 = smov 0   ;;  %s5215_s19 = smov 0  }
   0x2   :  { %s5217_s20 = smov 0   ;;  %s5219_s21 = smov 0  }
   0x3   :  { %s5221_s22 = smov 0   ;;  %s5223_s23 = smov 0  }
   0x4   :  { %s5225_s24 = smov 0   ;;  %s5227_s25 = smov 0  }
   0x5 LB: > { %s4183_s26 = sadd.s32 4294967295, %s5177_s25   ;;  %s4184_s27 = sadd.s32 4294967294, %s5177_s25   ;;  %s5177_s25 = sphi %s5227_s25, %s18_s25   ;;  %s5173_s24 = sphi %s5225_s24, %s8058_s24   ;;  %s5169_s23 = sphi %s5223_s23, %s8057_s23   ;;  %s5165_s22 = sphi %s5221_s22, %s8056_s22   ;;  %s5161_s21 = sphi %s5219_s21, %s8055_s21   ;;  %s5157_s20 = sphi %s5217_s20, %s8054_s20   ;;  %s5153_s19 = sphi %s5215_s19, %s8053_s19   ;;  %s5149_s18 = sphi %s5213_s18, %s8052_s18  }
   0x6   : > { %s27_s28 = sadd.s32 1, %s5169_s23  ;;  %s30_s29 = sadd.s32 1, %s5173_s24 }
   0x7   : > { %p28_p0 = scmp.ge.s32.totalorder %s27_s28, 2  ;;  %p72_p1 = scmp.ne.s32.totalorder %s5157_s20, %s5153_s19 }
   0x8   : > { %p73_p2 = scmp.eq.s32.totalorder %s5177_s25, 0  ;;  %p167_p5 = scmp.eq.s32.totalorder %s4183_s26, 3 }
   0x9   : > { %s8060_s28 = smov (%p28_p0, %s27_s28), 0  ;;  %s8062_s29 = smov (!%p28_p0, %s30_s29), %s5173_s24 }
   0xa   : > { %s61_s30 = ssub.s32 %s5169_s23, %s8060_s28  ;;  %p5265_p3 = por %p73_p2, %p72_p1 }
   0xb   : > { %p32_p4 = scmp.ge.s32.totalorder %s8062_s29, 2  ;;  %p172_p6 = scmp.ne.s32.totalorder %s5153_s19, %s5149_s18 }
   0xc   : > { %p173_p7 = scmp.eq.s32.totalorder %s4184_s27, 3  ;;  %p5273_p8 = por %p167_p5, %p72_p1 }
   0xd   : > { %s8064_s29 = smov (%p32_p4, %s8062_s29), 0  ;;  %s65_s11 = sadd.s32 1, %s5157_s20 }
   0xe   : > { %p5277_p9 = por %p173_p7, %p172_p6  ;;  %s60_s9 = ssub.s32 %s5173_s24, %s8064_s29 }
   0xf   : > { %s62_s10 = sor.u32 %s61_s30, %s60_s9  ;;  %p4186_p11 = scmp.ge.s32.totalorder %s5177_s25, 4 }
  0x10   : > { %p63_p10 = scmp.eq.s32.totalorder %s62_s10, 0 }
  0x11   : > { %198 = sbr.rel (%p4186_p11) target bundleno = 34 (0x22), region = 28 }
  0x12   : > { %s5285_s12 = scalar_select %p63_p10, %s5157_s20, %s65_s11  }
  0x16   : > { %209 = sbr.rel (!%p5265_p3) target bundleno = 34 (0x22), region = 36  ;;  %s211_s13 = sand.u32 (%p5265_p3), 1, %s5157_s20  }
  0x17   : > { %s4422_s14 = smul.u32 (%p5265_p3), 10, %s5173_s24 }
  0x18   : > { %s4421_s15 = smul.u32 (%p5265_p3), 40, %s211_s13 }
  0x19   : > { %s215_s16 = sadd.s32 (%p5265_p3), %s5169_s23, %s4422_s14 }
  0x1a   : > { %s4187_s17 = sshll.u32 (%p5265_p3), %s215_s16, 3  ;;  %s213_s9 = scalar_lea.vmem (%p5265_p3), [#allocation2], %s4421_s15 }
  0x1b   : > { %s217_s30 = scalar_lea.vmem %s7334_s1, %s4187_s17 }
  0x1c   : > { %v254_v0 = vld [vmem:[%s217_s30] sm:$0xff]  ;;  %v256_v1 = vld [vmem:[%s217_s30 + $0x10] sm:$0xff] }
  0x1d   : > { %v258_v2 = vld [vmem:[%s217_s30 + $0x20] sm:$0xff]  ;;  %255 = vst [vmem:[%s213_s9] sm:$0xff] %v254_v0  ;;  %v260_v3 = vld [vmem:[%s217_s30 + $0x30] sm:$0xff] }
  0x1e   : > { %257 = vst [vmem:[%s213_s9 + $0x8] sm:$0xff] %v256_v1  ;;  %v262_v4 = vld [vmem:[%s217_s30 + $0x40] sm:$0xff] }
  0x1f   : > { %259 = vst [vmem:[%s213_s9 + $0x10] sm:$0xff] %v258_v2 }
  0x20   : > { %261 = vst [vmem:[%s213_s9 + $0x18] sm:$0xff] %v260_v3 }
  0x21   : > { %263 = vst [vmem:[%s213_s9 + $0x20] sm:$0xff] %v262_v4 }
  0x22 PF: > { %p4188_p12 = scmp.ge.s32.totalorder %s5177_s25, 1  ;;  %p268_p13 = scmp.lt.s32.totalorder %s5177_s25, 5 }
  0x24   : > { %p269_p0 = pnand %p4188_p12, %p268_p13 }
  0x26   : > { %272 = sbr.rel (%p269_p0) target bundleno = 1678 (0x68e), region = 74 }
  0x2b   : > { %s5299_s6 = sand.u32 1, %s5153_s19   ;;  %vm372_vm0 = vcmask 1040384   ;;  %v5179_v6 = vmov 0   ;;  %v4402_v16 = vld [vmem:[%s7335_s2] sm:$0xff]  ;;  %vm359_vm1 = vcmask 269312   ;;  %v4403_v17 = vld [vmem:[%s7335_s2 + $0x8] sm:$0xff] }
  0x2c   : > { %s4423_s10 = smul.u32 40, %s5299_s6  ;;  %v374_v7 = vsel %vm372_vm0, 65535, %v5179_v6  ;;  %v4404_v18 = vld [vmem:[%s7335_s2 + $0x10] sm:$0xff]  ;;  %v4405_v19 = vld [vmem:[%s7335_s2 + $0x18] sm:$0xff]  ;;  %p307_p1 = scmp.lt.s32.totalorder %s5165_s22, 1  ;;  %v4406_v35 = vld [vmem:[%s7336_s3] sm:$0xff] }
  0x2d   : > { %v4407_v43 = vld [vmem:[%s7336_s3 + $0x8] sm:$0xff]  ;;  %v4408_v48 = vld [vmem:[%s7336_s3 + $0x10] sm:$0xff]  ;;  %v4409_v51 = vld [vmem:[%s7336_s3 + $0x18] sm:$0xff]  ;;  %vm667_vm2 = vcmask 1043456   ;;  %vm642_vm3 = vcmask 64512   ;;  %vm4041_vm4 = vcmask 523264  }
  0x2e   : > { %s5302_s11 = scalar_lea.vmem [#allocation2], %s4423_s10  ;;  %v4410_v55 = vld [vmem:[%s7336_s3 + $0x20] sm:$0xff]  ;;  %v4411_v56 = vld [vmem:[%s7336_s3 + $0x28] sm:$0xff]  ;;  %v4412_v57 = vld [vmem:[%s7336_s3 + $0x30] sm:$0xff]  ;;  %s4189_s16 = sshll.u32 %s5299_s6, 5 }
  0x2f   : > { %v327_v5 = vld [vmem:[%s5302_s11 + $0x20] sm:$0x1]  ;;  %v325_v9 = vld [vmem:[%s5302_s11 + $0x10] sm:$0xff]  ;;  %v326_v10 = vld [vmem:[%s5302_s11 + $0x18] sm:$0xff]  ;;  %s308_s9 = scalar_select %p307_p1, %s5165_s22, 1 }
  0x30   : > { %v338_v8 = vpack.c.bf16 %v327_v5, %v327_v5  ;;  %v337_v12 = vpack.c.bf16 %v326_v10, %v325_v9  ;;  %v323_v13 = vld [vmem:[%s5302_s11] sm:$0xff]  ;;  %v324_v14 = vld [vmem:[%s5302_s11 + $0x8] sm:$0xff]  ;;  %v4413_v58 = vld [vmem:[%s7336_s3 + $0x38] sm:$0xff]  ;;  %s4398_s17 = sshll.u32 %s5165_s22, 3  ;;  %s306_s26 = scalar_lea.vmem [#allocation3], %s4189_s16 }
  0x31   : > { %v336_v15 = vpack.c.bf16 %v324_v14, %v323_v13  ;;  %s4424_s10 = smul.u32 80, %s308_s9  ;;  %s4082_s27 = sadd.s32 %s5161_s21, %s4398_s17 }
  0x32   : > { %v376_v11 = vand.u32 %v374_v7, %v338_v8  ;;  %s4399_s30 = sshll.u32 %s4082_s27, 3  ;;  %s4085_s13 = sshll.u32 %s306_s26, 4  ;;  %s4086_s13 = int_to_ptr.vmem [resolvable:$true] %s4085_s13 }
  0x33   : > { %s311_s15 = scalar_lea.vmem %s7333_s0, %s4424_s10  ;;  %s4084_s22 = scalar_lea.hbm %s7338_s5, %s4399_s30 }
  0x34   : > { %383 = vmatpush.bf16.msra.mxu0 %v376_v11  ;;  %v322_v20 = vld [vmem:[%s311_s15 + $0x48] sm:$0x1]  ;;  %v320_v24 = vld [vmem:[%s311_s15 + $0x38] sm:$0xff]  ;;  %v321_v25 = vld [vmem:[%s311_s15 + $0x40] sm:$0x1]  ;;  %s4087_s14 = sshll.u32 %s4084_s22, 4  ;;  %s4088_s14 = int_to_ptr.hbm [resolvable:$true] %s4087_s14 }
  0x35   : > { %v428_v21 = vpack.c.bf16 %v322_v20, %v322_v20  ;;  %v318_v23 = vld [vmem:[%s311_s15 + $0x28] sm:$0xff]  ;;  %v427_v27 = vpack.c.bf16 %v321_v25, %v321_v25  ;;  %v316_v30 = vld [vmem:[%s311_s15 + $0x18] sm:$0xff]  ;;  %v317_v31 = vld [vmem:[%s311_s15 + $0x20] sm:$0xff]  ;;  %s4072_s21 = scalar_lea.sflag [#allocation4], %s5299_s6  ;;  %s5103_s30 = scalar_lea.hbm %s7338_s5, 128 }
  0x36   : > { %v426_v26 = vpack.c.bf16 %v320_v24, %v318_v23  ;;  %v314_v29 = vld [vmem:[%s311_s15 + $0x8] sm:$0xff]  ;;  %v319_v33 = vld [vmem:[%s311_s15 + $0x30] sm:$0xff]  ;;  %v313_v36 = vld [vmem:[%s311_s15] sm:$0xff] }
  0x37   : > { %v497_v22 = vand.u32 %v428_v21, %v374_v7  ;;  %v494_v28 = vand.u32 %v427_v27, %v374_v7  ;;  %v424_v32 = vpack.c.bf16 %v316_v30, %v314_v29  ;;  %v425_v34 = vpack.c.bf16 %v319_v33, %v317_v31  ;;  %v315_v37 = vld [vmem:[%s311_s15 + $0x10] sm:$0xff]  ;;  %s5097_s15 = sshra.s32 %s4088_s14, 4  ;;  %s5098_s15 = int_to_ptr.hbm [resolvable:$true] %s5097_s15 }
  0x38   : > { %384 = vmatpush.bf16.msra.mxu0 %v337_v12  ;;  %v423_v40 = vpack.c.bf16 %v315_v37, %v313_v36  ;;  %s5099_s16 = scalar_lea.hbm %s5098_s15, 32  ;;  %p5104_p5 = scmp.lt.s32.totalorder %s5098_s15, %s7338_s5 }
  0x39   : > { %553 = vmatpush.bf16.msra.mxu2 %v497_v22  ;;  %504 = vmatpush.bf16.msra.mxu1 %v494_v28  ;;  %p5100_p2 = scmp.ne.s32.totalorder %s5098_s15, %s5099_s16  ;;  %p5105_p6 = scmp.lt.s32.totalorder %s5103_s30, %s5099_s16 }
  0x3b   : > { %p5101_p3 = pnand %p5100_p2, %p5273_p8  ;;  %p5106_p7 = por %p5105_p6, %p5104_p5 }
  0x3c   : > { %385 = vmatpush.bf16.msra.mxu0 %v336_v15 }
  0x3d   : > { %554 = vmatpush.bf16.msra.mxu2 %v426_v26  ;;  %505 = vmatpush.bf16.msra.mxu1 %v425_v34  ;;  %p5102_p4 = pneg %p5101_p3 }
  0x3f   : > { %4207 = vmatmul.msk.bf16.vlgmr.msra.gmra.mxu0 %vm359_vm1, %v4402_v16  ;;  %p5107_p10 = pnand %p5106_p7, %p5102_p4 }
  0x41   : > { %555 = vmatpush.bf16.msra.mxu2 %v424_v32  ;;  %506 = vmatpush.bf16.msra.mxu1 %v423_v40 }
  0x44   : > { %4251 = vmatmul.msk.bf16.vlgmr.msra.gmra.mxu2 %vm359_vm1, %v4406_v35  ;;  %4243 = vmatmul.msk.bf16.vlgmr.msra.gmra.mxu1 %vm359_vm1, %v4406_v35 }
  0x4f   : > { %4208 = vmatmul.msk.bf16.gmra.mxu0 %vm359_vm1, %v4403_v17 }
  0x54   : > { %4252 = vmatmul.msk.bf16.gmra.mxu2 %vm359_vm1, %v4407_v43  ;;  %4244 = vmatmul.msk.bf16.gmra.mxu1 %vm359_vm1, %v4407_v43 }
  0x5f   : > { %4209 = vmatmul.msk.bf16.gmra.mxu0 %vm359_vm1, %v4404_v18 }
  0x64   : > { %4253 = vmatmul.msk.bf16.gmra.mxu2 %vm359_vm1, %v4408_v48  ;;  %4245 = vmatmul.msk.bf16.gmra.mxu1 %vm359_vm1, %v4408_v48 }
  0x6f   : > { %4210 = vmatmul.msk.bf16.gmra.mxu0 %vm359_vm1, %v4405_v19 }
  0x74   : > { %4254 = vmatmul.msk.bf16.gmra.mxu2 %vm359_vm1, %v4409_v51  ;;  %4246 = vmatmul.msk.bf16.gmra.mxu1 %vm359_vm1, %v4409_v51 }
  0x84   : > { %4255 = vmatmul.msk.bf16.gmra.mxu2 %vm359_vm1, %v4410_v55  ;;  %4247 = vmatmul.msk.bf16.gmra.mxu1 %vm359_vm1, %v4410_v55 }
  0x94   : > { %4256 = vmatmul.msk.bf16.gmra.mxu2 %vm359_vm1, %v4411_v56  ;;  %4248 = vmatmul.msk.bf16.gmra.mxu1 %vm359_vm1, %v4411_v56 }
  0xa4   : > { %4257 = vmatmul.msk.bf16.gmra.mxu2 %vm359_vm1, %v4412_v57  ;;  %4249 = vmatmul.msk.bf16.gmra.mxu1 %vm359_vm1, %v4412_v57 }
  0xb4   : > { %4250 = vmatmul.msk.bf16.gmra.mxu1 %vm359_vm1, %v4413_v58  ;;  %4258 = vmatmul.msk.bf16.gmra.mxu2 %vm359_vm1, %v4413_v58 }
  0xbc   : > { %v387_v38 = vpop.f32.mrf.mxu0 }
  0xbd   : > { %v597_v39 = vpack.c.bf16 %v387_v38, %v387_v38 }
  0xbf   : > { %621 = vxpose.xlu0.c.b16.start.end [1/1] (short) %v597_v39, 128 }
  0xc1   : > { %v508_v60 = vpop.f32.mrf.mxu1 }
  0xc4   : > { %v389_v41 = vpop.f32.mrf.mxu0 }
  0xc5   : > { %v598_v59 = vpack.c.bf16 %v389_v41, %v389_v41 }
  0xc7   : > { %v557_v61 = vpop.f32.mrf.mxu2 }
  0xc8   : > { %v605_v62 = vpack.c.bf16 %v557_v61, %v508_v60 }
  0xc9   : > { %v510_v5 = vpop.f32.mrf.mxu1 }
  0xca   : > { %v638_v63 = vunpack.c.l.b16 %v605_v62  ;;  %v639_v0 = vunpack.c.h.b16 %v605_v62 }
  0xcc   : > { %v392_v42 = vpop.f32.mrf.mxu0  ;;  %v640_v1 = vpack.c.b16 %v638_v63, %v638_v63  ;;  %v641_v2 = vpack.c.b16 %v639_v0, %v639_v0 }
  0xcd   : > { %v599_v44 = vpack.c.bf16 %v392_v42, %v392_v42 }
  0xce   : > { %v669_v3 = vsel %vm667_vm2, %v640_v1, 0  ;;  %v672_v4 = vsel %vm667_vm2, %v641_v2, 0 }
  0xcf   : > { %681 = vmatpush.bf16.msrb.mxu1 %v669_v3  ;;  %730 = vmatpush.bf16.msrb.mxu0 %v672_v4  ;;  %v559_v6 = vpop.f32.mrf.mxu2 }
  0xd0   : > { %4416 = vmatpush.bf16.msra.mxu3 %v669_v3  ;;  %v606_v7 = vpack.c.bf16 %v559_v6, %v510_v5 }
  0xd1   : > { %v513_v16 = vpop.f32.mrf.mxu1 }
  0xd2   : > { %v790_v8 = vunpack.c.h.b16 %v606_v7  ;;  %v789_v9 = vunpack.c.l.b16 %v606_v7 }
  0xd4   : > { %v394_v45 = vpop.f32.mrf.mxu0  ;;  %v792_v10 = vpack.c.b16 %v790_v8, %v790_v8  ;;  %v791_v11 = vpack.c.b16 %v789_v9, %v789_v9 }
  0xd5   : > { %v600_v46 = vpack.c.bf16 %v394_v45, %v394_v45 }
  0xd6   : > { %v818_v12 = vsel %vm667_vm2, %v791_v11, 0  ;;  %v821_v13 = vsel %vm667_vm2, %v792_v10, 0 }
  0xd7   : > { %4500 = vxpose.binary.xlu1.c.b16.start.end [1/2] (short) %v599_v44, %v600_v46, 128  ;;  %v562_v22 = vpop.f32.mrf.mxu2 }
  0xd8   : > { %830 = vmatpush.bf16.msrb.mxu3 %v818_v12  ;;  %879 = vmatpush.bf16.msra.mxu1 %v821_v13  ;;  %v607_v23 = vpack.c.bf16 %v562_v22, %v513_v16 }
  0xd9   : > { %v515_v17 = vpop.f32.mrf.mxu1 }
  0xda   : > { %v938_v24 = vunpack.c.l.b16 %v607_v23  ;;  %v939_v45 = vunpack.c.h.b16 %v607_v23 }
  0xdc   : > { %v397_v47 = vpop.f32.mrf.mxu0  ;;  %v940_v25 = vpack.c.b16 %v938_v24, %v938_v24 }
  0xdd   : > { %v601_v14 = vpack.c.bf16 %v397_v47, %v397_v47 }
  0xde   : > { %v967_v27 = vsel %vm667_vm2, %v940_v25, 0 }
  0xdf   : > { %979 = vmatpush.bf16.msrb.mxu2 %v967_v27  ;;  %v564_v37 = vpop.f32.mrf.mxu2 }
  0xe0   : > { %v608_v43 = vpack.c.bf16 %v564_v37, %v515_v17 }
  0xe1   : > { %v518_v19 = vpop.f32.mrf.mxu1 }
  0xe2   : > { %v1087_v46 = vunpack.c.l.b16 %v608_v43  ;;  %v1088_v47 = vunpack.c.h.b16 %v608_v43 }
  0xe4   : > { %v399_v49 = vpop.f32.mrf.mxu0  ;;  %v1089_v51 = vpack.c.b16 %v1087_v46, %v1087_v46 }
  0xe5   : > { %v602_v15 = vpack.c.bf16 %v399_v49, %v399_v49 }
  0xe6   : > { %v1116_v57 = vsel %vm667_vm2, %v1089_v51, 0 }
  0xe7   : > { %v567_v42 = vpop.f32.mrf.mxu2 }
  0xe8   : > { %v609_v62 = vpack.c.bf16 %v567_v42, %v518_v19 }
  0xe9   : > { %v5376_v20 = vpop.f32.mrf.mxu1 }
  0xea   : > { %v1236_v63 = vunpack.c.l.b16 %v609_v62  ;;  %v1237_v0 = vunpack.c.h.b16 %v609_v62 }
  0xec   : > { %v402_v50 = vpop.f32.mrf.mxu0  ;;  %v1238_v5 = vpack.c.b16 %v1236_v63, %v1236_v63  ;;  %v1239_v6 = vpack.c.b16 %v1237_v0, %v1237_v0 }
  0xed   : > { %v603_v52 = vpack.c.bf16 %v402_v50, %v402_v50  ;;  %v941_v50 = vpack.c.b16 %v939_v45, %v939_v45 }
  0xee   : > { %v1265_v8 = vsel %vm667_vm2, %v1238_v5, 0  ;;  %v1268_v9 = vsel %vm667_vm2, %v1239_v6, 0 }
  0xef   : > { %v569_v48 = vpop.f32.mrf.mxu2  ;;  %v970_v56 = vsel %vm667_vm2, %v941_v50, 0  ;;  %1277 = vmatpush.bf16.msra.mxu2 %v1265_v8 }
  0xf0   : > { %1028 = vmatpush.bf16.msra.mxu0 %v970_v56 }
  0xf1   : > { %v5383_v28 = vpop.f32.mrf.mxu1 }
  0xf4   : > { %v404_v53 = vpop.f32.mrf.mxu0 }
  0xf5   : > { %v604_v54 = vpack.c.bf16 %v404_v53, %v404_v53 }
  0xf7   : > { %4534 = vxpose.binary.xlu2.c.b16.start.end [1/2] (short) %v603_v52, %v604_v54, 128  ;;  %v1090_v52 = vpack.c.b16 %v1088_v47, %v1088_v47  ;;  %v572_v55 = vpop.f32.mrf.mxu2 }
  0xf9   : > { %v5391_v31 = vpop.f32.mrf.mxu1  ;;  %v1119_v58 = vsel %vm667_vm2, %v1090_v52, 0 }
  0xff   : > { %v5432_v61 = vpop.f32.mrf.mxu2 }
 0x101   : > { %v5395_v33 = vpop.f32.mrf.mxu1 }
 0x102   : > { %7550 = vst [vmem:[#allocation6_spill] sm:$0xff] %v5395_v33 }
 0x107   : > { %v5444_v7 = vpop.f32.mrf.mxu2 }
 0x108   : > { %7557 = vst [vmem:[#allocation13_spill] sm:$0xff] %v5444_v7 }
 0x109   : > { %v5403_v36 = vpop.f32.mrf.mxu1 }
 0x10a   : > { %7551 = vst [vmem:[#allocation7_spill] sm:$0xff] %v5403_v36 }
 0x10f   : > { %v5454_v13 = vpop.f32.mrf.mxu2 }
 0x110   : > { %7559 = vst [vmem:[#allocation15_spill] sm:$0xff] %v5454_v13 }
 0x111   : > { %v5411_v41 = vpop.f32.mrf.mxu1 }
 0x112   : > { %7552 = vst [vmem:[#allocation8_spill] sm:$0xff] %v5411_v41 }
 0x119   : > { %v5417_v49 = vpop.f32.mrf.mxu1 }
 0x11a   : > { %7553 = vst [vmem:[#allocation9_spill] sm:$0xff] %v5417_v49 }
 0x13f   : > { %772 = vxpose.xlu0.c.b16.start.end [1/1] (short) %v598_v59, 128  ;;  %v5428_v59 = vpop.f32.mrf.mxu1 }
 0x140   : > { %7554 = vst [vmem:[#allocation10_spill] sm:$0xff] %v5428_v59 }
 0x147   : > { %v5434_v1 = vpop.f32.mrf.mxu1 }
 0x148   : > { %7555 = vst [vmem:[#allocation11_spill] sm:$0xff] %v5434_v1 }
 0x14f   : > { %v5452_v12 = vpop.f32.mrf.mxu1 }
 0x150   : > { %7558 = vst [vmem:[#allocation14_spill] sm:$0xff] %v5452_v12 }
 0x157   : > { %4517 = vxpose.binary.xlu1.c.b16.start.end [1/2] (short) %v601_v14, %v602_v15, 128  ;;  %v611_v14 = vpack.c.bf16 %v572_v55, %v5383_v28  ;;  %v5468_v22 = vpop.f32.mrf.mxu1 }
 0x158   : > { %7562 = vst [vmem:[#allocation18_spill] sm:$0xff] %v5468_v22 }
 0x159   : > { %v1534_v17 = vunpack.c.l.b16 %v611_v14  ;;  %v1535_v28 = vunpack.c.h.b16 %v611_v14 }
 0x15b   : > { %v1536_v23 = vpack.c.b16 %v1534_v17, %v1534_v17  ;;  %v1537_v42 = vpack.c.b16 %v1535_v28, %v1535_v28 }
 0x15d   : > { %v1566_v52 = vsel %vm667_vm2, %v1537_v42, 0 }
 0x16b   : > { %v629_v18 = vpop.trf.xlu0 }
 0x16c   : > { %4259 = vmatmul.msk.bf16.vlgmr.msrb.gmra.mxu1 %vm642_vm3, %v629_v18  ;;  %4267 = vmatmul.msk.bf16.vlgmr.msrb.gmra.mxu0 %vm642_vm3, %v629_v18  ;;  %v5463_v18 = vpop.f32.mrf.mxu2 }
 0x16d   : > { %1177 = vmatpush.bf16.msrb.mxu1 %v1119_v58  ;;  %1326 = vmatpush.bf16.msrb.mxu0 %v1268_v9  ;;  %7560 = vst [vmem:[#allocation16_spill] sm:$0xff] %v5463_v18 }
 0x17b   : > { %v630_v21 = vpop.trf.xlu0 }
 0x17c   : > { %4260 = vmatmul.msk.bf16.gmra.mxu1 %vm642_vm3, %v630_v21  ;;  %4268 = vmatmul.msk.bf16.gmra.mxu0 %vm642_vm3, %v630_v21  ;;  %v610_v21 = vpack.c.bf16 %v569_v48, %v5376_v20 }
 0x17e   : > { %v1385_v24 = vunpack.c.l.b16 %v610_v21  ;;  %v1386_v25 = vunpack.c.h.b16 %v610_v21 }
 0x180   : > { %v1387_v37 = vpack.c.b16 %v1385_v24, %v1385_v24 }
 0x182   : > { %v1414_v48 = vsel %vm667_vm2, %v1387_v37, 0 }
 0x183   : > { %v5380_v26 = vpop.trf.xlu1 }
 0x18b   : > { %v631_v29 = vpop.trf.xlu0  ;;  %v5385_v30 = vpop.trf.xlu1 }
 0x18c   : > { %4261 = vmatmul.msk.bf16.vlgmr.msra.gmra.mxu3 %vm642_vm3, %v631_v29  ;;  %4269 = vmatmul.msk.bf16.gmra.mxu0 %vm642_vm3, %v631_v29  ;;  %v1563_v29 = vsel %vm667_vm2, %v1536_v23, 0 }
 0x18d   : > { %4291 = vmatmul.msk.bf16.vlgmr.msrb.gmra.mxu2 %vm642_vm3, %v5385_v30  ;;  %1128 = vmatpush.bf16.msra.mxu3 %v1116_v57 }
 0x18e   : > { %1575 = vmatpush.bf16.msrb.mxu2 %v1563_v29 }
 0x193   : > { %v5393_v32 = vpop.trf.xlu1 }
 0x198   : > { %v5436_v2 = vpop.trf.xlu2 }
 0x199   : > { %7556 = vst [vmem:[#allocation12_spill] sm:$0xff] %v5436_v2 }
 0x19b   : > { %v632_v34 = vpop.trf.xlu0  ;;  %v5397_v35 = vpop.trf.xlu1 }
 0x19c   : > { %4262 = vmatmul.msk.bf16.gmra.mxu3 %vm642_vm3, %v632_v34  ;;  %4270 = vmatmul.msk.bf16.gmra.mxu0 %vm642_vm3, %v632_v34  ;;  %v5473_v34 = vpop.f32.mrf.mxu2 }
 0x19d   : > { %4292 = vmatmul.msk.bf16.gmra.mxu2 %vm642_vm3, %v5397_v35  ;;  %7563 = vst [vmem:[#allocation19_spill] sm:$0xff] %v5473_v34 }
 0x1a0   : > { %v5450_v11 = vpop.trf.xlu2 }
 0x1a3   : > { %v5405_v38 = vpop.trf.xlu1 }
 0x1a8   : > { %v5465_v19 = vpop.trf.xlu2 }
 0x1a9   : > { %7561 = vst [vmem:[#allocation17_spill] sm:$0xff] %v5465_v19 }
 0x1ab   : > { %v633_v39 = vpop.trf.xlu0  ;;  %v5407_v40 = vpop.trf.xlu1 }
 0x1ac   : > { %4263 = vmatmul.msk.bf16.gmra.mxu3 %vm642_vm3, %v633_v39  ;;  %4271 = vmatmul.msk.bf16.gmra.mxu0 %vm642_vm3, %v633_v39  ;;  %v1388_v39 = vpack.c.b16 %v1386_v25, %v1386_v25 }
 0x1ad   : > { %4293 = vmatmul.msk.bf16.gmra.mxu2 %vm642_vm3, %v5407_v40 }
 0x1ae   : > { %v1417_v50 = vsel %vm667_vm2, %v1388_v39, 0 }
 0x1b0   : > { %v5475_v43 = vpop.trf.xlu2 }
 0x1b3   : > { %v5415_v44 = vpop.trf.xlu1 }
 0x1b8   : > { %v5500_v57 = vpop.trf.xlu2 }
 0x1b9   : > { %7568 = vst [vmem:[#allocation24_spill] sm:$0xff] %v5500_v57 }
 0x1bb   : > { %v634_v53 = vpop.trf.xlu0  ;;  %v5419_v54 = vpop.trf.xlu1 }
 0x1bc   : > { %4264 = vmatmul.msk.bf16.gmra.mxu3 %vm642_vm3, %v634_v53  ;;  %4272 = vmatmul.msk.bf16.gmra.mxu0 %vm642_vm3, %v634_v53  ;;  %v5494_v53 = vpop.f32.mrf.mxu2 }
 0x1bd   : > { %4294 = vmatmul.msk.bf16.gmra.mxu2 %vm642_vm3, %v5419_v54  ;;  %7565 = vst [vmem:[#allocation21_spill] sm:$0xff] %v5494_v53 }
 0x1c0   : > { %v5516_v6 = vpop.trf.xlu2 }
 0x1c3   : > { %v5430_v60 = vpop.trf.xlu1 }
 0x1c4   : > { %v5504_v62 = vpop.f32.mrf.mxu2 }
 0x1c5   : > { %7569 = vst [vmem:[#allocation25_spill] sm:$0xff] %v5504_v62 }
 0x1c8   : > { %v5532_v21 = vpop.trf.xlu2 }
 0x1c9   : > { %7576 = vst [vmem:[#allocation32_spill] sm:$0xff] %v5532_v21 }
 0x1cb   : > { %v635_v3 = vpop.trf.xlu0  ;;  %v5438_v4 = vpop.trf.xlu1 }
 0x1cc   : > { %4265 = vmatmul.msk.bf16.gmra.mxu3 %vm642_vm3, %v635_v3  ;;  %4273 = vmatmul.msk.bf16.gmra.mxu0 %vm642_vm3, %v635_v3  ;;  %v5522_v8 = vpop.f32.mrf.mxu2 }
 0x1cd   : > { %4295 = vmatmul.msk.bf16.gmra.mxu2 %vm642_vm3, %v5438_v4  ;;  %7572 = vst [vmem:[#allocation28_spill] sm:$0xff] %v5522_v8 }
 0x1d0   : > { %v5550_v37 = vpop.trf.xlu2 }
 0x1d3   : > { %v5448_v10 = vpop.trf.xlu1 }
 0x1d4   : > { %v5534_v23 = vpop.f32.mrf.mxu2 }
 0x1d5   : > { %7577 = vst [vmem:[#allocation33_spill] sm:$0xff] %v5534_v23 }
 0x1db   : > { %v636_v15 = vpop.trf.xlu0  ;;  %v5457_v16 = vpop.trf.xlu1 }
 0x1dc   : > { %4266 = vmatmul.msk.bf16.gmra.mxu3 %vm642_vm3, %v636_v15  ;;  %4274 = vmatmul.msk.bf16.gmra.mxu0 %vm642_vm3, %v636_v15 }
 0x1dd   : > { %4296 = vmatmul.msk.bf16.gmra.mxu2 %vm642_vm3, %v5457_v16 }
 0x1e3   : > { %v5470_v27 = vpop.trf.xlu1 }
 0x1e9   : > { %v5477_v45 = vpop.f32.mrf.mxu1  ;;  %v5479_v20 = vpop.f32.mrf.mxu0 }
 0x1ea   : > { %7564 = vst [vmem:[#allocation20_spill] sm:$0xff] %v5479_v20  ;;  %v1815_v46 = vmax.f32 %v5477_v45, %v5479_v20 }
 0x1eb   : > { %v780_v47 = vpop.trf.xlu0  ;;  %v5485_v51 = vpop.trf.xlu1 }
 0x1ec   : > { %4275 = vmatmul.msk.bf16.vlgmr.msrb.gmra.mxu3 %vm642_vm3, %v780_v47  ;;  %4283 = vmatmul.msk.bf16.vlgmr.msra.gmra.mxu1 %vm642_vm3, %v780_v47 }
 0x1ed   : > { %4299 = vmatmul.msk.bf16.vlgmr.msra.gmra.mxu0 %vm642_vm3, %v5385_v30  ;;  %1816 = vmax.xlane.f32.xlu2 %v1815_v46 }
 0x1ee   : > { %1426 = vmatpush.bf16.msrb.mxu3 %v1414_v48  ;;  %1475 = vmatpush.bf16.msra.mxu1 %v1417_v50 }
 0x1ef   : > { %1624 = vmatpush.bf16.msra.mxu0 %v1566_v52  ;;  %4297 = vmatmul.msk.bf16.gmra.mxu2 %vm642_vm3, %v5485_v51  ;;  %v5566_v52 = vpop.trf.xlu2 }
 0x1f0   : > { %7581 = vst [vmem:[#allocation37_spill] sm:$0xff] %v5566_v52 }
 0x1f1   : > { %v5496_v55 = vpop.f32.mrf.mxu1  ;;  %v5498_v56 = vpop.f32.mrf.mxu0 }
 0x1f2   : > { %7566 = vst [vmem:[#allocation22_spill] sm:$0xff] %v5496_v55 }
 0x1f3   : > { %7567 = vst [vmem:[#allocation23_spill] sm:$0xff] %v5498_v56  ;;  %v5502_v58 = vpop.trf.xlu1 }
 0x1f7   : > { %v5586_v12 = vpop.trf.xlu2 }
 0x1f9   : > { %v5506_v30 = vpop.f32.mrf.mxu1  ;;  %v5508_v63 = vpop.f32.mrf.mxu0 }
 0x1fa   : > { %7570 = vst [vmem:[#allocation26_spill] sm:$0xff] %v5506_v30  ;;  %v1821_v0 = vmax.f32 %v5506_v30, %v5508_v63 }
 0x1fb   : > { %7571 = vst [vmem:[#allocation27_spill] sm:$0xff] %v5508_v63  ;;  %v781_v3 = vpop.trf.xlu0  ;;  %v5512_v5 = vpop.trf.xlu1 }
 0x1fc   : > { %4276 = vmatmul.msk.bf16.gmra.mxu3 %vm642_vm3, %v781_v3  ;;  %4284 = vmatmul.msk.bf16.gmra.mxu1 %vm642_vm3, %v781_v3 }
 0x1fd   : > { %4300 = vmatmul.msk.bf16.gmra.mxu0 %vm642_vm3, %v5397_v35  ;;  %1822 = vmax.xlane.f32.xlu2 %v1821_v0 }
 0x1ff   : > { %4298 = vmatmul.msk.bf16.gmra.mxu2 %vm642_vm3, %v5512_v5  ;;  %v5604_v62 = vpop.trf.xlu2 }
 0x200   : > { %7585 = vst [vmem:[#allocation41_spill] sm:$0xff] %v5604_v62 }
 0x201   : > { %v5524_v9 = vpop.f32.mrf.mxu1  ;;  %v5526_v14 = vpop.f32.mrf.mxu0 }
 0x202   : > { %7573 = vst [vmem:[#allocation29_spill] sm:$0xff] %v5524_v9  ;;  %v1824_v15 = vmax.f32 %v5524_v9, %v5526_v14 }
 0x203   : > { %7574 = vst [vmem:[#allocation30_spill] sm:$0xff] %v5526_v14  ;;  %v5530_v17 = vpop.trf.xlu1 }
 0x204   : > { %7575 = vst [vmem:[#allocation31_spill] sm:$0xff] %v5530_v17 }
 0x205   : > { %1825 = vmax.xlane.f32.xlu2 %v1824_v15 }
 0x209   : > { %v5536_v35 = vpop.f32.mrf.mxu0 }
 0x20b   : > { %v782_v24 = vpop.trf.xlu0  ;;  %v5538_v25 = vpop.trf.xlu1 }
 0x20c   : > { %4277 = vmatmul.msk.bf16.gmra.mxu3 %vm642_vm3, %v782_v24  ;;  %4285 = vmatmul.msk.bf16.gmra.mxu1 %vm642_vm3, %v782_v24 }
 0x20d   : > { %4301 = vmatmul.msk.bf16.gmra.mxu0 %vm642_vm3, %v5407_v40 }
 0x20f   : > { %v5544_v28 = vpop.f32.mrf.mxu3  ;;  %4323 = vmatmul.msk.bf16.vlgmr.msra.gmra.mxu2 %vm642_vm3, %v5538_v25 }
 0x210   : > { %v1827_v29 = vmax.f32 %v5544_v28, %v5536_v35  ;;  %v5554_v42 = vpop.f32.mrf.mxu2 }
 0x211   : > { %v5552_v39 = vpop.f32.mrf.mxu0  ;;  %7578 = vst [vmem:[#allocation34_spill] sm:$0xff] %v5554_v42 }
 0x212   : > { %1828 = vmax.xlane.f32.xlu2 %v1827_v29 }
 0x213   : > { %v5556_v46 = vpop.trf.xlu1 }
 0x214   : > { %7579 = vst [vmem:[#allocation35_spill] sm:$0xff] %v5556_v46 }
 0x217   : > { %v5558_v47 = vpop.f32.mrf.mxu3 }
 0x218   : > { %v1830_v40 = vmax.f32 %v5558_v47, %v5552_v39  ;;  %v5564_v50 = vpop.f32.mrf.mxu2 }
 0x219   : > { %v5562_v48 = vpop.f32.mrf.mxu0  ;;  %7580 = vst [vmem:[#allocation36_spill] sm:$0xff] %v5564_v50 }
 0x21a   : > { %1831 = vmax.xlane.f32.xlu2 %v1830_v40 }
 0x21b   : > { %v783_v0 = vpop.trf.xlu0  ;;  %v5568_v3 = vpop.trf.xlu1 }
 0x21c   : > { %4278 = vmatmul.msk.bf16.gmra.mxu3 %vm642_vm3, %v783_v0  ;;  %4286 = vmatmul.msk.bf16.gmra.mxu1 %vm642_vm3, %v783_v0 }
 0x21d   : > { %4302 = vmatmul.msk.bf16.gmra.mxu0 %vm642_vm3, %v5419_v54  ;;  %v1818_v54 = vmax.f32 %v5496_v55, %v5498_v56 }
 0x21f   : > { %v5574_v15 = vpop.f32.mrf.mxu3  ;;  %4324 = vmatmul.msk.bf16.gmra.mxu2 %vm642_vm3, %v5568_v3 }
 0x220   : > { %v1833_v24 = vmax.f32 %v5574_v15, %v5562_v48  ;;  %v5582_v40 = vpop.f32.mrf.mxu2 }
 0x221   : > { %v5580_v29 = vpop.f32.mrf.mxu0  ;;  %7582 = vst [vmem:[#allocation38_spill] sm:$0xff] %v5582_v40 }
 0x222   : > { %1834 = vmax.xlane.f32.xlu2 %v1833_v24 }
 0x223   : > { %v5584_v8 = vpop.trf.xlu1 }
 0x224   : > { %7583 = vst [vmem:[#allocation39_spill] sm:$0xff] %v5584_v8 }
 0x227   : > { %v5590_v0 = vpop.f32.mrf.mxu3  ;;  %1819 = vmax.xlane.f32.xlu1 %v1818_v54 }
 0x228   : > { %v1836_v23 = vmax.f32 %v5590_v0, %v5580_v29  ;;  %v5596_v53 = vpop.f32.mrf.mxu2 }
 0x229   : > { %v5594_v22 = vpop.f32.mrf.mxu0 }
 0x22a   : > { %7584 = vst [vmem:[#allocation40_spill] sm:$0xff] %v5594_v22  ;;  %1837 = vmax.xlane.f32.xlu2 %v1836_v23 }
 0x22b   : > { %v784_v59 = vpop.trf.xlu0  ;;  %v5598_v24 = vpop.trf.xlu1 }
 0x22c   : > { %4279 = vmatmul.msk.bf16.gmra.mxu3 %vm642_vm3, %v784_v59  ;;  %4287 = vmatmul.msk.bf16.gmra.mxu1 %vm642_vm3, %v784_v59 }
 0x22d   : > { %4303 = vmatmul.msk.bf16.gmra.mxu0 %vm642_vm3, %v5438_v4  ;;  %v5620_v4 = vpop.trf.xlu2 }
 0x22e   : > { %7589 = vst [vmem:[#allocation45_spill] sm:$0xff] %v5620_v4 }
 0x22f   : > { %v5606_v54 = vpop.f32.mrf.mxu3  ;;  %4325 = vmatmul.msk.bf16.gmra.mxu2 %vm642_vm3, %v5598_v24 }
 0x230   : > { %7586 = vst [vmem:[#allocation42_spill] sm:$0xff] %v5606_v54  ;;  %v1839_v23 = vmax.f32 %v5606_v54, %v5594_v22  ;;  %v5614_v34 = vpop.f32.mrf.mxu2 }
 0x231   : > { %v5612_v1 = vpop.f32.mrf.mxu0  ;;  %7587 = vst [vmem:[#allocation43_spill] sm:$0xff] %v5614_v34 }
 0x232   : > { %1840 = vmax.xlane.f32.xlu2 %v1839_v23 }
 0x233   : > { %v5616_v49 = vpop.trf.xlu1 }
 0x234   : > { %7588 = vst [vmem:[#allocation44_spill] sm:$0xff] %v5616_v49 }
 0x237   : > { %v5618_v59 = vpop.f32.mrf.mxu3 }
 0x238   : > { %v1842_v62 = vmax.f32 %v5618_v59, %v5612_v1  ;;  %v5626_v13 = vpop.f32.mrf.mxu2 }
 0x239   : > { %v5624_v52 = vpop.f32.mrf.mxu0  ;;  %7591 = vst [vmem:[#allocation47_spill] sm:$0xff] %v5626_v13 }
 0x23a   : > { %7590 = vst [vmem:[#allocation46_spill] sm:$0xff] %v5624_v52  ;;  %1843 = vmax.xlane.f32.xlu2 %v1842_v62  ;;  %v5642_v62 = vpop.trf.xlu2 }
 0x23b   : > { %v785_v36 = vpop.trf.xlu0  ;;  %v5628_v18 = vpop.trf.xlu1  ;;  %7592 = vst [vmem:[#allocation48_spill] sm:$0xff] %v5642_v62 }
 0x23c   : > { %4280 = vmatmul.msk.bf16.gmra.mxu3 %vm642_vm3, %v785_v36  ;;  %4288 = vmatmul.msk.bf16.gmra.mxu1 %vm642_vm3, %v785_v36 }
 0x23d   : > { %4304 = vmatmul.msk.bf16.gmra.mxu0 %vm642_vm3, %v5457_v16 }
 0x23f   : > { %v5634_v23 = vpop.f32.mrf.mxu3  ;;  %4326 = vmatmul.msk.bf16.gmra.mxu2 %vm642_vm3, %v5628_v18 }
 0x240   : > { %v1845_v41 = vmax.f32 %v5634_v23, %v5624_v52  ;;  %v5646_v19 = vpop.f32.mrf.mxu2 }
 0x241   : > { %v5640_v21 = vpop.f32.mrf.mxu0 }
 0x242   : > { %1846 = vmax.xlane.f32.xlu2 %v1845_v41  ;;  %v5660_v62 = vpop.trf.xlu2 }
 0x243   : > { %v5644_v57 = vpop.trf.xlu1  ;;  %7594 = vst [vmem:[#allocation50_spill] sm:$0xff] %v5660_v62 }
 0x244   : > { %7593 = vst [vmem:[#allocation49_spill] sm:$0xff] %v5644_v57 }
 0x247   : > { %v5648_v36 = vpop.f32.mrf.mxu3 }
 0x248   : > { %v1848_v16 = vmax.f32 %v5648_v36, %v5640_v21  ;;  %v5658_v41 = vpop.f32.mrf.mxu2 }
 0x249   : > { %v5652_v2 = vpop.f32.mrf.mxu0 }
 0x24a   : > { %1849 = vmax.xlane.f32.xlu2 %v1848_v16  ;;  %v5676_v56 = vpop.trf.xlu2 }
 0x24b   : > { %v786_v7 = vpop.trf.xlu0  ;;  %v5654_v33 = vpop.trf.xlu1  ;;  %7597 = vst [vmem:[#allocation53_spill] sm:$0xff] %v5676_v56 }
 0x24c   : > { %4281 = vmatmul.msk.bf16.gmra.mxu3 %vm642_vm3, %v786_v7  ;;  %4289 = vmatmul.msk.bf16.gmra.mxu1 %vm642_vm3, %v786_v7 }
 0x24d   : > { %4305 = vmatmul.msk.bf16.gmra.mxu0 %vm642_vm3, %v5485_v51 }
 0x24f   : > { %v5664_v57 = vpop.f32.mrf.mxu3  ;;  %4327 = vmatmul.msk.bf16.gmra.mxu2 %vm642_vm3, %v5654_v33 }
 0x250   : > { %v1851_v16 = vmax.f32 %v5664_v57, %v5652_v2  ;;  %v5674_v7 = vpop.f32.mrf.mxu2 }
 0x251   : > { %v5670_v49 = vpop.f32.mrf.mxu0  ;;  %7596 = vst [vmem:[#allocation52_spill] sm:$0xff] %v5674_v7 }
 0x252   : > { %1852 = vmax.xlane.f32.xlu1 %v1851_v16  ;;  %v5700_v9 = vpop.trf.xlu2 }
 0x253   : > { %v5672_v8 = vpop.trf.xlu1  ;;  %7599 = vst [vmem:[#allocation55_spill] sm:$0xff] %v5700_v9 }
 0x254   : > { %7595 = vst [vmem:[#allocation51_spill] sm:$0xff] %v5672_v8 }
 0x257   : > { %v5678_v55 = vpop.f32.mrf.mxu3 }
 0x258   : > { %v1854_v51 = vmax.f32 %v5678_v55, %v5670_v49  ;;  %v5688_v16 = vpop.f32.mrf.mxu2 }
 0x259   : > { %v5682_v20 = vpop.f32.mrf.mxu0  ;;  %7598 = vst [vmem:[#allocation54_spill] sm:$0xff] %v5688_v16 }
 0x25a   : > { %1855 = vmax.xlane.f32.xlu2 %v1854_v51  ;;  %v612_v51 = vpack.c.bf16 %v5432_v61, %v5391_v31 }
 0x25b   : > { %v787_v46 = vpop.trf.xlu0  ;;  %v5684_v14 = vpop.trf.xlu1 }
 0x25c   : > { %4282 = vmatmul.msk.bf16.gmra.mxu3 %vm642_vm3, %v787_v46  ;;  %4290 = vmatmul.msk.bf16.gmra.mxu1 %vm642_vm3, %v787_v46  ;;  %v1683_v17 = vunpack.c.l.b16 %v612_v51  ;;  %v1684_v22 = vunpack.c.h.b16 %v612_v51 }
 0x25d   : > { %4306 = vmatmul.msk.bf16.gmra.mxu0 %vm642_vm3, %v5512_v5 }
 0x25e   : > { %v1685_v63 = vpack.c.b16 %v1683_v17, %v1683_v17  ;;  %v1686_v61 = vpack.c.b16 %v1684_v22, %v1684_v22 }
 0x25f   : > { %v5692_v56 = vpop.f32.mrf.mxu3  ;;  %4328 = vmatmul.msk.bf16.gmra.mxu2 %vm642_vm3, %v5684_v14 }
 0x260   : > { %v1857_v8 = vmax.f32 %v5692_v56, %v5682_v20  ;;  %v5706_v5 = vpop.f32.mrf.mxu2  ;;  %v5716_v9 = vpop.xlane.xlu2 %1816  ;;  %v1712_v22 = vsel %vm667_vm2, %v1685_v63, 0  ;;  %v1715_v51 = vsel %vm667_vm2, %v1686_v61, 0 }
 0x261   : > { %v5702_v62 = vpop.f32.mrf.mxu0  ;;  %7601 = vst [vmem:[#allocation57_spill] sm:$0xff] %v5706_v5 }
 0x262   : > { %1858 = vmax.xlane.f32.xlu2 %v1857_v8 }
 0x263   : > { %v5704_v46 = vpop.trf.xlu1 }
 0x264   : > { %7600 = vst [vmem:[#allocation56_spill] sm:$0xff] %v5704_v46 }
 0x267   : > { %v5708_v54 = vpop.f32.mrf.mxu3 }
 0x268   : > { %v1860_v31 = vmax.f32 %v5708_v54, %v5702_v62  ;;  %v5727_v17 = vpop.f32.mrf.mxu2 }
 0x269   : > { %v5712_v30 = vpop.f32.mrf.mxu1  ;;  %7604 = vst [vmem:[#allocation60_spill] sm:$0xff] %v5727_v17 }
 0x26a   : > { %7602 = vst [vmem:[#allocation58_spill] sm:$0xff] %v5712_v30  ;;  %v5714_v52 = vpop.f32.mrf.mxu0  ;;  %1861 = vmax.xlane.f32.xlu0 %v1860_v31 }
 0x26b   : > { %7603 = vst [vmem:[#allocation59_spill] sm:$0xff] %v5714_v52  ;;  %v1911_v8 = vmax.f32 %v5554_v42, %v5714_v52  ;;  %v5720_v46 = vpop.trf.xlu1 }
 0x26c   : > { %4307 = vmatmul.msk.bf16.vlgmr.msra.gmra.mxu3 %vm642_vm3, %v5380_v26  ;;  %4315 = vmatmul.msk.bf16.vlgmr.msrb.gmra.mxu1 %vm642_vm3, %v5380_v26 }
 0x26d   : > { %4331 = vmatmul.msk.bf16.vlgmr.msrb.gmra.mxu0 %vm642_vm3, %v5538_v25  ;;  %1724 = vmatpush.bf16.msra.mxu3 %v1712_v22 }
 0x26e   : > { %1773 = vmatpush.bf16.msrb.mxu1 %v1715_v51  ;;  %1912 = vmax.xlane.f32.xlu2 %v1911_v8 }
 0x26f   : > { %v5732_v31 = vpop.f32.mrf.mxu3  ;;  %4329 = vmatmul.msk.bf16.gmra.mxu2 %vm642_vm3, %v5720_v46 }
 0x270   : > { %7605 = vst [vmem:[#allocation61_spill] sm:$0xff] %v5732_v31  ;;  %v5740_v63 = vpop.xlane.xlu2 %1822  ;;  %v1863_v25 = vmax.f32 %v5732_v31, %v5712_v30 }
 0x271   : > { %v5736_v52 = vpop.f32.mrf.mxu1  ;;  %7608 = vst [vmem:[#allocation64_spill] sm:$0xff] %v5740_v63 }
 0x272   : > { %7606 = vst [vmem:[#allocation62_spill] sm:$0xff] %v5736_v52  ;;  %v5738_v26 = vpop.f32.mrf.mxu0  ;;  %v5748_v8 = vpop.f32.mrf.mxu2 }
 0x273   : > { %7607 = vst [vmem:[#allocation63_spill] sm:$0xff] %v5738_v26  ;;  %v1914_v42 = vmax.f32 %v5564_v50, %v5738_v26  ;;  %v5746_v61 = vpop.trf.xlu1 }
 0x274   : > { %7609 = vst [vmem:[#allocation65_spill] sm:$0xff] %v5746_v61 }
 0x275   : > { %7610 = vst [vmem:[#allocation66_spill] sm:$0xff] %v5748_v8  ;;  %1915 = vmax.xlane.f32.xlu1 %v1914_v42 }
 0x276   : > { %1864 = vmax.xlane.f32.xlu2 %v1863_v25 }
 0x277   : > { %v5750_v22 = vpop.f32.mrf.mxu3 }
 0x278   : > { %7611 = vst [vmem:[#allocation67_spill] sm:$0xff] %v5750_v22  ;;  %v1866_v63 = vmax.f32 %v5750_v22, %v5736_v52  ;;  %v5764_v30 = vpop.xlane.xlu2 %1825 }
 0x279   : > { %v5752_v51 = vpop.f32.mrf.mxu1  ;;  %7615 = vst [vmem:[#allocation71_spill] sm:$0xff] %v5764_v30 }
 0x27a   : > { %7612 = vst [vmem:[#allocation68_spill] sm:$0xff] %v5752_v51  ;;  %v5754_v4 = vpop.f32.mrf.mxu0  ;;  %v5762_v61 = vpop.f32.mrf.mxu2 }
 0x27b   : > { %7613 = vst [vmem:[#allocation69_spill] sm:$0xff] %v5754_v4  ;;  %v5768_v42 = vpop.trf.xlu1 }
 0x27c   : > { %4308 = vmatmul.msk.bf16.gmra.mxu3 %vm642_vm3, %v5393_v32  ;;  %4316 = vmatmul.msk.bf16.gmra.mxu1 %vm642_vm3, %v5393_v32  ;;  %7614 = vst [vmem:[#allocation70_spill] sm:$0xff] %v5762_v61  ;;  %v1917_v32 = vmax.f32 %v5582_v40, %v5754_v4 }
 0x27d   : > { %4332 = vmatmul.msk.bf16.gmra.mxu0 %vm642_vm3, %v5568_v3  ;;  %1867 = vmax.xlane.f32.xlu1 %v1866_v63 }
 0x27f   : > { %v5770_v25 = vpop.f32.mrf.mxu3  ;;  %4330 = vmatmul.msk.bf16.gmra.mxu2 %vm642_vm3, %v5768_v42 }
 0x280   : > { %7616 = vst [vmem:[#allocation72_spill] sm:$0xff] %v5770_v25  ;;  %v1869_v52 = vmax.f32 %v5770_v25, %v5752_v51 }
 0x281   : > { %v5776_v22 = vpop.f32.mrf.mxu1 }
 0x282   : > { %7617 = vst [vmem:[#allocation73_spill] sm:$0xff] %v5776_v22  ;;  %v5780_v30 = vpop.f32.mrf.mxu0  ;;  %1870 = vmax.xlane.f32.xlu2 %v1869_v52  ;;  %v5784_v63 = vpop.f32.mrf.mxu2 }
 0x283   : > { %7618 = vst [vmem:[#allocation74_spill] sm:$0xff] %v5780_v30  ;;  %v1920_v3 = vmax.f32 %v5596_v53, %v5780_v30 }
 0x284   : > { %7619 = vst [vmem:[#allocation75_spill] sm:$0xff] %v5784_v63 }
 0x285   : > { %1918 = vmax.xlane.f32.xlu1 %v1917_v32  ;;  %1921 = vmax.xlane.f32.xlu0 %v1920_v3  ;;  %v1829_v31 = vpop.xlane.xlu2 %1828 }
 0x286   : > { %v2207_v26 = vsub.f32 %v5544_v28, %v1829_v31  ;;  %v2208_v51 = vsub.f32 %v5536_v35, %v1829_v31 }
 0x287   : > { %v5788_v25 = vpop.f32.mrf.mxu3 }
 0x288   : > { %v2471_v4 = vmul.f32 1.442695, %v2207_v26  ;;  %v2473_v52 = vmul.f32 1.442695, %v2208_v51  ;;  %v1872_v30 = vmax.f32 %v5788_v25, %v5776_v22 }
 0x289   : > { %v5790_v50 = vpop.f32.mrf.mxu1 }
 0x28a   : > { %7620 = vst [vmem:[#allocation76_spill] sm:$0xff] %v5790_v50  ;;  %v5792_v40 = vpop.f32.mrf.mxu0  ;;  %v5800_v28 = vpop.f32.mrf.mxu2  ;;  %4551 = vpow2.f32 %v2471_v4 }
 0x28b   : > { %7621 = vst [vmem:[#allocation77_spill] sm:$0xff] %v5792_v40  ;;  %4553 = vpow2.f32 %v2473_v52 }
 0x28c   : > { %4309 = vmatmul.msk.bf16.gmra.mxu3 %vm642_vm3, %v5405_v38  ;;  %4317 = vmatmul.msk.bf16.gmra.mxu1 %vm642_vm3, %v5405_v38  ;;  %7622 = vst [vmem:[#allocation78_spill] sm:$0xff] %v5800_v28 }
 0x28d   : > { %4333 = vmatmul.msk.bf16.gmra.mxu0 %vm642_vm3, %v5598_v24  ;;  %1873 = vmax.xlane.f32.xlu1 %v1872_v30  ;;  %v1832_v35 = vpop.xlane.xlu2 %1831  ;;  %v1923_v30 = vmax.f32 %v5614_v34, %v5792_v40 }
 0x28e   : > { %v2209_v31 = vsub.f32 %v5558_v47, %v1832_v35  ;;  %v2210_v26 = vsub.f32 %v5552_v39, %v1832_v35 }
 0x28f   : > { %v5806_v51 = vpop.f32.mrf.mxu3  ;;  %4355 = vmatmul.msk.bf16.vlgmr.msrb.gmra.mxu2 %vm642_vm3, %v5450_v11 }
 0x290   : > { %v2475_v32 = vmul.f32 1.442695, %v2209_v31  ;;  %v2477_v38 = vmul.f32 1.442695, %v2210_v26  ;;  %v1875_v3 = vmax.f32 %v5806_v51, %v5790_v50  ;;  %v4552_v24 = vpop.eup %4551 }
 0x291   : > { %v5812_v22 = vpop.f32.mrf.mxu1  ;;  %v4554_v52 = vpop.eup %4553 }
 0x292   : > { %4555 = vpow2.f32 %v2475_v32  ;;  %v5816_v47 = vpop.f32.mrf.mxu0  ;;  %1876 = vmax.xlane.f32.xlu2 %v1875_v3  ;;  %v5820_v4 = vpop.f32.mrf.mxu2  ;;  %v2971_v34 = vpack.c.bf16 %v4554_v52, %v4552_v24 }
 0x293   : > { %7623 = vst [vmem:[#allocation79_spill] sm:$0xff] %v5816_v47  ;;  %4557 = vpow2.f32 %v2477_v38  ;;  %v1926_v39 = vmax.f32 %v5626_v13, %v5816_v47 }
 0x294   : > { %7624 = vst [vmem:[#allocation80_spill] sm:$0xff] %v5820_v4  ;;  %v3127_v24 = vunpack.c.h.b16 %v2971_v34 }
 0x295   : > { %1924 = vmax.xlane.f32.xlu1 %v1923_v30  ;;  %1927 = vmax.xlane.f32.xlu0 %v1926_v39  ;;  %v1835_v35 = vpop.xlane.xlu2 %1834 }
 0x296   : > { %v2211_v31 = vsub.f32 %v5574_v15, %v1835_v35  ;;  %v2212_v26 = vsub.f32 %v5562_v48, %v1835_v35  ;;  %v3126_v15 = vunpack.c.l.b16 %v2971_v34 }
 0x297   : > { %v5824_v40 = vpop.f32.mrf.mxu3 }
 0x298   : > { %v4556_v32 = vpop.eup %4555  ;;  %v2479_v38 = vmul.f32 1.442695, %v2211_v31  ;;  %v2481_v4 = vmul.f32 1.442695, %v2212_v26  ;;  %v1878_v30 = vmax.f32 %v5824_v40, %v5812_v22 }
 0x299   : > { %v4558_v3 = vpop.eup %4557  ;;  %v5826_v50 = vpop.f32.mrf.mxu1 }
 0x29a   : > { %v5828_v47 = vpop.f32.mrf.mxu0  ;;  %v2972_v13 = vpack.c.bf16 %v4558_v3, %v4556_v32  ;;  %v5836_v48 = vpop.f32.mrf.mxu2  ;;  %4559 = vpow2.f32 %v2479_v38 }
 0x29b   : > { %7625 = vst [vmem:[#allocation81_spill] sm:$0xff] %v5836_v48  ;;  %4561 = vpow2.f32 %v2481_v4 }
 0x29c   : > { %4310 = vmatmul.msk.bf16.gmra.mxu3 %vm642_vm3, %v5415_v44  ;;  %4318 = vmatmul.msk.bf16.gmra.mxu1 %vm642_vm3, %v5415_v44  ;;  %v3128_v39 = vunpack.c.l.b16 %v2972_v13  ;;  %v3129_v52 = vunpack.c.h.b16 %v2972_v13 }
 0x29d   : > { %4334 = vmatmul.msk.bf16.gmra.mxu0 %vm642_vm3, %v5628_v18  ;;  %1879 = vmax.xlane.f32.xlu1 %v1878_v30  ;;  %v1838_v35 = vpop.xlane.xlu2 %1837 }
 0x29e   : > { %v2213_v31 = vsub.f32 %v5590_v0, %v1838_v35  ;;  %v2214_v26 = vsub.f32 %v5580_v29, %v1838_v35  ;;  %v5842_v32 = vpack.c.b16 %v3128_v39, %v3126_v15  ;;  %v5844_v3 = vpack.c.b16 %v3129_v52, %v3127_v24 }
 0x29f   : > { %v5846_v44 = vpop.f32.mrf.mxu3  ;;  %4356 = vmatmul.msk.bf16.gmra.mxu2 %vm642_vm3, %v5475_v43  ;;  %v1929_v29 = vmax.f32 %v5646_v19, %v5828_v47 }
 0x2a0   : > { %v2483_v13 = vmul.f32 1.442695, %v2213_v31  ;;  %v2485_v34 = vmul.f32 1.442695, %v2214_v26  ;;  %v1881_v18 = vmax.f32 %v5846_v44, %v5826_v50  ;;  %v4560_v4 = vpop.eup %4559 }
 0x2a1   : > { %v5852_v38 = vpop.f32.mrf.mxu1  ;;  %v4562_v39 = vpop.eup %4561 }
 0x2a2   : > { %7626 = vst [vmem:[#allocation82_spill] sm:$0xff] %v5852_v38  ;;  %4563 = vpow2.f32 %v2483_v13  ;;  %v5856_v0 = vpop.f32.mrf.mxu0  ;;  %1882 = vmax.xlane.f32.xlu2 %v1881_v18  ;;  %v5860_v15 = vpop.f32.mrf.mxu2  ;;  %v2973_v31 = vpack.c.bf16 %v4562_v39, %v4560_v4 }
 0x2a3   : > { %4565 = vpow2.f32 %v2485_v34  ;;  %v1932_v30 = vmax.f32 %v5658_v41, %v5856_v0  ;;  %7627 = vst [vmem:[#allocation83_spill] sm:$0xff] %v5860_v15 }
 0x2a4   : > { %v3131_v4 = vunpack.c.h.b16 %v2973_v31 }
 0x2a5   : > { %1930 = vmax.xlane.f32.xlu1 %v1929_v29  ;;  %1933 = vmax.xlane.f32.xlu0 %v1932_v30  ;;  %v5862_v24 = vpop.xlane.xlu2 %1840  ;;  %v3130_v30 = vunpack.c.l.b16 %v2973_v31 }
 0x2a7   : > { %v5864_v52 = vpop.f32.mrf.mxu3 }
 0x2a8   : > { %v4564_v35 = vpop.eup %4563  ;;  %v1884_v48 = vmax.f32 %v5864_v52, %v5852_v38 }
 0x2a9   : > { %v4566_v26 = vpop.eup %4565  ;;  %v5866_v13 = vpop.f32.mrf.mxu1 }
 0x2aa   : > { %7628 = vst [vmem:[#allocation84_spill] sm:$0xff] %v5866_v13  ;;  %v5868_v18 = vpop.f32.mrf.mxu0  ;;  %v2974_v34 = vpack.c.bf16 %v4566_v26, %v4564_v35  ;;  %v5876_v29 = vpop.f32.mrf.mxu2 }
 0x2ab   : > { %7629 = vst [vmem:[#allocation85_spill] sm:$0xff] %v5868_v18 }
 0x2ac   : > { %4311 = vmatmul.msk.bf16.gmra.mxu3 %vm642_vm3, %v5430_v60  ;;  %4319 = vmatmul.msk.bf16.gmra.mxu1 %vm642_vm3, %v5430_v60  ;;  %7630 = vst [vmem:[#allocation86_spill] sm:$0xff] %v5876_v29  ;;  %v3132_v15 = vunpack.c.l.b16 %v2974_v34  ;;  %v3133_v39 = vunpack.c.h.b16 %v2974_v34 }
 0x2ad   : > { %4335 = vmatmul.msk.bf16.gmra.mxu0 %vm642_vm3, %v5654_v33  ;;  %1885 = vmax.xlane.f32.xlu1 %v1884_v48  ;;  %v5890_v29 = vpop.xlane.xlu2 %1843  ;;  %v1935_v33 = vmax.f32 %v5674_v7, %v5868_v18 }
 0x2ae   : > { %v5880_v35 = vpack.c.b16 %v3132_v15, %v3130_v30  ;;  %v5882_v26 = vpack.c.b16 %v3133_v39, %v3131_v4 }
 0x2af   : > { %v5884_v38 = vpop.f32.mrf.mxu3  ;;  %4357 = vmatmul.msk.bf16.gmra.mxu2 %vm642_vm3, %v5516_v6 }
 0x2b0   : > { %7631 = vst [vmem:[#allocation87_spill] sm:$0xff] %v5884_v38  ;;  %v1887_v60 = vmax.f32 %v5884_v38, %v5866_v13 }
 0x2b1   : > { %v5892_v31 = vpop.f32.mrf.mxu1 }
 0x2b2   : > { %7632 = vst [vmem:[#allocation88_spill] sm:$0xff] %v5892_v31  ;;  %v5896_v48 = vpop.f32.mrf.mxu0  ;;  %1888 = vmax.xlane.f32.xlu2 %v1887_v60  ;;  %v5900_v34 = vpop.f32.mrf.mxu2 }
 0x2b3   : > { %7633 = vst [vmem:[#allocation89_spill] sm:$0xff] %v5896_v48  ;;  %v1938_v15 = vmax.f32 %v5688_v16, %v5896_v48 }
 0x2b5   : > { %1936 = vmax.xlane.f32.xlu1 %v1935_v33  ;;  %1939 = vmax.xlane.f32.xlu0 %v1938_v15  ;;  %v5908_v13 = vpop.xlane.xlu2 %1846 }
 0x2b7   : > { %v5902_v30 = vpop.f32.mrf.mxu3 }
 0x2b8   : > { %7634 = vst [vmem:[#allocation90_spill] sm:$0xff] %v5902_v30  ;;  %v1890_v18 = vmax.f32 %v5902_v30, %v5892_v31 }
 0x2b9   : > { %v5904_v4 = vpop.f32.mrf.mxu1 }
 0x2ba   : > { %7635 = vst [vmem:[#allocation91_spill] sm:$0xff] %v5904_v4  ;;  %v5906_v39 = vpop.f32.mrf.mxu0  ;;  %v5916_v60 = vpop.f32.mrf.mxu2 }
 0x2bb   : > { %7636 = vst [vmem:[#allocation92_spill] sm:$0xff] %v5906_v39  ;;  %v1941_v30 = vmax.f32 %v5706_v5, %v5906_v39 }
 0x2bc   : > { %4312 = vmatmul.msk.bf16.gmra.mxu3 %vm642_vm3, %v5448_v10  ;;  %4320 = vmatmul.msk.bf16.gmra.mxu1 %vm642_vm3, %v5448_v10 }
 0x2bd   : > { %4336 = vmatmul.msk.bf16.gmra.mxu0 %vm642_vm3, %v5684_v14  ;;  %1891 = vmax.xlane.f32.xlu1 %v1890_v18  ;;  %v5936_v48 = vpop.xlane.xlu2 %1849 }
 0x2bf   : > { %v5920_v33 = vpop.f32.mrf.mxu3  ;;  %4358 = vmatmul.msk.bf16.gmra.mxu2 %vm642_vm3, %v5550_v37 }
 0x2c0   : > { %7637 = vst [vmem:[#allocation93_spill] sm:$0xff] %v5920_v33  ;;  %v1893_v15 = vmax.f32 %v5920_v33, %v5904_v4 }
 0x2c1   : > { %v5926_v31 = vpop.f32.mrf.mxu1 }
 0x2c2   : > { %7638 = vst [vmem:[#allocation94_spill] sm:$0xff] %v5926_v31  ;;  %v5930_v10 = vpop.f32.mrf.mxu0  ;;  %1894 = vmax.xlane.f32.xlu2 %v1893_v15  ;;  %v5934_v18 = vpop.f32.mrf.mxu2 }
 0x2c3   : > { %7639 = vst [vmem:[#allocation95_spill] sm:$0xff] %v5930_v10  ;;  %v1944_v14 = vmax.f32 %v5727_v17, %v5930_v10  ;;  %v2217_v17 = vsub.f32 %v5618_v59, %v5890_v29  ;;  %v2219_v59 = vsub.f32 %v5634_v23, %v5908_v13 }
 0x2c4   : > { %7640 = vst [vmem:[#allocation96_spill] sm:$0xff] %v5934_v18 }
 0x2c5   : > { %1942 = vmax.xlane.f32.xlu1 %v1941_v30  ;;  %1945 = vmax.xlane.f32.xlu0 %v1944_v14 }
 0x2c7   : > { %v5938_v16 = vpop.f32.mrf.mxu3 }
 0x2c8   : > { %7641 = vst [vmem:[#allocation97_spill] sm:$0xff] %v5938_v16  ;;  %v1896_v39 = vmax.f32 %v5938_v16, %v5926_v31 }
 0x2c9   : > { %v5940_v4 = vpop.f32.mrf.mxu1 }
 0x2ca   : > { %7642 = vst [vmem:[#allocation98_spill] sm:$0xff] %v5940_v4  ;;  %v5942_v33 = vpop.f32.mrf.mxu0  ;;  %v5952_v15 = vpop.f32.mrf.mxu2 }
 0x2cb   : > { %7643 = vst [vmem:[#allocation99_spill] sm:$0xff] %v5942_v33 }
 0x2cc   : > { %4313 = vmatmul.msk.bf16.gmra.mxu3 %vm642_vm3, %v5470_v27  ;;  %4321 = vmatmul.msk.bf16.gmra.mxu1 %vm642_vm3, %v5470_v27  ;;  %7644 = vst [vmem:[#allocation100_spill] sm:$0xff] %v5952_v15  ;;  %v1947_v27 = vmax.f32 %v5748_v8, %v5942_v33 }
 0x2cd   : > { %4337 = vmatmul.msk.bf16.gmra.mxu0 %vm642_vm3, %v5720_v46  ;;  %1897 = vmax.xlane.f32.xlu1 %v1896_v39  ;;  %v1856_v30 = vpop.xlane.xlu2 %1855  ;;  %v2199_v46 = vsub.f32 %v5477_v45, %v5716_v9  ;;  %v5966_v39 = vpop.xlane.xlu1 %1819 }
 0x2ce   : > { %v2226_v23 = vsub.f32 %v5670_v49, %v1856_v30 }
 0x2cf   : > { %v5954_v14 = vpop.f32.mrf.mxu3  ;;  %4359 = vmatmul.msk.bf16.gmra.mxu2 %vm642_vm3, %v5586_v12  ;;  %v2455_v45 = vmul.f32 1.442695, %v2199_v46 }
 0x2d0   : > { %7645 = vst [vmem:[#allocation101_spill] sm:$0xff] %v5954_v14  ;;  %v1899_v31 = vmax.f32 %v5954_v14, %v5940_v4  ;;  %v2218_v4 = vsub.f32 %v5612_v1, %v5890_v29 }
 0x2d1   : > { %v5960_v16 = vpop.f32.mrf.mxu1  ;;  %4567 = vpow2.f32 %v2455_v45 }
 0x2d2   : > { %7646 = vst [vmem:[#allocation102_spill] sm:$0xff] %v5960_v16  ;;  %v5968_v10 = vpop.f32.mrf.mxu0  ;;  %1900 = vmax.xlane.f32.xlu2 %v1899_v31  ;;  %v5976_v33 = vpop.f32.mrf.mxu2  ;;  %v2491_v31 = vmul.f32 1.442695, %v2217_v17 }
 0x2d3   : > { %7647 = vst [vmem:[#allocation103_spill] sm:$0xff] %v5968_v10  ;;  %v1950_v5 = vmax.f32 %v5762_v61, %v5968_v10  ;;  %v2493_v10 = vmul.f32 1.442695, %v2218_v4  ;;  %v2225_v61 = vsub.f32 %v5678_v55, %v1856_v30 }
 0x2d4   : > { %7648 = vst [vmem:[#allocation104_spill] sm:$0xff] %v5976_v33  ;;  %4569 = vpow2.f32 %v2491_v31 }
 0x2d5   : > { %1948 = vmax.xlane.f32.xlu1 %v1947_v27  ;;  %1951 = vmax.xlane.f32.xlu0 %v1950_v5  ;;  %v1859_v14 = vpop.xlane.xlu2 %1858  ;;  %v1853_v5 = vpop.xlane.xlu1 %1852  ;;  %4571 = vpow2.f32 %v2493_v10  ;;  %v2507_v17 = vmul.f32 1.442695, %v2225_v61 }
 0x2d6   : > { %v2227_v8 = vsub.f32 %v5692_v56, %v1859_v14  ;;  %v2228_v7 = vsub.f32 %v5682_v20, %v1859_v14  ;;  %v2495_v56 = vmul.f32 1.442695, %v2219_v59  ;;  %v2223_v55 = vsub.f32 %v5664_v57, %v1853_v5 }
 0x2d7   : > { %v5982_v38 = vpop.f32.mrf.mxu3  ;;  %v2224_v4 = vsub.f32 %v5652_v2, %v1853_v5  ;;  %v2221_v57 = vsub.f32 %v5648_v36, %v5936_v48  ;;  %v6012_v30 = vpop.eup %4567  ;;  %v2509_v2 = vmul.f32 1.442695, %v2226_v23  ;;  %v7656_v5 = vld [vmem:[#allocation34_spill] sm:$0xff] }
 0x2d8   : > { %7649 = vst [vmem:[#allocation105_spill] sm:$0xff] %v5982_v38  ;;  %v2511_v1 = vmul.f32 1.442695, %v2227_v8  ;;  %v2513_v27 = vmul.f32 1.442695, %v2228_v7  ;;  %v1902_v20 = vmax.f32 %v5982_v38, %v5960_v16 }
 0x2d9   : > { %v5985_v29 = vpop.f32.mrf.mxu1  ;;  %v2503_v31 = vmul.f32 1.442695, %v2223_v55  ;;  %v7659_v55 = vld [vmem:[#allocation46_spill] sm:$0xff] }
 0x2da   : > { %7650 = vst [vmem:[#allocation106_spill] sm:$0xff] %v5985_v29  ;;  %v5987_v46 = vpop.f32.mrf.mxu0  ;;  %4573 = vpow2.f32 %v2511_v1  ;;  %v5999_v8 = vpop.f32.mrf.mxu2  ;;  %v2505_v1 = vmul.f32 1.442695, %v2224_v4  ;;  %v7661_v4 = vld [vmem:[#allocation26_spill] sm:$0xff] }
 0x2db   : > { %7651 = vst [vmem:[#allocation107_spill] sm:$0xff] %v5987_v46  ;;  %4575 = vpow2.f32 %v2513_v27 }
 0x2dc   : > { %4314 = vmatmul.msk.bf16.gmra.mxu3 %vm642_vm3, %v5502_v58  ;;  %4322 = vmatmul.msk.bf16.gmra.mxu1 %vm642_vm3, %v5502_v58  ;;  %7652 = vst [vmem:[#allocation108_spill] sm:$0xff] %v5999_v8  ;;  %4577 = vpow2.f32 %v2495_v56  ;;  %v2222_v58 = vsub.f32 %v5640_v21, %v5936_v48  ;;  %v1953_v21 = vmax.f32 %v5784_v63, %v5987_v46  ;;  %v7657_v56 = vld [vmem:[#allocation59_spill] sm:$0xff]  ;;  %v7660_v46 = vld [vmem:[#allocation64_spill] sm:$0xff] }
 0x2dd   : > { %4338 = vmatmul.msk.bf16.gmra.mxu0 %vm642_vm3, %v5768_v42  ;;  %1903 = vmax.xlane.f32.xlu1 %v1902_v20  ;;  %v1862_v7 = vpop.xlane.xlu0 %1861  ;;  %v7654_v42 = vld [vmem:[#allocation45_spill] sm:$0xff]  ;;  %4579 = vpow2.f32 %v2507_v17  ;;  %v2220_v17 = vsub.f32 %v7659_v55, %v5908_v13 }
 0x2de   : > { %v2229_v49 = vsub.f32 %v5708_v54, %v1862_v7  ;;  %v2230_v10 = vsub.f32 %v5702_v62, %v1862_v7  ;;  %v6016_v62 = vpop.eup %4569  ;;  %v2501_v63 = vmul.f32 1.442695, %v2222_v58 }
 0x2df   : > { %v6008_v61 = vpop.f32.mrf.mxu3  ;;  %4360 = vmatmul.msk.bf16.gmra.mxu2 %vm642_vm3, %v7654_v42  ;;  %v6022_v48 = vpop.eup %4571  ;;  %v2497_v55 = vmul.f32 1.442695, %v2220_v17  ;;  %v7690_v42 = vld [vmem:[#allocation74_spill] sm:$0xff] }
 0x2e0   : > { %7653 = vst [vmem:[#allocation109_spill] sm:$0xff] %v6008_v61  ;;  %v2515_v14 = vmul.f32 1.442695, %v2229_v49  ;;  %v2517_v45 = vmul.f32 1.442695, %v2230_v10  ;;  %v1905_v54 = vmax.f32 %v6008_v61, %v5985_v29  ;;  %v4574_v7 = vpop.eup %4573  ;;  %v7671_v29 = vld [vmem:[#allocation58_spill] sm:$0xff] }
 0x2e1   : > { %v1913_v36 = vpop.xlane.xlu2 %1912  ;;  %v6018_v59 = vpop.f32.mrf.mxu1  ;;  %v2499_v49 = vmul.f32 1.442695, %v2221_v57 }
 0x2e2   : > { %7655 = vst [vmem:[#allocation110_spill] sm:$0xff] %v6018_v59  ;;  %4581 = vpow2.f32 %v2515_v14  ;;  %v2263_v27 = vsub.f32 %v7656_v5, %v1913_v36  ;;  %v2264_v20 = vsub.f32 %v7657_v56, %v1913_v36  ;;  %v6026_v23 = vpop.f32.mrf.mxu0  ;;  %1906 = vmax.xlane.f32.xlu2 %v1905_v54  ;;  %v4576_v16 = vpop.eup %4575  ;;  %v2203_v14 = vsub.f32 %v7661_v4, %v7660_v46 }
 0x2e3   : > { %7658 = vst [vmem:[#allocation34_spill] sm:$0xff] %v6026_v23  ;;  %4583 = vpow2.f32 %v2517_v45  ;;  %v1956_v10 = vmax.f32 %v5800_v28, %v6026_v23  ;;  %v6034_v5 = vpop.eup %4577  ;;  %v6036_v54 = vpop.f32.mrf.mxu2  ;;  %v7663_v45 = vld [vmem:[#allocation27_spill] sm:$0xff]  ;;  %v2981_v23 = vpack.c.bf16 %v4576_v16, %v4574_v7 }
 0x2e4   : > { %4585 = vpow2.f32 %v2509_v2  ;;  %v2583_v36 = vmul.f32 1.442695, %v2263_v27  ;;  %7662 = vst [vmem:[#allocation59_spill] sm:$0xff] %v6036_v54  ;;  %v2585_v13 = vmul.f32 1.442695, %v2264_v20  ;;  %v4580_v57 = vpop.eup %4579  ;;  %v2204_v56 = vsub.f32 %v7663_v45, %v7660_v46  ;;  %v7667_v46 = vld [vmem:[#allocation36_spill] sm:$0xff] }
 0x2e5   : > { %4587 = vpow2.f32 %v2503_v31  ;;  %1954 = vmax.xlane.f32.xlu1 %v1953_v21  ;;  %1957 = vmax.xlane.f32.xlu0 %v1956_v10  ;;  %v2463_v2 = vmul.f32 1.442695, %v2203_v14  ;;  %v7665_v31 = vld [vmem:[#allocation42_spill] sm:$0xff]  ;;  %v7666_v10 = vld [vmem:[#allocation40_spill] sm:$0xff]  ;;  %v7668_v16 = vld [vmem:[#allocation63_spill] sm:$0xff] }
 0x2e6   : > { %4589 = vpow2.f32 %v2505_v1  ;;  %v2215_v27 = vsub.f32 %v7665_v31, %v5862_v24  ;;  %v2216_v28 = vsub.f32 %v7666_v10, %v5862_v24  ;;  %v3146_v10 = vunpack.c.l.b16 %v2981_v23 }
 0x2e7   : > { %4591 = vpow2.f32 %v2499_v49  ;;  %v6040_v4 = vpop.f32.mrf.mxu3 }
 0x2e8   : > { %7664 = vst [vmem:[#allocation46_spill] sm:$0xff] %v6040_v4  ;;  %v4582_v58 = vpop.eup %4581  ;;  %4593 = vpow2.f32 %v2501_v63  ;;  %v1916_v21 = vpop.xlane.xlu1 %1915  ;;  %v1908_v1 = vmax.f32 %v6040_v4, %v6018_v59  ;;  %v7670_v63 = vld [vmem:[#allocation61_spill] sm:$0xff] }
 0x2e9   : > { %v4584_v20 = vpop.eup %4583  ;;  %4595 = vpow2.f32 %v2583_v36  ;;  %v2265_v17 = vsub.f32 %v7667_v46, %v1916_v21  ;;  %v2266_v7 = vsub.f32 %v7668_v16, %v1916_v21  ;;  %v1865_v49 = vpop.xlane.xlu2 %1864  ;;  %v7673_v16 = vld [vmem:[#allocation31_spill] sm:$0xff] }
 0x2ea   : > { %v6050_v45 = vpop.f32.mrf.mxu1  ;;  %v4586_v14 = vpop.eup %4585  ;;  %v2982_v38 = vpack.c.bf16 %v4584_v20, %v4582_v58  ;;  %4597 = vpow2.f32 %v2585_v13  ;;  %v2231_v31 = vsub.f32 %v7670_v63, %v1865_v49  ;;  %v2232_v61 = vsub.f32 %v7671_v29, %v1865_v49  ;;  %1909 = vmax.xlane.f32.xlu2 %v1908_v1 }
 0x2eb   : > { %7669 = vst [vmem:[#allocation64_spill] sm:$0xff] %v6050_v45  ;;  %v6054_v59 = vpop.f32.mrf.mxu0  ;;  %v4588_v4 = vpop.eup %4587  ;;  %4599 = vpow2.f32 %v2497_v55  ;;  %v2587_v24 = vmul.f32 1.442695, %v2265_v17  ;;  %v2589_v36 = vmul.f32 1.442695, %v2266_v7  ;;  %v3147_v58 = vunpack.c.h.b16 %v2981_v23 }
 0x2ec   : > { %7672 = vst [vmem:[#allocation26_spill] sm:$0xff] %v6054_v59  ;;  %v4590_v46 = vpop.eup %4589  ;;  %v2519_v21 = vmul.f32 1.442695, %v2231_v31  ;;  %4339 = vmatmul.msk.bf16.vlgmr.msrb.gmra.mxu3 %vm642_vm3, %v7673_v16  ;;  %4347 = vmatmul.msk.bf16.vlgmr.msra.gmra.mxu1 %vm642_vm3, %v7673_v16  ;;  %v3148_v13 = vunpack.c.l.b16 %v2982_v38  ;;  %v3149_v20 = vunpack.c.h.b16 %v2982_v38  ;;  %v2521_v49 = vmul.f32 1.442695, %v2232_v61  ;;  %v6062_v1 = vpop.f32.mrf.mxu2  ;;  %v7676_v38 = vld [vmem:[#allocation50_spill] sm:$0xff] }
 0x2ed   : > { %v4592_v29 = vpop.eup %4591  ;;  %4601 = vpow2.f32 %v2587_v24  ;;  %4363 = vmatmul.msk.bf16.vlgmr.msra.gmra.mxu0 %vm642_vm3, %v5450_v11  ;;  %v2980_v55 = vpack.c.bf16 %v4586_v14, %v4580_v57  ;;  %7674 = vst [vmem:[#allocation27_spill] sm:$0xff] %v6062_v1  ;;  %v2487_v7 = vmul.f32 1.442695, %v2215_v27  ;;  %v2979_v23 = vpack.c.bf16 %v4590_v46, %v4588_v4 }
 0x2ee   : > { %v4594_v17 = vpop.eup %4593  ;;  %4603 = vpow2.f32 %v2589_v36  ;;  %v3164_v63 = vpack.c.b16 %v3148_v13, %v3146_v10  ;;  %v3165_v31 = vpack.c.b16 %v3149_v20, %v3147_v58  ;;  %v6068_v24 = vmul.f32 1.442695, %v2204_v56  ;;  %v7678_v10 = vld [vmem:[#allocation62_spill] sm:$0xff]  ;;  %v7680_v58 = vld [vmem:[#allocation71_spill] sm:$0xff]  ;;  %v7681_v56 = vld [vmem:[#allocation29_spill] sm:$0xff] }
 0x2ef   : > { %v4596_v59 = vpop.eup %4595  ;;  %4605 = vpow2.f32 %v2463_v2  ;;  %v6064_v16 = vpop.f32.mrf.mxu3  ;;  %4361 = vmatmul.msk.bf16.gmra.mxu2 %vm642_vm3, %v7676_v38  ;;  %v2489_v11 = vmul.f32 1.442695, %v2216_v28  ;;  %v7677_v2 = vld [vmem:[#allocation67_spill] sm:$0xff]  ;;  %v3144_v13 = vunpack.c.l.b16 %v2980_v55  ;;  %v3143_v1 = vunpack.c.h.b16 %v2979_v23 }
 0x2f0   : > { %7675 = vst [vmem:[#allocation42_spill] sm:$0xff] %v6064_v16  ;;  %v4598_v61 = vpop.eup %4597  ;;  %4607 = vpow2.f32 %v2519_v21  ;;  %v1868_v57 = vpop.xlane.xlu1 %1867  ;;  %3182 = vmatpush.bf16.xpose.msra.mxu2 %v3164_v63  ;;  %3195 = vmatpush.bf16.xpose.msrb.mxu0 %v3165_v31  ;;  %v1959_v27 = vmax.f32 %v6064_v16, %v6050_v45  ;;  %v3145_v21 = vunpack.c.h.b16 %v2980_v55  ;;  %v6080_v63 = vpack.c.bf16 %v4594_v17, %v4592_v29 }
 0x2f1   : > { %v4600_v14 = vpop.eup %4599  ;;  %4609 = vpow2.f32 %v2521_v49  ;;  %v2233_v36 = vsub.f32 %v7677_v2, %v1868_v57  ;;  %v2234_v4 = vsub.f32 %v7678_v10, %v1868_v57  ;;  %v3142_v16 = vunpack.c.l.b16 %v2979_v23  ;;  %v7683_v57 = vld [vmem:[#allocation30_spill] sm:$0xff] }
 0x2f2   : > { %v6074_v46 = vpop.f32.mrf.mxu1  ;;  %4611 = vpow2.f32 %v2487_v7  ;;  %1960 = vmax.xlane.f32.xlu0 %v1959_v27  ;;  %v2999_v2 = vpack.c.bf16 %v4598_v61, %v4596_v59  ;;  %v6086_v7 = vpack.c.bf16 %v6022_v48, %v6016_v62  ;;  %v2977_v17 = vpack.c.bf16 %v4600_v14, %v6034_v5 }
 0x2f3   : > { %7679 = vst [vmem:[#allocation40_spill] sm:$0xff] %v6074_v46  ;;  %v6078_v28 = vpop.f32.mrf.mxu0  ;;  %v4602_v31 = vpop.eup %4601  ;;  %v2523_v45 = vmul.f32 1.442695, %v2233_v36  ;;  %v2525_v49 = vmul.f32 1.442695, %v2234_v4  ;;  %4613 = vpow2.f32 %v2489_v11  ;;  %v3162_v55 = vpack.c.b16 %v3144_v13, %v3142_v16  ;;  %v7685_v36 = vld [vmem:[#allocation72_spill] sm:$0xff] }
 0x2f4   : > { %7682 = vst [vmem:[#allocation36_spill] sm:$0xff] %v6078_v28  ;;  %v4604_v38 = vpop.eup %4603  ;;  %v6091_v27 = vpop.f32.mrf.mxu2  ;;  %v7686_v11 = vld [vmem:[#allocation68_spill] sm:$0xff]  ;;  %v3163_v10 = vpack.c.b16 %v3145_v21, %v3143_v1  ;;  %v3140_v48 = vunpack.c.l.b16 %v6080_v63  ;;  %v7688_v1 = vld [vmem:[#allocation38_spill] sm:$0xff] }
 0x2f5   : > { %v6088_v20 = vpop.eup %4605  ;;  %4615 = vpow2.f32 %v2523_v45  ;;  %v1871_v29 = vpop.xlane.xlu2 %1870  ;;  %7684 = vst [vmem:[#allocation63_spill] sm:$0xff] %v6091_v27  ;;  %v3000_v59 = vpack.c.bf16 %v4604_v38, %v4602_v31  ;;  %v3344_v45 = vunpack.c.l.b16 %v2999_v2 }
 0x2f6   : > { %v4608_v61 = vpop.eup %4607  ;;  %4617 = vpow2.f32 %v2525_v49  ;;  %v2235_v4 = vsub.f32 %v7685_v36, %v1871_v29  ;;  %v2236_v23 = vsub.f32 %v7686_v11, %v1871_v29  ;;  %v3345_v49 = vunpack.c.h.b16 %v2999_v2  ;;  %v7689_v29 = vld [vmem:[#allocation69_spill] sm:$0xff] }
 0x2f7   : > { %v4610_v28 = vpop.eup %4609  ;;  %v6095_v62 = vpop.f32.mrf.mxu3  ;;  %v3346_v54 = vunpack.c.l.b16 %v3000_v59  ;;  %v3347_v16 = vunpack.c.h.b16 %v3000_v59 }
 0x2f8   : > { %7687 = vst [vmem:[#allocation61_spill] sm:$0xff] %v6095_v62  ;;  %v4612_v13 = vpop.eup %4611  ;;  %v2527_v5 = vmul.f32 1.442695, %v2235_v4  ;;  %v2529_v14 = vmul.f32 1.442695, %v2236_v23  ;;  %v1919_v27 = vpop.xlane.xlu1 %1918  ;;  %3183 = vmatpush.bf16.xpose.msra.mxu2 %v3162_v55  ;;  %3196 = vmatpush.bf16.xpose.msrb.mxu0 %v3163_v10  ;;  %v1962_v31 = vmax.f32 %v6095_v62, %v6074_v46  ;;  %v3141_v10 = vunpack.c.h.b16 %v6080_v63 }
 0x2f9   : > { %v1922_v38 = vpop.xlane.xlu0 %1921  ;;  %v2267_v21 = vsub.f32 %v7688_v1, %v1919_v27  ;;  %v2268_v36 = vsub.f32 %v7689_v29, %v1919_v27  ;;  %v4614_v4 = vpop.eup %4613  ;;  %v6109_v55 = vpack.c.b16 %v3346_v54, %v3344_v45  ;;  %v6111_v46 = vpack.c.b16 %v3347_v16, %v3345_v49 }
 0x2fa   : > { %v2269_v11 = vsub.f32 %v5596_v53, %v1922_v38  ;;  %v2270_v8 = vsub.f32 %v7690_v42, %v1922_v38  ;;  %v6104_v59 = vpop.f32.mrf.mxu1  ;;  %1963 = vmax.xlane.f32.xlu2 %v1962_v31  ;;  %v2983_v2 = vpack.c.bf16 %v4610_v28, %v4608_v61  ;;  %4619 = vpow2.f32 %v2527_v5  ;;  %v7694_v38 = vld [vmem:[#allocation35_spill] sm:$0xff] }
 0x2fb   : > { %v6106_v23 = vpop.f32.mrf.mxu0  ;;  %7692 = vst [vmem:[#allocation31_spill] sm:$0xff] %v6109_v55  ;;  %v4616_v1 = vpop.eup %4615  ;;  %v2591_v27 = vmul.f32 1.442695, %v2267_v21  ;;  %v2593_v29 = vmul.f32 1.442695, %v2268_v36  ;;  %4621 = vpow2.f32 %v2529_v14  ;;  %v3138_v63 = vunpack.c.l.b16 %v2977_v17  ;;  %v7783_v55 = vld [vmem:[#allocation107_spill] sm:$0xff] }
 0x2fc   : > { %7691 = vst [vmem:[#allocation58_spill] sm:$0xff] %v6106_v23  ;;  %v2595_v53 = vmul.f32 1.442695, %v2269_v11  ;;  %v4618_v62 = vpop.eup %4617  ;;  %v2597_v42 = vmul.f32 1.442695, %v2270_v8  ;;  %4340 = vmatmul.msk.bf16.gmra.mxu3 %vm642_vm3, %v7694_v38  ;;  %4348 = vmatmul.msk.bf16.gmra.mxu1 %vm642_vm3, %v7694_v38  ;;  %v3139_v54 = vunpack.c.h.b16 %v2977_v17  ;;  %v7695_v45 = vsub.f32 %v7681_v56, %v7680_v58  ;;  %v6122_v16 = vpop.f32.mrf.mxu2  ;;  %v7697_v17 = vld [vmem:[#allocation55_spill] sm:$0xff] }
 0x2fd   : > { %7693 = vst [vmem:[#allocation67_spill] sm:$0xff] %v6111_v46  ;;  %4623 = vpow2.f32 %v2591_v27  ;;  %4364 = vmatmul.msk.bf16.gmra.mxu0 %vm642_vm3, %v5475_v43  ;;  %v2975_v61 = vpack.c.bf16 %v4614_v4, %v4612_v13  ;;  %v2984_v8 = vpack.c.bf16 %v4618_v62, %v4616_v1  ;;  %v3160_v5 = vpack.c.b16 %v3140_v48, %v3138_v63  ;;  %v7699_v1 = vld [vmem:[#allocation73_spill] sm:$0xff]  ;;  %v7762_v46 = vld [vmem:[#allocation91_spill] sm:$0xff] }
 0x2fe   : > { %v2467_v28 = vmul.f32 1.442695, %v7695_v45  ;;  %7696 = vst [vmem:[#allocation62_spill] sm:$0xff] %v6122_v16  ;;  %4625 = vpow2.f32 %v2593_v29  ;;  %v3161_v14 = vpack.c.b16 %v3141_v10, %v3139_v54  ;;  %v3231_v31 = vunpack.c.l.b16 %v2983_v2 }
 0x2ff   : > { %4627 = vpow2.f32 %v2595_v53  ;;  %v6124_v49 = vpop.f32.mrf.mxu3  ;;  %4362 = vmatmul.msk.bf16.gmra.mxu2 %vm642_vm3, %v7697_v17  ;;  %v3233_v56 = vunpack.c.l.b16 %v2984_v8  ;;  %v3232_v21 = vunpack.c.h.b16 %v2983_v2  ;;  %v3234_v36 = vunpack.c.h.b16 %v2984_v8 }
 0x300   : > { %v7698_v43 = vsub.f32 %v7683_v57, %v7680_v58  ;;  %4629 = vpow2.f32 %v2597_v42  ;;  %v1874_v11 = vpop.xlane.xlu1 %1873  ;;  %3184 = vmatpush.bf16.xpose.msra.mxu2 %v3160_v5  ;;  %3197 = vmatpush.bf16.xpose.msrb.mxu0 %v3161_v14  ;;  %v1965_v62 = vmax.f32 %v6124_v49, %v6104_v59  ;;  %v3136_v48 = vunpack.c.l.b16 %v6086_v7  ;;  %v4620_v4 = vpop.eup %4619  ;;  %v7703_v14 = vld [vmem:[#allocation20_spill] sm:$0xff] }
 0x301   : > { %v2237_v10 = vsub.f32 %v5788_v25, %v1874_v11  ;;  %v2238_v27 = vsub.f32 %v7699_v1, %v1874_v11  ;;  %v6138_v29 = vpack.c.b16 %v3233_v56, %v3231_v31  ;;  %v6140_v58 = vpack.c.b16 %v3234_v36, %v3232_v21  ;;  %v4622_v57 = vpop.eup %4621 }
 0x302   : > { %v2469_v13 = vmul.f32 1.442695, %v7698_v43  ;;  %v6136_v2 = vpop.f32.mrf.mxu1  ;;  %4631 = vpow2.f32 %v6068_v24  ;;  %1966 = vmax.xlane.f32.xlu2 %v1965_v62  ;;  %v3137_v42 = vunpack.c.h.b16 %v6086_v7  ;;  %v3134_v54 = vunpack.c.l.b16 %v2975_v61 }
 0x303   : > { %7700 = vst [vmem:[#allocation71_spill] sm:$0xff] %v6138_v29  ;;  %v6143_v53 = vpop.f32.mrf.mxu0  ;;  %v4624_v38 = vpop.eup %4623  ;;  %4633 = vpow2.f32 %v2467_v28  ;;  %v2531_v63 = vmul.f32 1.442695, %v2237_v10  ;;  %v2533_v25 = vmul.f32 1.442695, %v2238_v27  ;;  %v3135_v8 = vunpack.c.h.b16 %v2975_v61  ;;  %v7705_v28 = vld [vmem:[#allocation76_spill] sm:$0xff] }
 0x304   : > { %7701 = vst [vmem:[#allocation29_spill] sm:$0xff] %v6140_v58  ;;  %v4626_v45 = vpop.eup %4625  ;;  %4635 = vpow2.f32 %v2469_v13  ;;  %v2200_v31 = vsub.f32 %v7703_v14, %v5716_v9  ;;  %v3158_v24 = vpack.c.b16 %v3136_v48, %v3134_v54  ;;  %v6148_v21 = vpop.f32.mrf.mxu2  ;;  %v7706_v13 = vld [vmem:[#allocation22_spill] sm:$0xff]  ;;  %v7707_v10 = vld [vmem:[#allocation23_spill] sm:$0xff] }
 0x305   : > { %7702 = vst [vmem:[#allocation30_spill] sm:$0xff] %v6143_v53  ;;  %v4628_v5 = vpop.eup %4627  ;;  %4637 = vpow2.f32 %v2531_v63  ;;  %v1877_v56 = vpop.xlane.xlu2 %1876  ;;  %v3001_v36 = vpack.c.bf16 %v4626_v45, %v4624_v38  ;;  %v3159_v62 = vpack.c.b16 %v3137_v42, %v3135_v8  ;;  %v2201_v61 = vsub.f32 %v7706_v13, %v5966_v39  ;;  %v7708_v14 = vld [vmem:[#allocation43_spill] sm:$0xff] }
 0x306   : > { %7704 = vst [vmem:[#allocation72_spill] sm:$0xff] %v6148_v21  ;;  %v4630_v43 = vpop.eup %4629  ;;  %4639 = vpow2.f32 %v2533_v25  ;;  %v2239_v7 = vsub.f32 %v5806_v51, %v1877_v56  ;;  %v2240_v11 = vsub.f32 %v7705_v28, %v1877_v56  ;;  %v2202_v1 = vsub.f32 %v7707_v10, %v5966_v39  ;;  %v7709_v28 = vld [vmem:[#allocation77_spill] sm:$0xff]  ;;  %v7710_v13 = vld [vmem:[#allocation47_spill] sm:$0xff] }
 0x307   : > { %v6156_v9 = vpop.f32.mrf.mxu3  ;;  %v3002_v27 = vpack.c.bf16 %v4630_v43, %v4628_v5  ;;  %v3348_v48 = vunpack.c.l.b16 %v3001_v36  ;;  %v3349_v42 = vunpack.c.h.b16 %v3001_v36  ;;  %v7711_v5 = vld [vmem:[#allocation79_spill] sm:$0xff] }
 0x308   : > { %v4632_v63 = vpop.eup %4631  ;;  %v2535_v54 = vmul.f32 1.442695, %v2239_v7  ;;  %v2537_v38 = vmul.f32 1.442695, %v2240_v11  ;;  %v1968_v25 = vmax.f32 %v6156_v9, %v6136_v2  ;;  %v1925_v51 = vpop.xlane.xlu1 %1924  ;;  %3185 = vmatpush.bf16.xpose.msra.mxu2 %v3158_v24  ;;  %3198 = vmatpush.bf16.xpose.msrb.mxu0 %v3159_v62  ;;  %v2985_v62 = vpack.c.bf16 %v4622_v57, %v4620_v4 }
 0x309   : > { %v1928_v45 = vpop.xlane.xlu0 %1927  ;;  %v4634_v8 = vpop.eup %4633  ;;  %v2271_v56 = vsub.f32 %v7708_v14, %v1925_v51  ;;  %v2272_v39 = vsub.f32 %v7709_v28, %v1925_v51  ;;  %v3350_v53 = vunpack.c.l.b16 %v3002_v27  ;;  %v3351_v24 = vunpack.c.h.b16 %v3002_v27 }
 0x30a   : > { %v2273_v10 = vsub.f32 %v7710_v13, %v1928_v45  ;;  %v2274_v43 = vsub.f32 %v7711_v5, %v1928_v45  ;;  %v6164_v23 = vpop.f32.mrf.mxu1  ;;  %v4636_v7 = vpop.eup %4635  ;;  %4641 = vpow2.f32 %v2535_v54  ;;  %1969 = vmax.xlane.f32.xlu1 %v1968_v25  ;;  %v7712_v13 = vld [vmem:[#allocation39_spill] sm:$0xff]  ;;  %v2459_v45 = vmul.f32 1.442695, %v2201_v61 }
 0x30b   : > { %v6166_v11 = vpop.f32.mrf.mxu0  ;;  %v4638_v36 = vpop.eup %4637  ;;  %4643 = vpow2.f32 %v2537_v38  ;;  %v2599_v58 = vmul.f32 1.442695, %v2271_v56  ;;  %v2601_v14 = vmul.f32 1.442695, %v2272_v39  ;;  %v6174_v25 = vpack.c.b16 %v3350_v53, %v3348_v48 }
 0x30c   : > { %v2603_v29 = vmul.f32 1.442695, %v2273_v10  ;;  %v4640_v51 = vpop.eup %4639  ;;  %v2605_v28 = vmul.f32 1.442695, %v2274_v43  ;;  %4341 = vmatmul.msk.bf16.gmra.mxu3 %vm642_vm3, %v7712_v13  ;;  %4349 = vmatmul.msk.bf16.gmra.mxu1 %vm642_vm3, %v7712_v13  ;;  %v2019_v54 = vmax.f32 %v5900_v34, %v6166_v11  ;;  %v6176_v27 = vpack.c.b16 %v3351_v24, %v3349_v42  ;;  %v6180_v4 = vpop.f32.mrf.mxu2 }
 0x30d   : > { %7713 = vst [vmem:[#allocation68_spill] sm:$0xff] %v6174_v25  ;;  %4645 = vpow2.f32 %v2599_v58  ;;  %4365 = vmatmul.msk.bf16.gmra.mxu0 %vm642_vm3, %v5516_v6  ;;  %v2986_v57 = vpack.c.bf16 %v4640_v51, %v4638_v36  ;;  %v2457_v38 = vmul.f32 1.442695, %v2200_v31  ;;  %v3235_v56 = vunpack.c.l.b16 %v2985_v62 }
 0x30e   : > { %7714 = vst [vmem:[#allocation38_spill] sm:$0xff] %v6176_v27  ;;  %4647 = vpow2.f32 %v2601_v14  ;;  %2020 = vmax.xlane.f32.xlu0 %v2019_v54  ;;  %v3236_v53 = vunpack.c.h.b16 %v2985_v62  ;;  %v2461_v5 = vmul.f32 1.442695, %v2202_v1  ;;  %v6197_v1 = vpack.c.bf16 %v4632_v63, %v6088_v20 }
 0x30f   : > { %7715 = vst [vmem:[#allocation69_spill] sm:$0xff] %v6180_v4  ;;  %4649 = vpow2.f32 %v2603_v29  ;;  %v6182_v39 = vpop.f32.mrf.mxu3  ;;  %v3237_v10 = vunpack.c.l.b16 %v2986_v57  ;;  %v3238_v48 = vunpack.c.h.b16 %v2986_v57 }
 0x310   : > { %v4642_v42 = vpop.eup %4641  ;;  %4651 = vpow2.f32 %v2605_v28  ;;  %v1880_v58 = vpop.xlane.xlu1 %1879  ;;  %3186 = vmatpush.bf16.xpose.msra.mxu2 %v5880_v35  ;;  %3199 = vmatpush.bf16.xpose.msrb.mxu0 %v5882_v26  ;;  %v2970_v35 = vpack.c.bf16 %v4636_v7, %v4634_v8  ;;  %v1971_v51 = vmax.f32 %v6182_v39, %v6164_v23  ;;  %v3122_v57 = vunpack.c.l.b16 %v6197_v1 }
 0x311   : > { %v4644_v6 = vpop.eup %4643  ;;  %v2241_v31 = vsub.f32 %v5824_v40, %v1880_v58  ;;  %v2242_v61 = vsub.f32 %v5812_v22, %v1880_v58  ;;  %v6190_v29 = vpack.c.b16 %v3237_v10, %v3235_v56  ;;  %v6192_v24 = vpack.c.b16 %v3238_v48, %v3236_v53 }
 0x312   : > { %v6188_v43 = vpop.f32.mrf.mxu1  ;;  %4653 = vpow2.f32 %v2457_v38  ;;  %v3124_v38 = vunpack.c.l.b16 %v2970_v35  ;;  %v3125_v58 = vunpack.c.h.b16 %v2970_v35 }
 0x313   : > { %7716 = vst [vmem:[#allocation74_spill] sm:$0xff] %v6190_v29  ;;  %v6194_v62 = vpop.f32.mrf.mxu0  ;;  %v4646_v36 = vpop.eup %4645  ;;  %4655 = vpow2.f32 %v2459_v45  ;;  %v2539_v26 = vmul.f32 1.442695, %v2241_v31  ;;  %v2541_v14 = vmul.f32 1.442695, %v2242_v61  ;;  %v3123_v45 = vunpack.c.h.b16 %v6197_v1 }
 0x314   : > { %7717 = vst [vmem:[#allocation35_spill] sm:$0xff] %v6192_v24  ;;  %v2022_v40 = vmax.f32 %v5916_v60, %v6194_v62  ;;  %v4648_v22 = vpop.eup %4647  ;;  %4657 = vpow2.f32 %v2461_v5  ;;  %v6203_v54 = vpop.f32.mrf.mxu2  ;;  %v7785_v24 = vld [vmem:[#allocation34_spill] sm:$0xff] }
 0x315   : > { %v4650_v28 = vpop.eup %4649  ;;  %4659 = vpow2.f32 %v2539_v26  ;;  %v1883_v13 = vpop.xlane.xlu2 %1882  ;;  %7718 = vst [vmem:[#allocation55_spill] sm:$0xff] %v6203_v54  ;;  %v3003_v20 = vpack.c.bf16 %v4648_v22, %v4646_v36 }
 0x316   : > { %2023 = vmax.xlane.f32.xlu2 %v2022_v40  ;;  %v4652_v63 = vpop.eup %4651  ;;  %4661 = vpow2.f32 %v2541_v14  ;;  %1972 = vmax.xlane.f32.xlu0 %v1971_v51  ;;  %v2243_v8 = vsub.f32 %v5846_v44, %v1883_v13  ;;  %v2244_v51 = vsub.f32 %v5826_v50, %v1883_v13 }
 0x317   : > { %v6206_v7 = vpop.f32.mrf.mxu3  ;;  %v3004_v56 = vpack.c.bf16 %v4652_v63, %v4650_v28  ;;  %v3352_v31 = vunpack.c.l.b16 %v3003_v20  ;;  %v3353_v61 = vunpack.c.h.b16 %v3003_v20  ;;  %v2987_v28 = vpack.c.bf16 %v4644_v6, %v4642_v42 }
 0x318   : > { %v4654_v10 = vpop.eup %4653  ;;  %v2543_v53 = vmul.f32 1.442695, %v2243_v8  ;;  %v1931_v48 = vpop.xlane.xlu1 %1930  ;;  %3187 = vmatpush.bf16.xpose.msra.mxu2 %v5842_v32  ;;  %3200 = vmatpush.bf16.xpose.msrb.mxu0 %v5844_v3  ;;  %v3152_v42 = vpack.c.b16 %v3124_v38, %v3122_v57  ;;  %v3153_v6 = vpack.c.b16 %v3125_v58, %v3123_v45  ;;  %v7724_v58 = vld [vmem:[#allocation82_spill] sm:$0xff] }
 0x319   : > { %v1934_v5 = vpop.xlane.xlu0 %1933  ;;  %v4656_v44 = vpop.eup %4655  ;;  %v2275_v36 = vsub.f32 %v5646_v19, %v1931_v48  ;;  %v2276_v26 = vsub.f32 %v5828_v47, %v1931_v48  ;;  %v3354_v3 = vunpack.c.l.b16 %v3004_v56  ;;  %v3355_v35 = vunpack.c.h.b16 %v3004_v56  ;;  %v7721_v48 = vld [vmem:[#allocation44_spill] sm:$0xff] }
 0x31a   : > { %v2277_v14 = vsub.f32 %v5658_v41, %v1934_v5  ;;  %v2278_v1 = vsub.f32 %v5856_v0, %v1934_v5  ;;  %v6216_v40 = vpop.f32.mrf.mxu1  ;;  %v4658_v22 = vpop.eup %4657  ;;  %v1974_v47 = vmax.f32 %v6206_v7, %v6188_v43  ;;  %4663 = vpow2.f32 %v2543_v53 }
 0x31b   : > { %7719 = vst [vmem:[#allocation73_spill] sm:$0xff] %v6216_v40  ;;  %v6219_v32 = vpop.f32.mrf.mxu0  ;;  %v4660_v20 = vpop.eup %4659  ;;  %v2607_v63 = vmul.f32 1.442695, %v2275_v36  ;;  %v2609_v8 = vmul.f32 1.442695, %v2276_v26  ;;  %v6227_v50 = vpack.c.b16 %v3354_v3, %v3352_v31  ;;  %v6229_v13 = vpack.c.b16 %v3355_v35, %v3353_v61 }
 0x31c   : > { %7720 = vst [vmem:[#allocation20_spill] sm:$0xff] %v6219_v32  ;;  %v2611_v19 = vmul.f32 1.442695, %v2277_v14  ;;  %v4662_v41 = vpop.eup %4661  ;;  %v2613_v0 = vmul.f32 1.442695, %v2278_v1  ;;  %4342 = vmatmul.msk.bf16.gmra.mxu3 %vm642_vm3, %v7721_v48  ;;  %4350 = vmatmul.msk.bf16.gmra.mxu1 %vm642_vm3, %v7721_v48  ;;  %v6233_v56 = vpop.f32.mrf.mxu2  ;;  %v2968_v36 = vpack.c.bf16 %v4658_v22, %v4656_v44  ;;  %v3239_v26 = vunpack.c.l.b16 %v2987_v28 }
 0x31d   : > { %4665 = vpow2.f32 %v2607_v63  ;;  %4366 = vmatmul.msk.bf16.gmra.mxu0 %vm642_vm3, %v5550_v37  ;;  %7722 = vst [vmem:[#allocation76_spill] sm:$0xff] %v6233_v56  ;;  %v2988_v53 = vpack.c.bf16 %v4662_v41, %v4660_v20  ;;  %v2545_v5 = vmul.f32 1.442695, %v2244_v51  ;;  %v3240_v61 = vunpack.c.h.b16 %v2987_v28 }
 0x31e   : > { %1975 = vmax.xlane.f32.xlu2 %v1974_v47  ;;  %4667 = vpow2.f32 %v2609_v8  ;;  %v2025_v57 = vmax.f32 %v5934_v18, %v6219_v32  ;;  %v2967_v38 = vpack.c.bf16 %v4654_v10, %v6012_v30  ;;  %v3120_v63 = vunpack.c.l.b16 %v2968_v36 }
 0x31f   : > { %4669 = vpow2.f32 %v2611_v19  ;;  %v6235_v14 = vpop.f32.mrf.mxu3  ;;  %v3241_v31 = vunpack.c.l.b16 %v2988_v53  ;;  %v3242_v1 = vunpack.c.h.b16 %v2988_v53  ;;  %v3121_v8 = vunpack.c.h.b16 %v2968_v36 }
 0x320   : > { %7723 = vst [vmem:[#allocation22_spill] sm:$0xff] %v6235_v14  ;;  %4671 = vpow2.f32 %v2613_v0  ;;  %v1886_v3 = vpop.xlane.xlu1 %1885  ;;  %3188 = vmatpush.bf16.xpose.msra.mxu2 %v3152_v42  ;;  %3201 = vmatpush.bf16.xpose.msrb.mxu0 %v3153_v6  ;;  %v1977_v37 = vmax.f32 %v6235_v14, %v6216_v40  ;;  %v4664_v28 = vpop.eup %4663  ;;  %v3118_v41 = vunpack.c.l.b16 %v2967_v38  ;;  %v3119_v0 = vunpack.c.h.b16 %v2967_v38  ;;  %v7729_v42 = vld [vmem:[#allocation6_spill] sm:$0xff]  ;;  %v7730_v6 = vld [vmem:[#allocation13_spill] sm:$0xff] }
 0x321   : > { %v2245_v45 = vsub.f32 %v5864_v52, %v1886_v3  ;;  %v2246_v44 = vsub.f32 %v7724_v58, %v1886_v3  ;;  %v6246_v51 = vpack.c.b16 %v3241_v31, %v3239_v26  ;;  %v6248_v35 = vpack.c.b16 %v3242_v1, %v3240_v61 }
 0x322   : > { %v6244_v22 = vpop.f32.mrf.mxu1  ;;  %4673 = vpow2.f32 %v2545_v5  ;;  %1978 = vmax.xlane.f32.xlu0 %v1977_v37  ;;  %v6256_v53 = vpack.c.bf16 %v7730_v6, %v7729_v42  ;;  %v3150_v31 = vpack.c.b16 %v3120_v63, %v3118_v41  ;;  %v3151_v61 = vpack.c.b16 %v3121_v8, %v3119_v0  ;;  %v7735_v0 = vld [vmem:[#allocation49_spill] sm:$0xff] }
 0x323   : > { %7725 = vst [vmem:[#allocation23_spill] sm:$0xff] %v6244_v22  ;;  %v6250_v20 = vpop.f32.mrf.mxu0  ;;  %v4666_v19 = vpop.eup %4665  ;;  %v2547_v47 = vmul.f32 1.442695, %v2245_v45  ;;  %v2549_v30 = vmul.f32 1.442695, %v2246_v44 }
 0x324   : > { %7726 = vst [vmem:[#allocation43_spill] sm:$0xff] %v6246_v51  ;;  %v2028_v52 = vmax.f32 %v5952_v15, %v6250_v20  ;;  %v4668_v10 = vpop.eup %4667  ;;  %v6258_v5 = vpop.f32.mrf.mxu2  ;;  %v3096_v44 = vunpack.c.l.b16 %v6256_v53  ;;  %v7756_v15 = vld [vmem:[#allocation85_spill] sm:$0xff] }
 0x325   : > { %7727 = vst [vmem:[#allocation77_spill] sm:$0xff] %v6248_v35  ;;  %v4670_v48 = vpop.eup %4669  ;;  %4675 = vpow2.f32 %v2547_v47  ;;  %v3005_v36 = vpack.c.bf16 %v4668_v10, %v4666_v19 }
 0x326   : > { %7728 = vst [vmem:[#allocation47_spill] sm:$0xff] %v6250_v20  ;;  %2029 = vmax.xlane.f32.xlu1 %v2028_v52  ;;  %2026 = vmax.xlane.f32.xlu2 %v2025_v57  ;;  %v4672_v26 = vpop.eup %4671  ;;  %4677 = vpow2.f32 %v2549_v30  ;;  %v3098_v6 = vpack.c.b16 %v3096_v44, %v3096_v44 }
 0x327   : > { %7731 = vst [vmem:[#allocation79_spill] sm:$0xff] %v6258_v5  ;;  %v6260_v1 = vpop.f32.mrf.mxu3  ;;  %v3006_v3 = vpack.c.bf16 %v4672_v26, %v4670_v48  ;;  %v3356_v45 = vunpack.c.l.b16 %v3005_v36  ;;  %v3357_v58 = vunpack.c.h.b16 %v3005_v36  ;;  %v7751_v5 = vld [vmem:[#allocation87_spill] sm:$0xff] }
 0x328   : > { %7732 = vst [vmem:[#allocation39_spill] sm:$0xff] %v6260_v1  ;;  %v4674_v37 = vpop.eup %4673  ;;  %v6262_v38 = vpop.xlane.xlu1 %1936  ;;  %3189 = vmatpush.bf16.xpose.msra.mxu2 %v3150_v31  ;;  %3202 = vmatpush.bf16.xpose.msrb.mxu0 %v3151_v61  ;;  %v1980_v8 = vmax.f32 %v6260_v1, %v6244_v22  ;;  %v7784_v1 = vld [vmem:[#allocation78_spill] sm:$0xff] }
 0x329   : > { %v3358_v19 = vunpack.c.l.b16 %v3006_v3  ;;  %v3359_v30 = vunpack.c.h.b16 %v3006_v3  ;;  %v2989_v52 = vpack.c.bf16 %v4674_v37, %v4664_v28 }
 0x32a   : > { %v6265_v57 = vpop.f32.mrf.mxu1 }
 0x32b   : > { %7733 = vst [vmem:[#allocation44_spill] sm:$0xff] %v6265_v57  ;;  %v6267_v47 = vpop.f32.mrf.mxu0  ;;  %v4676_v63 = vpop.eup %4675  ;;  %v6277_v48 = vpack.c.b16 %v3358_v19, %v3356_v45  ;;  %v6279_v42 = vpack.c.b16 %v3359_v30, %v3357_v58  ;;  %v3243_v31 = vunpack.c.l.b16 %v2989_v52  ;;  %v3244_v3 = vunpack.c.h.b16 %v2989_v52 }
 0x32c   : > { %7734 = vst [vmem:[#allocation82_spill] sm:$0xff] %v6267_v47  ;;  %v4678_v10 = vpop.eup %4677  ;;  %v2031_v41 = vmax.f32 %v5976_v33, %v6267_v47  ;;  %4343 = vmatmul.msk.bf16.gmra.mxu3 %vm642_vm3, %v7735_v0  ;;  %4351 = vmatmul.msk.bf16.gmra.mxu1 %vm642_vm3, %v7735_v0  ;;  %v6285_v26 = vpop.f32.mrf.mxu2  ;;  %v7757_v33 = vld [vmem:[#allocation54_spill] sm:$0xff] }
 0x32d   : > { %4367 = vmatmul.msk.bf16.gmra.mxu0 %vm642_vm3, %v5586_v12  ;;  %v2990_v28 = vpack.c.bf16 %v4678_v10, %v4676_v63  ;;  %7737 = vst [vmem:[#allocation13_spill] sm:$0xff] %v6285_v26  ;;  %v7740_v63 = vld [vmem:[#allocation108_spill] sm:$0xff] }
 0x32e   : > { %1981 = vmax.xlane.f32.xlu2 %v1980_v8  ;;  %2032 = vmax.xlane.f32.xlu1 %v2031_v41 }
 0x32f   : > { %3190 = vmatmul.bf16.vlgmr.msra.gmra.mxu2 %v3098_v6  ;;  %v6283_v36 = vpop.f32.mrf.mxu3  ;;  %v3245_v61 = vunpack.c.l.b16 %v2990_v28  ;;  %v3246_v37 = vunpack.c.h.b16 %v2990_v28 }
 0x330   : > { %7736 = vst [vmem:[#allocation6_spill] sm:$0xff] %v6283_v36  ;;  %v6287_v45 = vpop.xlane.xlu1 %1891  ;;  %v1983_v58 = vmax.f32 %v6283_v36, %v6265_v57  ;;  %v7760_v57 = vld [vmem:[#allocation93_spill] sm:$0xff] }
 0x331   : > { %v6293_v19 = vpack.c.b16 %v3245_v61, %v3243_v31  ;;  %v6295_v12 = vpack.c.b16 %v3246_v37, %v3244_v3  ;;  %v1940_v31 = vpop.xlane.xlu0 %1939  ;;  %v7745_v61 = vld [vmem:[#allocation51_spill] sm:$0xff]  ;;  %v1889_v3 = vpop.xlane.xlu2 %1888  ;;  %v7746_v37 = vld [vmem:[#allocation45_spill] sm:$0xff] }
 0x332   : > { %v6291_v44 = vpop.f32.mrf.mxu1  ;;  %1984 = vmax.xlane.f32.xlu0 %v1983_v58  ;;  %v7747_v58 = vld [vmem:[#allocation59_spill] sm:$0xff] }
 0x333   : > { %7738 = vst [vmem:[#allocation49_spill] sm:$0xff] %v6291_v44  ;;  %v6297_v30 = vpop.f32.mrf.mxu0 }
 0x334   : > { %7739 = vst [vmem:[#allocation111_spill] sm:$0xff] %v6297_v30  ;;  %v2034_v8 = vmax.f32 %v7740_v63, %v6297_v30  ;;  %v6309_v6 = vpop.f32.mrf.mxu2 }
 0x335   : > { %7743 = vst [vmem:[#allocation114_spill] sm:$0xff] %v6309_v6  ;;  %v2247_v6 = vsub.f32 %v7751_v5, %v1889_v3  ;;  %v2281_v5 = vsub.f32 %v7757_v33, %v1940_v31 }
 0x337   : > { %v6301_v10 = vpop.f32.mrf.mxu3  ;;  %v2619_v33 = vmul.f32 1.442695, %v2281_v5 }
 0x338   : > { %7741 = vst [vmem:[#allocation112_spill] sm:$0xff] %v6301_v10  ;;  %v6303_v52 = vpop.xlane.xlu1 %1942  ;;  %v1986_v41 = vmax.f32 %v6301_v10, %v6291_v44 }
 0x339   : > { %v6335_v63 = vpop.xlane.xlu0 %1945  ;;  %v1895_v20 = vpop.xlane.xlu2 %1894 }
 0x33a   : > { %v6307_v0 = vpop.f32.mrf.mxu1  ;;  %2035 = vmax.xlane.f32.xlu0 %v2034_v8  ;;  %1987 = vmax.xlane.f32.xlu2 %v1986_v41 }
 0x33b   : > { %7742 = vst [vmem:[#allocation113_spill] sm:$0xff] %v6307_v0  ;;  %v6311_v28 = vpop.f32.mrf.mxu0 }
 0x33c   : > { %7744 = vst [vmem:[#allocation115_spill] sm:$0xff] %v6311_v28  ;;  %4344 = vmatmul.msk.bf16.gmra.mxu3 %vm642_vm3, %v7745_v61  ;;  %4352 = vmatmul.msk.bf16.gmra.mxu1 %vm642_vm3, %v7745_v61  ;;  %v2037_v54 = vmax.f32 %v7747_v58, %v6311_v28  ;;  %v7752_v61 = vld [vmem:[#allocation27_spill] sm:$0xff]  ;;  %v6332_v18 = vpop.f32.mrf.mxu2  ;;  %v7755_v28 = vld [vmem:[#allocation52_spill] sm:$0xff]  ;;  %v2280_v58 = vsub.f32 %v7756_v15, %v6262_v38 }
 0x33d   : > { %4368 = vmatmul.msk.bf16.gmra.mxu0 %vm642_vm3, %v7746_v37  ;;  %7753 = vst [vmem:[#allocation87_spill] sm:$0xff] %v6332_v18  ;;  %v7754_v37 = vld [vmem:[#allocation84_spill] sm:$0xff]  ;;  %v2279_v47 = vsub.f32 %v7755_v28, %v6262_v38  ;;  %v2251_v28 = vsub.f32 %v7760_v57, %v1895_v20  ;;  %v2252_v15 = vsub.f32 %v7762_v46, %v1895_v20 }
 0x33e   : > { %v2248_v30 = vsub.f32 %v7754_v37, %v1889_v3  ;;  %v7765_v57 = vld [vmem:[#allocation92_spill] sm:$0xff] }
 0x33f   : > { %v6321_v26 = vpop.f32.mrf.mxu3  ;;  %v2615_v37 = vmul.f32 1.442695, %v2279_v47  ;;  %v2559_v46 = vmul.f32 1.442695, %v2251_v28  ;;  %v7772_v28 = vld [vmem:[#allocation70_spill] sm:$0xff] }
 0x340   : > { %7748 = vst [vmem:[#allocation51_spill] sm:$0xff] %v6321_v26  ;;  %v6323_v56 = vpop.xlane.xlu1 %1897  ;;  %v1989_v3 = vmax.f32 %v6321_v26, %v6307_v0 }
 0x342   : > { %v6325_v8 = vpop.f32.mrf.mxu1  ;;  %2038 = vmax.xlane.f32.xlu0 %v2037_v54  ;;  %v2551_v54 = vmul.f32 1.442695, %v2247_v6 }
 0x343   : > { %7749 = vst [vmem:[#allocation45_spill] sm:$0xff] %v6325_v8  ;;  %v6327_v41 = vpop.f32.mrf.mxu0 }
 0x344   : > { %7750 = vst [vmem:[#allocation116_spill] sm:$0xff] %v6327_v41  ;;  %v2040_v32 = vmax.f32 %v7752_v61, %v6327_v41  ;;  %v2553_v41 = vmul.f32 1.442695, %v2248_v30  ;;  %v7759_v61 = vld [vmem:[#allocation89_spill] sm:$0xff]  ;;  %4679 = vpow2.f32 %v2551_v54  ;;  %v7767_v54 = vld [vmem:[#allocation66_spill] sm:$0xff] }
 0x345   : > { %v2282_v18 = vsub.f32 %v7759_v61, %v1940_v31  ;;  %v7764_v30 = vld [vmem:[#allocation57_spill] sm:$0xff]  ;;  %v2284_v61 = vsub.f32 %v7765_v57, %v6303_v52  ;;  %v6363_v20 = vpop.xlane.xlu2 %1900  ;;  %v7771_v57 = vld [vmem:[#allocation63_spill] sm:$0xff] }
 0x346   : > { %2041 = vmax.xlane.f32.xlu2 %v2040_v32  ;;  %v2617_v32 = vmul.f32 1.442695, %v2280_v58  ;;  %v2283_v6 = vsub.f32 %v7764_v30, %v6303_v52  ;;  %4681 = vpow2.f32 %v2553_v41  ;;  %v7766_v58 = vld [vmem:[#allocation56_spill] sm:$0xff]  ;;  %v2561_v52 = vmul.f32 1.442695, %v2252_v15  ;;  %v7770_v41 = vld [vmem:[#allocation99_spill] sm:$0xff] }
 0x347   : > { %v6342_v44 = vpop.f32.mrf.mxu3  ;;  %v2621_v47 = vmul.f32 1.442695, %v2282_v18  ;;  %4683 = vpow2.f32 %v2615_v37  ;;  %v6368_v18 = vpop.f32.mrf.mxu2 }
 0x348   : > { %7758 = vst [vmem:[#allocation84_spill] sm:$0xff] %v6342_v44  ;;  %v1949_v10 = vpop.xlane.xlu1 %1948  ;;  %v1992_v31 = vmax.f32 %v6342_v44, %v6325_v8  ;;  %v1952_v0 = vpop.xlane.xlu0 %1951  ;;  %4685 = vpow2.f32 %v2617_v32  ;;  %v2623_v37 = vmul.f32 1.442695, %v2283_v6  ;;  %v7778_v44 = vld [vmem:[#allocation106_spill] sm:$0xff] }
 0x349   : > { %v2287_v5 = vsub.f32 %v7767_v54, %v1949_v10  ;;  %7769 = vst [vmem:[#allocation54_spill] sm:$0xff] %v6368_v18  ;;  %v2288_v30 = vsub.f32 %v7770_v41, %v1949_v10  ;;  %4687 = vpow2.f32 %v2619_v33  ;;  %v7775_v33 = vld [vmem:[#allocation103_spill] sm:$0xff] }
 0x34a   : > { %v6348_v36 = vpop.f32.mrf.mxu1  ;;  %1990 = vmax.xlane.f32.xlu0 %v1989_v3  ;;  %v7768_v3 = vld [vmem:[#allocation50_spill] sm:$0xff]  ;;  %4689 = vpow2.f32 %v2621_v47  ;;  %v2290_v6 = vsub.f32 %v7775_v33, %v1952_v0 }
 0x34b   : > { %7761 = vst [vmem:[#allocation52_spill] sm:$0xff] %v6348_v36  ;;  %v6351_v38 = vpop.f32.mrf.mxu0  ;;  %4691 = vpow2.f32 %v2559_v46  ;;  %v2631_v32 = vmul.f32 1.442695, %v2287_v5  ;;  %v2633_v41 = vmul.f32 1.442695, %v2288_v30 }
 0x34c   : > { %7763 = vst [vmem:[#allocation85_spill] sm:$0xff] %v6351_v38  ;;  %4345 = vmatmul.msk.bf16.gmra.mxu3 %vm642_vm3, %v7766_v58  ;;  %4353 = vmatmul.msk.bf16.gmra.mxu1 %vm642_vm3, %v7766_v58  ;;  %v2043_v26 = vmax.f32 %v7771_v57, %v6351_v38  ;;  %v2289_v58 = vsub.f32 %v7772_v28, %v1952_v0  ;;  %4693 = vpow2.f32 %v2561_v52  ;;  %v2637_v0 = vmul.f32 1.442695, %v2290_v6 }
 0x34d   : > { %4369 = vmatmul.msk.bf16.gmra.mxu0 %vm642_vm3, %v7768_v3  ;;  %v6378_v3 = vpop.eup %4679  ;;  %4695 = vpow2.f32 %v2623_v37 }
 0x34e   : > { %1993 = vmax.xlane.f32.xlu2 %v1992_v31  ;;  %v2625_v31 = vmul.f32 1.442695, %v2284_v61  ;;  %v6382_v10 = vpop.eup %4681  ;;  %v2635_v47 = vmul.f32 1.442695, %v2289_v58 }
 0x34f   : > { %v6374_v8 = vpop.f32.mrf.mxu3  ;;  %v6387_v28 = vpop.eup %4683 }
 0x350   : > { %7773 = vst [vmem:[#allocation89_spill] sm:$0xff] %v6374_v8  ;;  %v6376_v54 = vpop.xlane.xlu1 %1903  ;;  %v6391_v46 = vpop.eup %4685  ;;  %4697 = vpow2.f32 %v2625_v31 }
 0x351   : > { %v6393_v5 = vpop.eup %4687  ;;  %4699 = vpow2.f32 %v2631_v32  ;;  %v7781_v32 = vld [vmem:[#allocation105_spill] sm:$0xff] }
 0x352   : > { %v6380_v15 = vpop.f32.mrf.mxu1  ;;  %2044 = vmax.xlane.f32.xlu0 %v2043_v26  ;;  %v6395_v30 = vpop.eup %4689  ;;  %4701 = vpow2.f32 %v2633_v41  ;;  %v7777_v26 = vld [vmem:[#allocation109_spill] sm:$0xff] }
 0x353   : > { %7774 = vst [vmem:[#allocation93_spill] sm:$0xff] %v6380_v15  ;;  %v6385_v18 = vpop.f32.mrf.mxu0  ;;  %v6399_v58 = vpop.eup %4691  ;;  %4703 = vpow2.f32 %v2635_v47 }
 0x354   : > { %7776 = vst [vmem:[#allocation91_spill] sm:$0xff] %v6385_v18  ;;  %v2046_v61 = vmax.f32 %v6122_v16, %v6385_v18  ;;  %v6403_v18 = vpop.f32.mrf.mxu2  ;;  %v6405_v31 = vpop.eup %4693  ;;  %4705 = vpow2.f32 %v2637_v0  ;;  %v7789_v0 = vld [vmem:[#allocation65_spill] sm:$0xff] }
 0x355   : > { %v1907_v52 = vpop.xlane.xlu2 %1906  ;;  %7780 = vst [vmem:[#allocation92_spill] sm:$0xff] %v6403_v18 }
 0x356   : > { %2047 = vmax.xlane.f32.xlu2 %v2046_v61  ;;  %v2259_v33 = vsub.f32 %v7777_v26, %v1907_v52  ;;  %v2260_v37 = vsub.f32 %v7778_v44, %v1907_v52  ;;  %v2257_v61 = vsub.f32 %v7781_v32, %v6376_v54  ;;  %v1995_v26 = vmax.f32 %v6374_v8, %v6348_v36  ;;  %v6411_v44 = vpop.eup %4695  ;;  %v7782_v52 = vld [vmem:[#allocation75_spill] sm:$0xff] }
 0x357   : > { %v6401_v38 = vpop.f32.mrf.mxu3  ;;  %v6419_v32 = vpop.eup %4697 }
 0x358   : > { %7779 = vst [vmem:[#allocation57_spill] sm:$0xff] %v6401_v38  ;;  %v2575_v16 = vmul.f32 1.442695, %v2259_v33  ;;  %v2577_v57 = vmul.f32 1.442695, %v2260_v37  ;;  %v1955_v41 = vpop.xlane.xlu1 %1954  ;;  %v1958_v6 = vpop.xlane.xlu0 %1957  ;;  %v7787_v33 = vld [vmem:[#allocation102_spill] sm:$0xff]  ;;  %v1998_v36 = vmax.f32 %v6401_v38, %v6380_v15 }
 0x359   : > { %v2291_v47 = vsub.f32 %v7782_v52, %v1955_v41  ;;  %v2292_v22 = vsub.f32 %v7783_v55, %v1955_v41  ;;  %v2293_v18 = vsub.f32 %v7784_v1, %v1958_v6  ;;  %v2294_v29 = vsub.f32 %v7785_v24, %v1958_v6  ;;  %v6427_v52 = vpop.eup %4699  ;;  %v7794_v38 = vld [vmem:[#allocation95_spill] sm:$0xff] }
 0x35a   : > { %v6417_v27 = vpop.f32.mrf.mxu1  ;;  %v2258_v37 = vsub.f32 %v7787_v33, %v6376_v54  ;;  %1996 = vmax.xlane.f32.xlu0 %v1995_v26  ;;  %4707 = vpow2.f32 %v2575_v16  ;;  %v6429_v41 = vpop.eup %4701  ;;  %v7790_v26 = vld [vmem:[#allocation60_spill] sm:$0xff]  ;;  %v2571_v15 = vmul.f32 1.442695, %v2257_v61  ;;  %v2286_v25 = vsub.f32 %v7794_v38, %v6335_v63 }
 0x35b   : > { %7786 = vst [vmem:[#allocation56_spill] sm:$0xff] %v6417_v27  ;;  %v6425_v8 = vpop.f32.mrf.mxu0  ;;  %v2639_v55 = vmul.f32 1.442695, %v2291_v47  ;;  %v2641_v1 = vmul.f32 1.442695, %v2292_v22  ;;  %4709 = vpow2.f32 %v2577_v57  ;;  %v6435_v54 = vpop.eup %4703  ;;  %v2285_v33 = vsub.f32 %v7790_v26, %v6335_v63  ;;  %v7793_v47 = vld [vmem:[#allocation110_spill] sm:$0xff] }
 0x35c   : > { %7788 = vst [vmem:[#allocation66_spill] sm:$0xff] %v6425_v8  ;;  %v2643_v24 = vmul.f32 1.442695, %v2293_v18  ;;  %v2645_v6 = vmul.f32 1.442695, %v2294_v29  ;;  %4346 = vmatmul.msk.bf16.gmra.mxu3 %vm642_vm3, %v7789_v0  ;;  %4354 = vmatmul.msk.bf16.gmra.mxu1 %vm642_vm3, %v7789_v0  ;;  %v7791_v29 = vld [vmem:[#allocation101_spill] sm:$0xff]  ;;  %v2049_v38 = vmax.f32 %v6148_v21, %v6425_v8 }
 0x35d   : > { %4711 = vpow2.f32 %v2639_v55  ;;  %4370 = vmatmul.msk.bf16.gmra.mxu0 %vm642_vm3, %v7697_v17  ;;  %v1910_v16 = vpop.xlane.xlu2 %1909  ;;  %v2255_v22 = vsub.f32 %v7791_v29, %v6363_v20  ;;  %v7792_v18 = vld [vmem:[#allocation46_spill] sm:$0xff]  ;;  %v2573_v55 = vmul.f32 1.442695, %v2258_v37  ;;  %v6451_v17 = vpop.eup %4705  ;;  %v2629_v8 = vmul.f32 1.442695, %v2286_v25 }
 0x35e   : > { %1999 = vmax.xlane.f32.xlu2 %v1998_v36  ;;  %4713 = vpow2.f32 %v2641_v1  ;;  %v2261_v57 = vsub.f32 %v7792_v18, %v1910_v16  ;;  %v2262_v0 = vsub.f32 %v7793_v47, %v1910_v16  ;;  %v7795_v26 = vld [vmem:[#allocation98_spill] sm:$0xff]  ;;  %v2627_v16 = vmul.f32 1.442695, %v2285_v33  ;;  %v7797_v47 = vld [vmem:[#allocation97_spill] sm:$0xff] }
 0x35f   : > { %v2256_v61 = vsub.f32 %v7795_v26, %v6363_v20  ;;  %4715 = vpow2.f32 %v2643_v24  ;;  %v6449_v36 = vpop.f32.mrf.mxu3  ;;  %v2253_v63 = vsub.f32 %v7797_v47, %v6323_v56  ;;  %v7799_v24 = vld [vmem:[#allocation94_spill] sm:$0xff]  ;;  %v6465_v26 = vpop.f32.mrf.mxu2 }
 0x360   : > { %7796 = vst [vmem:[#allocation50_spill] sm:$0xff] %v6449_v36  ;;  %4717 = vpow2.f32 %v2645_v6  ;;  %v2579_v40 = vmul.f32 1.442695, %v2261_v57  ;;  %v2581_v29 = vmul.f32 1.442695, %v2262_v0  ;;  %v2001_v1 = vmax.f32 %v6449_v36, %v6417_v27  ;;  %v4708_v18 = vpop.eup %4707 }
 0x361   : > { %4719 = vpow2.f32 %v2571_v15  ;;  %v4710_v37 = vpop.eup %4709  ;;  %v2254_v6 = vsub.f32 %v7799_v24, %v6323_v56  ;;  %v2567_v57 = vmul.f32 1.442695, %v2255_v22  ;;  %7801 = vst [vmem:[#allocation103_spill] sm:$0xff] %v6465_v26  ;;  %v2569_v27 = vmul.f32 1.442695, %v2256_v61  ;;  %v7802_v56 = vld [vmem:[#allocation90_spill] sm:$0xff] }
 0x362   : > { %v6459_v20 = vpop.f32.mrf.mxu1  ;;  %4721 = vpow2.f32 %v2579_v40  ;;  %2002 = vmax.xlane.f32.xlu0 %v2001_v1  ;;  %v3097_v36 = vunpack.c.h.b16 %v6256_v53  ;;  %v2249_v40 = vsub.f32 %v7802_v56, %v6287_v45  ;;  %v2563_v22 = vmul.f32 1.442695, %v2253_v63  ;;  %v7803_v26 = vld [vmem:[#allocation42_spill] sm:$0xff] }
 0x363   : > { %7798 = vst [vmem:[#allocation99_spill] sm:$0xff] %v6459_v20  ;;  %v6463_v0 = vpop.f32.mrf.mxu0  ;;  %v4712_v33 = vpop.eup %4711  ;;  %4723 = vpow2.f32 %v2581_v29  ;;  %v2565_v29 = vmul.f32 1.442695, %v2254_v6 }
 0x364   : > { %7800 = vst [vmem:[#allocation70_spill] sm:$0xff] %v6463_v0  ;;  %v2052_v15 = vmax.f32 %v6180_v4, %v6463_v0  ;;  %v4714_v47 = vpop.eup %4713  ;;  %4725 = vpow2.f32 %v2573_v55  ;;  %v7804_v4 = vld [vmem:[#allocation64_spill] sm:$0xff]  ;;  %v3099_v63 = vpack.c.b16 %v3097_v36, %v3097_v36 }
 0x365   : > { %v4716_v21 = vpop.eup %4715  ;;  %4727 = vpow2.f32 %v2627_v16  ;;  %v3013_v1 = vpack.c.bf16 %v4714_v47, %v4712_v33  ;;  %v1961_v24 = vpop.xlane.xlu0 %1960  ;;  %v7805_v33 = vld [vmem:[#allocation88_spill] sm:$0xff] }
 0x366   : > { %2053 = vmax.xlane.f32.xlu1 %v2052_v15  ;;  %2050 = vmax.xlane.f32.xlu2 %v2049_v38  ;;  %v4718_v61 = vpop.eup %4717  ;;  %4729 = vpow2.f32 %v2567_v57  ;;  %v2295_v0 = vsub.f32 %v7803_v26, %v1961_v24  ;;  %v2296_v14 = vsub.f32 %v7804_v4, %v1961_v24  ;;  %v2250_v38 = vsub.f32 %v7805_v33, %v6287_v45 }
 0x367   : > { %v4720_v53 = vpop.eup %4719  ;;  %4731 = vpow2.f32 %v2569_v27  ;;  %v3014_v25 = vpack.c.bf16 %v4718_v61, %v4716_v21  ;;  %v6474_v55 = vpop.f32.mrf.mxu3  ;;  %v3372_v35 = vunpack.c.l.b16 %v3013_v1  ;;  %v3373_v56 = vunpack.c.h.b16 %v3013_v1 }
 0x368   : > { %v4722_v16 = vpop.eup %4721  ;;  %4733 = vpow2.f32 %v2629_v8  ;;  %v2997_v15 = vpack.c.bf16 %v4710_v37, %v4708_v18  ;;  %v2647_v57 = vmul.f32 1.442695, %v2295_v0  ;;  %v3011_v21 = vpack.c.bf16 %v6429_v41, %v6427_v52 }
 0x369   : > { %v4724_v6 = vpop.eup %4723  ;;  %v3374_v26 = vunpack.c.l.b16 %v3014_v25  ;;  %v3375_v4 = vunpack.c.h.b16 %v3014_v25  ;;  %v2555_v24 = vmul.f32 1.442695, %v2249_v40  ;;  %4735 = vpow2.f32 %v2563_v22  ;;  %v7808_v25 = vld [vmem:[#allocation12_spill] sm:$0xff]  ;;  %v6492_v40 = vpop.f32.mrf.mxu2 }
 0x36a   : > { %v6478_v47 = vpop.f32.mrf.mxu1  ;;  %v4726_v27 = vpop.eup %4725  ;;  %v2998_v1 = vpack.c.bf16 %v4724_v6, %v4722_v16  ;;  %v2649_v61 = vmul.f32 1.442695, %v2296_v14  ;;  %4737 = vpow2.f32 %v2565_v29  ;;  %v3012_v18 = vpack.c.bf16 %v6451_v17, %v6435_v54  ;;  %7809 = vst [vmem:[#allocation105_spill] sm:$0xff] %v6492_v40  ;;  %v7810_v16 = vld [vmem:[#allocation61_spill] sm:$0xff]  ;;  %v7811_v6 = vld [vmem:[#allocation40_spill] sm:$0xff] }
 0x36b   : > { %7806 = vst [vmem:[#allocation109_spill] sm:$0xff] %v6478_v47  ;;  %v6482_v36 = vpop.f32.mrf.mxu0  ;;  %v4728_v51 = vpop.eup %4727  ;;  %v3390_v45 = vpack.c.b16 %v3374_v26, %v3372_v35  ;;  %v3391_v8 = vpack.c.b16 %v3375_v4, %v3373_v56  ;;  %v2004_v0 = vmax.f32 %v6474_v55, %v6459_v20  ;;  %v3259_v14 = vunpack.c.l.b16 %v2997_v15 }
 0x36c   : > { %7807 = vst [vmem:[#allocation106_spill] sm:$0xff] %v6482_v36  ;;  %v4730_v37 = vpop.eup %4729  ;;  %4371 = vmatmul.msk.bf16.vlgmr.msra.gmra.mxu3 %vm642_vm3, %v7808_v25  ;;  %4379 = vmatmul.msk.bf16.vlgmr.msrb.gmra.mxu1 %vm642_vm3, %v7808_v25  ;;  %v3261_v52 = vunpack.c.l.b16 %v2998_v1  ;;  %v3262_v41 = vunpack.c.h.b16 %v2998_v1  ;;  %4739 = vpow2.f32 %v2647_v57  ;;  %v3260_v17 = vunpack.c.h.b16 %v2997_v15 }
 0x36d   : > { %v4732_v35 = vpop.eup %4731  ;;  %3408 = vmatpush.bf16.xpose.msra.mxu0 %v3390_v45  ;;  %3421 = vmatpush.bf16.xpose.msra.mxu1 %v3391_v8  ;;  %v1964_v54 = vpop.xlane.xlu2 %1963  ;;  %v3368_v22 = vunpack.c.l.b16 %v3011_v21  ;;  %v2996_v29 = vpack.c.bf16 %v4726_v27, %v4720_v53  ;;  %4741 = vpow2.f32 %v2649_v61  ;;  %v3370_v36 = vunpack.c.l.b16 %v3012_v18 }
 0x36e   : > { %v4734_v56 = vpop.eup %4733  ;;  %2005 = vmax.xlane.f32.xlu2 %v2004_v0  ;;  %3203 = vmatmul.bf16.vlgmr.msrb.gmra.mxu0 %v3099_v63  ;;  %v2297_v33 = vsub.f32 %v7810_v16, %v1964_v54  ;;  %v2298_v26 = vsub.f32 %v7811_v6, %v1964_v54  ;;  %v3277_v4 = vpack.c.b16 %v3261_v52, %v3259_v14  ;;  %v3369_v57 = vunpack.c.h.b16 %v3011_v21 }
 0x36f   : > { %v6496_v1 = vpop.f32.mrf.mxu3  ;;  %v3278_v25 = vpack.c.b16 %v3262_v41, %v3260_v17  ;;  %v3371_v45 = vunpack.c.h.b16 %v3012_v18  ;;  %v4736_v8 = vpop.eup %4735  ;;  %v2557_v47 = vmul.f32 1.442695, %v2250_v38  ;;  %v2995_v53 = vpack.c.bf16 %v4732_v35, %v4730_v37 }
 0x370   : > { %7812 = vst [vmem:[#allocation75_spill] sm:$0xff] %v6496_v1  ;;  %v2651_v15 = vmul.f32 1.442695, %v2297_v33  ;;  %v2653_v20 = vmul.f32 1.442695, %v2298_v26  ;;  %3295 = vmatpush.bf16.xpose.msrb.mxu2 %v3277_v4  ;;  %v4738_v27 = vpop.eup %4737  ;;  %4743 = vpow2.f32 %v2555_v24  ;;  %v3009_v61 = vpack.c.bf16 %v6419_v32, %v6411_v44 }
 0x371   : > { %3308 = vmatpush.bf16.xpose.msrb.mxu3 %v3278_v25  ;;  %v3257_v14 = vunpack.c.l.b16 %v2996_v29  ;;  %v3010_v21 = vpack.c.bf16 %v4734_v56, %v4728_v51  ;;  %v3388_v38 = vpack.c.b16 %v3370_v36, %v3368_v22  ;;  %v3389_v52 = vpack.c.b16 %v3371_v45, %v3369_v57 }
 0x372   : > { %v6498_v63 = vpop.f32.mrf.mxu1  ;;  %4745 = vpow2.f32 %v2651_v15  ;;  %v4740_v18 = vpop.eup %4739  ;;  %v3258_v41 = vunpack.c.h.b16 %v2996_v29  ;;  %v3255_v37 = vunpack.c.l.b16 %v2995_v53  ;;  %v6506_v24 = vpack.c.bf16 %v6391_v46, %v6387_v28 }
 0x373   : > { %7813 = vst [vmem:[#allocation107_spill] sm:$0xff] %v6498_v63  ;;  %v6502_v0 = vpop.f32.mrf.mxu0  ;;  %4747 = vpow2.f32 %v2653_v20  ;;  %v4742_v54 = vpop.eup %4741  ;;  %v6510_v44 = vpack.c.bf16 %v6395_v30, %v6393_v5  ;;  %v3256_v51 = vunpack.c.h.b16 %v2995_v53  ;;  %v3364_v35 = vunpack.c.l.b16 %v3009_v61 }
 0x374   : > { %7814 = vst [vmem:[#allocation78_spill] sm:$0xff] %v6502_v0  ;;  %4749 = vpow2.f32 %v2557_v47  ;;  %v2993_v20 = vpack.c.bf16 %v6405_v31, %v6399_v58  ;;  %v2994_v36 = vpack.c.bf16 %v4738_v27, %v4736_v8  ;;  %v3275_v22 = vpack.c.b16 %v3257_v14, %v3255_v37  ;;  %v6516_v46 = vpop.f32.mrf.mxu2 }
 0x375   : > { %3409 = vmatpush.bf16.xpose.msra.mxu0 %v3388_v38  ;;  %3422 = vmatpush.bf16.xpose.msra.mxu1 %v3389_v52  ;;  %v1967_v32 = vpop.xlane.xlu2 %1966  ;;  %v3365_v28 = vunpack.c.h.b16 %v3009_v61  ;;  %7815 = vst [vmem:[#allocation34_spill] sm:$0xff] %v6516_v46  ;;  %v3276_v30 = vpack.c.b16 %v3258_v41, %v3256_v51  ;;  %v3366_v56 = vunpack.c.l.b16 %v3010_v21  ;;  %v3367_v16 = vunpack.c.h.b16 %v3010_v21  ;;  %v7819_v21 = vld [vmem:[#allocation17_spill] sm:$0xff] }
 0x376   : > { %v2299_v47 = vsub.f32 %v6124_v49, %v1967_v32  ;;  %v2300_v17 = vsub.f32 %v6104_v59, %v1967_v32  ;;  %v4744_v29 = vpop.eup %4743  ;;  %v3015_v33 = vpack.c.bf16 %v4742_v54, %v4740_v18  ;;  %v3253_v59 = vunpack.c.l.b16 %v2994_v36 }
 0x377   : > { %v6518_v5 = vpop.f32.mrf.mxu3  ;;  %v3251_v57 = vunpack.c.l.b16 %v2993_v20  ;;  %v3360_v45 = vunpack.c.l.b16 %v6506_v24  ;;  %v3362_v8 = vunpack.c.l.b16 %v6510_v44  ;;  %v3386_v53 = vpack.c.b16 %v3366_v56, %v3364_v35 }
 0x378   : > { %7816 = vst [vmem:[#allocation102_spill] sm:$0xff] %v6518_v5  ;;  %v4746_v6 = vpop.eup %4745  ;;  %v2655_v26 = vmul.f32 1.442695, %v2299_v47  ;;  %3296 = vmatpush.bf16.xpose.msrb.mxu2 %v3275_v22  ;;  %v2657_v31 = vmul.f32 1.442695, %v2300_v17  ;;  %v3387_v27 = vpack.c.b16 %v3367_v16, %v3365_v28  ;;  %v3254_v61 = vunpack.c.h.b16 %v2994_v36 }
 0x379   : > { %v4748_v58 = vpop.eup %4747  ;;  %3309 = vmatpush.bf16.xpose.msrb.mxu3 %v3276_v30  ;;  %v3457_v14 = vunpack.c.l.b16 %v3015_v33  ;;  %v3458_v38 = vunpack.c.h.b16 %v3015_v33  ;;  %v3273_v54 = vpack.c.b16 %v3253_v59, %v3251_v57  ;;  %v3252_v37 = vunpack.c.h.b16 %v2993_v20 }
 0x37a   : > { %v6520_v49 = vpop.f32.mrf.mxu1  ;;  %v4750_v4 = vpop.eup %4749  ;;  %v3016_v15 = vpack.c.bf16 %v4748_v58, %v4746_v6  ;;  %4751 = vpow2.f32 %v2655_v26  ;;  %v3361_v28 = vunpack.c.h.b16 %v6506_v24  ;;  %v3363_v30 = vunpack.c.h.b16 %v6510_v44 }
 0x37b   : > { %7817 = vst [vmem:[#allocation65_spill] sm:$0xff] %v6520_v49  ;;  %v6522_v25 = vpop.f32.mrf.mxu0  ;;  %4753 = vpow2.f32 %v2657_v31  ;;  %v2992_v32 = vpack.c.bf16 %v4750_v4, %v4744_v29  ;;  %v3274_v22 = vpack.c.b16 %v3254_v61, %v3252_v37  ;;  %v3384_v44 = vpack.c.b16 %v3362_v8, %v3360_v45 }
 0x37c   : > { %7818 = vst [vmem:[#allocation60_spill] sm:$0xff] %v6522_v25  ;;  %4372 = vmatmul.msk.bf16.gmra.mxu3 %vm642_vm3, %v7819_v21  ;;  %4380 = vmatmul.msk.bf16.gmra.mxu1 %vm642_vm3, %v7819_v21  ;;  %v3459_v18 = vunpack.c.l.b16 %v3016_v15  ;;  %v3460_v52 = vunpack.c.h.b16 %v3016_v15  ;;  %v3385_v59 = vpack.c.b16 %v3363_v30, %v3361_v28 }
 0x37d   : > { %3410 = vmatpush.bf16.xpose.msra.mxu0 %v3386_v53  ;;  %3423 = vmatpush.bf16.xpose.msra.mxu1 %v3387_v27  ;;  %v1970_v41 = vpop.xlane.xlu1 %1969  ;;  %v3249_v26 = vunpack.c.l.b16 %v2992_v32  ;;  %v3250_v4 = vunpack.c.h.b16 %v2992_v32 }
 0x37e   : > { %v2301_v51 = vsub.f32 %v6156_v9, %v1970_v41  ;;  %v2302_v35 = vsub.f32 %v6136_v2, %v1970_v41  ;;  %v6532_v36 = vpack.c.b16 %v3459_v18, %v3457_v14  ;;  %v6534_v47 = vpack.c.b16 %v3460_v52, %v3458_v38  ;;  %v6544_v9 = vpop.f32.mrf.mxu2 }
 0x37f   : > { %v6536_v17 = vpop.f32.mrf.mxu3  ;;  %v2991_v2 = vpack.c.bf16 %v6382_v10, %v6378_v3  ;;  %7823 = vst [vmem:[#allocation95_spill] sm:$0xff] %v6544_v9 }
 0x380   : > { %7820 = vst [vmem:[#allocation101_spill] sm:$0xff] %v6532_v36  ;;  %v2659_v56 = vmul.f32 1.442695, %v2301_v51  ;;  %v2661_v16 = vmul.f32 1.442695, %v2302_v35  ;;  %v2061_v20 = vmax.f32 %v6536_v17, %v6520_v49  ;;  %3297 = vmatpush.bf16.xpose.msrb.mxu2 %v3273_v54  ;;  %v4752_v6 = vpop.eup %4751 }
 0x381   : > { %7821 = vst [vmem:[#allocation46_spill] sm:$0xff] %v6534_v47  ;;  %v2021_v29 = vpop.xlane.xlu0 %2020  ;;  %3310 = vmatpush.bf16.xpose.msrb.mxu3 %v3274_v22  ;;  %v4754_v58 = vpop.eup %4753  ;;  %v3247_v10 = vunpack.c.l.b16 %v2991_v2  ;;  %v3248_v57 = vunpack.c.h.b16 %v2991_v2 }
 0x382   : > { %7822 = vst [vmem:[#allocation110_spill] sm:$0xff] %v6536_v17  ;;  %v6546_v33 = vpop.f32.mrf.mxu1  ;;  %4755 = vpow2.f32 %v2659_v56  ;;  %2062 = vmax.xlane.f32.xlu2 %v2061_v20  ;;  %v2335_v31 = vsub.f32 %v5900_v34, %v2021_v29  ;;  %v2336_v3 = vsub.f32 %v6166_v11, %v2021_v29  ;;  %v3017_v45 = vpack.c.bf16 %v4754_v58, %v4752_v6 }
 0x383   : > { %7824 = vst [vmem:[#allocation98_spill] sm:$0xff] %v6546_v33  ;;  %v6548_v24 = vpop.f32.mrf.mxu0  ;;  %4757 = vpow2.f32 %v2661_v16  ;;  %v3271_v15 = vpack.c.b16 %v3249_v26, %v3247_v10  ;;  %v3272_v61 = vpack.c.b16 %v3250_v4, %v3248_v57 }
 0x384   : > { %7825 = vst [vmem:[#allocation97_spill] sm:$0xff] %v6548_v24  ;;  %v2727_v53 = vmul.f32 1.442695, %v2335_v31  ;;  %v2729_v14 = vmul.f32 1.442695, %v2336_v3  ;;  %v3461_v22 = vunpack.c.l.b16 %v3017_v45  ;;  %v3462_v28 = vunpack.c.h.b16 %v3017_v45 }
 0x385   : > { %3411 = vmatpush.bf16.xpose.msra.mxu0 %v3384_v44  ;;  %3424 = vmatpush.bf16.xpose.msra.mxu1 %v3385_v59 }
 0x386   : > { %v6562_v32 = vpop.f32.mrf.mxu2  ;;  %4759 = vpow2.f32 %v2727_v53 }
 0x387   : > { %v6552_v27 = vpop.f32.mrf.mxu3  ;;  %7828 = vst [vmem:[#allocation42_spill] sm:$0xff] %v6562_v32  ;;  %4761 = vpow2.f32 %v2729_v14  ;;  %v7835_v14 = vld [vmem:[#allocation77_spill] sm:$0xff] }
 0x388   : > { %7826 = vst [vmem:[#allocation94_spill] sm:$0xff] %v6552_v27  ;;  %v4756_v8 = vpop.eup %4755  ;;  %3298 = vmatpush.bf16.xpose.msrb.mxu2 %v3271_v15  ;;  %v7880_v27 = vld [vmem:[#allocation59_spill] sm:$0xff] }
 0x389   : > { %v2024_v21 = vpop.xlane.xlu2 %2023  ;;  %v4758_v18 = vpop.eup %4757  ;;  %3311 = vmatpush.bf16.xpose.msrb.mxu3 %v3272_v61  ;;  %v7834_v61 = vld [vmem:[#allocation43_spill] sm:$0xff] }
 0x38a   : > { %v1973_v34 = vpop.xlane.xlu0 %1972  ;;  %v2337_v38 = vsub.f32 %v5916_v60, %v2024_v21  ;;  %v2338_v11 = vsub.f32 %v6194_v62, %v2024_v21  ;;  %v6556_v52 = vpop.f32.mrf.mxu1  ;;  %v3018_v51 = vpack.c.bf16 %v4758_v18, %v4756_v8  ;;  %v7829_v60 = vld [vmem:[#allocation24_spill] sm:$0xff]  ;;  %v7836_v21 = vld [vmem:[#allocation22_spill] sm:$0xff] }
 0x38b   : > { %v2303_v41 = vsub.f32 %v6182_v39, %v1973_v34  ;;  %v2304_v54 = vsub.f32 %v6164_v23, %v1973_v34  ;;  %v6560_v37 = vpop.f32.mrf.mxu0 }
 0x38c   : > { %7827 = vst [vmem:[#allocation90_spill] sm:$0xff] %v6560_v37  ;;  %v2731_v35 = vmul.f32 1.442695, %v2337_v38  ;;  %v2733_v30 = vmul.f32 1.442695, %v2338_v11  ;;  %4373 = vmatmul.msk.bf16.gmra.mxu3 %vm642_vm3, %v7829_v60  ;;  %4381 = vmatmul.msk.bf16.gmra.mxu1 %vm642_vm3, %v7829_v60  ;;  %v3463_v39 = vunpack.c.l.b16 %v3018_v51  ;;  %v3464_v62 = vunpack.c.h.b16 %v3018_v51  ;;  %v4760_v44 = vpop.eup %4759 }
 0x38d   : > { %v2663_v23 = vmul.f32 1.442695, %v2303_v41  ;;  %3412 = vmatpush.bf16.xpose.msra.mxu0 %v6277_v48  ;;  %3425 = vmatpush.bf16.xpose.msra.mxu1 %v6279_v42  ;;  %v2665_v56 = vmul.f32 1.442695, %v2304_v54  ;;  %v4762_v58 = vpop.eup %4761 }
 0x38e   : > { %4763 = vpow2.f32 %v2731_v35  ;;  %v6570_v16 = vpack.c.b16 %v3463_v39, %v3461_v22  ;;  %v6572_v20 = vpack.c.b16 %v3464_v62, %v3462_v28  ;;  %v7838_v22 = vld [vmem:[#allocation73_spill] sm:$0xff]  ;;  %v7840_v62 = vld [vmem:[#allocation68_spill] sm:$0xff] }
 0x38f   : > { %v6574_v2 = vpop.f32.mrf.mxu3  ;;  %4765 = vpow2.f32 %v2733_v30  ;;  %v7839_v30 = vld [vmem:[#allocation32_spill] sm:$0xff] }
 0x390   : > { %7830 = vst [vmem:[#allocation64_spill] sm:$0xff] %v6570_v16  ;;  %v2067_v29 = vmax.f32 %v6574_v2, %v6556_v52  ;;  %3299 = vmatpush.bf16.xpose.msrb.mxu2 %v6293_v19  ;;  %4767 = vpow2.f32 %v2663_v23  ;;  %v6586_v19 = vpop.f32.mrf.mxu2  ;;  %v7841_v23 = vld [vmem:[#allocation38_spill] sm:$0xff] }
 0x391   : > { %7831 = vst [vmem:[#allocation88_spill] sm:$0xff] %v6572_v20  ;;  %v1976_v6 = vpop.xlane.xlu2 %1975  ;;  %3312 = vmatpush.bf16.xpose.msrb.mxu3 %v6295_v12  ;;  %4769 = vpow2.f32 %v2665_v56 }
 0x392   : > { %v2305_v48 = vsub.f32 %v6206_v7, %v1976_v6  ;;  %v2306_v42 = vsub.f32 %v6188_v43, %v1976_v6  ;;  %v6582_v26 = vpop.f32.mrf.mxu1  ;;  %2068 = vmax.xlane.f32.xlu1 %v2067_v29  ;;  %7833 = vst [vmem:[#allocation61_spill] sm:$0xff] %v6586_v19  ;;  %v3035_v7 = vpack.c.bf16 %v4762_v58, %v4760_v44 }
 0x393   : > { %v6584_v31 = vpop.f32.mrf.mxu0 }
 0x394   : > { %7832 = vst [vmem:[#allocation12_spill] sm:$0xff] %v6584_v31  ;;  %v2667_v59 = vmul.f32 1.442695, %v2305_v48  ;;  %v2669_v4 = vmul.f32 1.442695, %v2306_v42  ;;  %v4764_v3 = vpop.eup %4763  ;;  %v3579_v11 = vunpack.c.h.b16 %v3035_v7 }
 0x395   : > { %3413 = vmatpush.bf16.xpose.msra.mxu0 %v6227_v50  ;;  %3426 = vmatpush.bf16.xpose.msra.mxu1 %v6229_v13  ;;  %v4766_v12 = vpop.eup %4765  ;;  %v1979_v10 = vpop.xlane.xlu0 %1978  ;;  %v3578_v13 = vunpack.c.l.b16 %v3035_v7 }
 0x396   : > { %4771 = vpow2.f32 %v2667_v59  ;;  %v4768_v43 = vpop.eup %4767  ;;  %v3036_v15 = vpack.c.bf16 %v4766_v12, %v4764_v3  ;;  %v2307_v18 = vsub.f32 %v7836_v21, %v1979_v10  ;;  %v2308_v28 = vsub.f32 %v7838_v22, %v1979_v10  ;;  %v7843_v3 = vld [vmem:[#allocation74_spill] sm:$0xff]  ;;  %v7845_v10 = vld [vmem:[#allocation39_spill] sm:$0xff]  ;;  %v7847_v21 = vld [vmem:[#allocation8_spill] sm:$0xff] }
 0x397   : > { %4773 = vpow2.f32 %v2669_v4  ;;  %v6590_v57 = vpop.f32.mrf.mxu3  ;;  %v4770_v53 = vpop.eup %4769 }
 0x398   : > { %3300 = vmatpush.bf16.xpose.msrb.mxu2 %v7834_v61  ;;  %v2070_v8 = vmax.f32 %v6590_v57, %v6582_v26  ;;  %v3580_v38 = vunpack.c.l.b16 %v3036_v15  ;;  %v3581_v41 = vunpack.c.h.b16 %v3036_v15  ;;  %v3019_v51 = vpack.c.bf16 %v4770_v53, %v4768_v43  ;;  %v6614_v6 = vpop.f32.mrf.mxu2  ;;  %v7844_v43 = vld [vmem:[#allocation35_spill] sm:$0xff] }
 0x399   : > { %v6593_v45 = vpop.xlane.xlu2 %2026  ;;  %3313 = vmatpush.bf16.xpose.msrb.mxu3 %v7835_v14  ;;  %v2671_v29 = vmul.f32 1.442695, %v2307_v18  ;;  %7842 = vst [vmem:[#allocation17_spill] sm:$0xff] %v6614_v6  ;;  %v2673_v4 = vmul.f32 1.442695, %v2308_v28  ;;  %v7846_v53 = vld [vmem:[#allocation23_spill] sm:$0xff] }
 0x39a   : > { %v6598_v50 = vpop.f32.mrf.mxu1  ;;  %2071 = vmax.xlane.f32.xlu0 %v2070_v8  ;;  %v6608_v60 = vpack.c.b16 %v3580_v38, %v3578_v13  ;;  %v6610_v39 = vpack.c.b16 %v3581_v41, %v3579_v11  ;;  %v3465_v48 = vunpack.c.l.b16 %v3019_v51  ;;  %v3466_v58 = vunpack.c.h.b16 %v3019_v51  ;;  %v7848_v18 = vld [vmem:[#allocation16_spill] sm:$0xff]  ;;  %v7850_v51 = vld [vmem:[#allocation7_spill] sm:$0xff] }
 0x39b   : > { %v6601_v34 = vpop.f32.mrf.mxu0  ;;  %v6632_v38 = vpack.c.bf16 %v7848_v18, %v7847_v21  ;;  %4775 = vpow2.f32 %v2671_v29  ;;  %v7852_v28 = vld [vmem:[#allocation31_spill] sm:$0xff] }
 0x39c   : > { %7837 = vst [vmem:[#allocation40_spill] sm:$0xff] %v6601_v34  ;;  %v4772_v54 = vpop.eup %4771  ;;  %4374 = vmatmul.msk.bf16.gmra.mxu3 %vm642_vm3, %v7839_v30  ;;  %4382 = vmatmul.msk.bf16.gmra.mxu1 %vm642_vm3, %v7839_v30  ;;  %4777 = vpow2.f32 %v2673_v4  ;;  %v7853_v30 = vld [vmem:[#allocation67_spill] sm:$0xff]  ;;  %v7856_v4 = vld [vmem:[#allocation6_spill] sm:$0xff] }
 0x39d   : > { %v4774_v35 = vpop.eup %4773  ;;  %3414 = vmatpush.bf16.xpose.msra.mxu0 %v7840_v62  ;;  %3427 = vmatpush.bf16.xpose.msra.mxu1 %v7841_v23  ;;  %v3322_v23 = vunpack.c.l.b16 %v6632_v38  ;;  %v7861_v21 = vld [vmem:[#allocation103_spill] sm:$0xff] }
 0x39e   : > { %v3020_v56 = vpack.c.bf16 %v4774_v35, %v4772_v54  ;;  %v7851_v35 = vld [vmem:[#allocation15_spill] sm:$0xff] }
 0x39f   : > { %v6616_v44 = vpop.f32.mrf.mxu3  ;;  %v6638_v22 = vpack.c.bf16 %v7851_v35, %v7850_v51 }
 0x3a0   : > { %v3467_v42 = vunpack.c.l.b16 %v3020_v56  ;;  %v3468_v59 = vunpack.c.h.b16 %v3020_v56  ;;  %3301 = vmatpush.bf16.xpose.msrb.mxu2 %v7843_v3  ;;  %v2073_v12 = vmax.f32 %v6616_v44, %v6598_v50 }
 0x3a1   : > { %v1982_v7 = vpop.xlane.xlu2 %1981  ;;  %3314 = vmatpush.bf16.xpose.msrb.mxu3 %v7844_v43 }
 0x3a2   : > { %v2309_v15 = vsub.f32 %v7845_v10, %v1982_v7  ;;  %v2310_v61 = vsub.f32 %v7846_v53, %v1982_v7  ;;  %v6624_v8 = vpop.f32.mrf.mxu1  ;;  %v6626_v14 = vpack.c.b16 %v3467_v42, %v3465_v48  ;;  %v6628_v13 = vpack.c.b16 %v3468_v59, %v3466_v58  ;;  %2074 = vmax.xlane.f32.xlu0 %v2073_v12  ;;  %v7854_v48 = vld [vmem:[#allocation71_spill] sm:$0xff]  ;;  %v6648_v42 = vpop.f32.mrf.mxu2  ;;  %v7857_v7 = vld [vmem:[#allocation29_spill] sm:$0xff] }
 0x3a3   : > { %v6634_v11 = vpop.f32.mrf.mxu0  ;;  %7855 = vst [vmem:[#allocation43_spill] sm:$0xff] %v6648_v42  ;;  %v4776_v58 = vpop.eup %4775  ;;  %v3209_v59 = vunpack.c.l.b16 %v6638_v22  ;;  %v3324_v10 = vpack.c.b16 %v3322_v23, %v3322_v23 }
 0x3a4   : > { %7849 = vst [vmem:[#allocation24_spill] sm:$0xff] %v6634_v11  ;;  %v2675_v41 = vmul.f32 1.442695, %v2309_v15  ;;  %v2677_v54 = vmul.f32 1.442695, %v2310_v61  ;;  %v4778_v43 = vpop.eup %4777  ;;  %v7859_v15 = vld [vmem:[#allocation44_spill] sm:$0xff] }
 0x3a5   : > { %3415 = vmatpush.bf16.xpose.msra.mxu0 %v7852_v28  ;;  %3428 = vmatpush.bf16.xpose.msra.mxu1 %v7853_v30  ;;  %v1985_v62 = vpop.xlane.xlu0 %1984  ;;  %v3211_v51 = vpack.c.b16 %v3209_v59, %v3209_v59 }
 0x3a6   : > { %4779 = vpow2.f32 %v2675_v41  ;;  %v2311_v3 = vsub.f32 %v7856_v4, %v1985_v62  ;;  %v2312_v53 = vsub.f32 %v7859_v15, %v1985_v62  ;;  %v3021_v62 = vpack.c.bf16 %v4778_v43, %v4776_v58 }
 0x3a7   : > { %v6643_v56 = vpop.f32.mrf.mxu3  ;;  %4781 = vpow2.f32 %v2677_v54  ;;  %v7862_v54 = vld [vmem:[#allocation37_spill] sm:$0xff] }
 0x3a8   : > { %v2076_v29 = vmax.f32 %v6643_v56, %v6624_v8  ;;  %3302 = vmatpush.bf16.xpose.msrb.mxu2 %v7854_v48  ;;  %v2679_v35 = vmul.f32 1.442695, %v2311_v3  ;;  %v7863_v48 = vld [vmem:[#allocation112_spill] sm:$0xff]  ;;  %v3469_v17 = vunpack.c.l.b16 %v3021_v62 }
 0x3a9   : > { %3315 = vmatpush.bf16.xpose.msrb.mxu3 %v7857_v7  ;;  %v7864_v7 = vld [vmem:[#allocation49_spill] sm:$0xff] }
 0x3aa   : > { %v6653_v12 = vpop.f32.mrf.mxu1  ;;  %2077 = vmax.xlane.f32.xlu2 %v2076_v29  ;;  %v2681_v29 = vmul.f32 1.442695, %v2312_v53  ;;  %4783 = vpow2.f32 %v2679_v35 }
 0x3ab   : > { %7858 = vst [vmem:[#allocation77_spill] sm:$0xff] %v6653_v12  ;;  %v6656_v61 = vpop.f32.mrf.mxu0 }
 0x3ac   : > { %7860 = vst [vmem:[#allocation22_spill] sm:$0xff] %v6656_v61  ;;  %v2127_v18 = vmax.f32 %v7861_v21, %v6656_v61  ;;  %v4780_v41 = vpop.eup %4779  ;;  %3416 = vmatmul.bf16.vlgmr.msra.gmra.mxu0 %v3324_v10  ;;  %4375 = vmatmul.msk.bf16.gmra.mxu3 %vm642_vm3, %v7862_v54  ;;  %4785 = vpow2.f32 %v2681_v29 }
 0x3ad   : > { %4383 = vmatmul.msk.bf16.gmra.mxu1 %vm642_vm3, %v7862_v54  ;;  %v6664_v28 = vpop.xlane.xlu0 %2035  ;;  %v1988_v30 = vpop.xlane.xlu2 %1987 }
 0x3ae   : > { %2128 = vmax.xlane.f32.xlu1 %v2127_v18  ;;  %v4782_v23 = vpop.eup %4781  ;;  %v2313_v4 = vsub.f32 %v7863_v48, %v1988_v30  ;;  %v2314_v15 = vsub.f32 %v7864_v7, %v1988_v30 }
 0x3af   : > { %3303 = vmatmul.bf16.vlgmr.msrb.gmra.mxu2 %v3211_v51  ;;  %v6668_v10 = vpop.f32.mrf.mxu3  ;;  %v3022_v49 = vpack.c.bf16 %v4782_v23, %v4780_v41  ;;  %v3470_v51 = vunpack.c.h.b16 %v3021_v62 }
 0x3b0   : > { %7865 = vst [vmem:[#allocation73_spill] sm:$0xff] %v6668_v10  ;;  %v2683_v59 = vmul.f32 1.442695, %v2313_v4  ;;  %v2079_v3 = vmax.f32 %v6668_v10, %v6653_v12  ;;  %v2685_v18 = vmul.f32 1.442695, %v2314_v15  ;;  %v4784_v29 = vpop.eup %4783  ;;  %v7879_v12 = vld [vmem:[#allocation104_spill] sm:$0xff] }
 0x3b1   : > { %v3471_v58 = vunpack.c.l.b16 %v3022_v49  ;;  %v3472_v30 = vunpack.c.h.b16 %v3022_v49 }
 0x3b2   : > { %v6672_v54 = vpop.f32.mrf.mxu1  ;;  %v6676_v53 = vpop.f32.mrf.mxu2  ;;  %2080 = vmax.xlane.f32.xlu2 %v2079_v3  ;;  %4787 = vpow2.f32 %v2683_v59 }
 0x3b3   : > { %7866 = vst [vmem:[#allocation32_spill] sm:$0xff] %v6672_v54  ;;  %v6674_v43 = vpop.f32.mrf.mxu0  ;;  %v6680_v23 = vpack.c.b16 %v3471_v58, %v3469_v17  ;;  %v6682_v35 = vpack.c.b16 %v3472_v30, %v3470_v51  ;;  %4789 = vpow2.f32 %v2685_v18  ;;  %v4786_v7 = vpop.eup %4785  ;;  %v7871_v30 = vld [vmem:[#allocation41_spill] sm:$0xff] }
 0x3b4   : > { %7867 = vst [vmem:[#allocation68_spill] sm:$0xff] %v6674_v43  ;;  %v2130_v41 = vmax.f32 %v6492_v40, %v6674_v43  ;;  %v3023_v51 = vpack.c.bf16 %v4786_v7, %v4784_v29  ;;  %v6710_v7 = vpop.xlane.xlu1 %2029 }
 0x3b5   : > { %v6684_v48 = vpop.xlane.xlu0 %2038 }
 0x3b6   : > { %2131 = vmax.xlane.f32.xlu0 %v2130_v41  ;;  %v3473_v25 = vunpack.c.l.b16 %v3023_v51 }
 0x3b7   : > { %v6686_v4 = vpop.f32.mrf.mxu3 }
 0x3b8   : > { %7868 = vst [vmem:[#allocation38_spill] sm:$0xff] %v6686_v4  ;;  %v2082_v62 = vmax.f32 %v6686_v4, %v6672_v54  ;;  %v4788_v17 = vpop.eup %4787  ;;  %v7882_v54 = vld [vmem:[#allocation27_spill] sm:$0xff] }
 0x3b9   : > { %v6690_v49 = vpop.xlane.xlu2 %2041  ;;  %v4790_v18 = vpop.eup %4789 }
 0x3ba   : > { %v6692_v15 = vpop.f32.mrf.mxu1  ;;  %v3193_v59 = vpop.f32.mrf.mxu2  ;;  %2083 = vmax.xlane.f32.xlu1 %v2082_v62  ;;  %v3024_v41 = vpack.c.bf16 %v4790_v18, %v4788_v17  ;;  %v3474_v62 = vunpack.c.h.b16 %v3023_v51  ;;  %v2349_v10 = vsub.f32 %v7882_v54, %v6690_v49  ;;  %v3210_v54 = vunpack.c.h.b16 %v6638_v22 }
 0x3bb   : > { %7869 = vst [vmem:[#allocation74_spill] sm:$0xff] %v6692_v15  ;;  %v6694_v3 = vpop.f32.mrf.mxu0 }
 0x3bc   : > { %7870 = vst [vmem:[#allocation35_spill] sm:$0xff] %v6694_v3  ;;  %v2133_v58 = vmax.f32 %v6516_v46, %v6694_v3  ;;  %4376 = vmatmul.msk.bf16.gmra.mxu3 %vm642_vm3, %v7871_v30  ;;  %v3475_v59 = vunpack.c.l.b16 %v3024_v41  ;;  %v3476_v31 = vunpack.c.h.b16 %v3024_v41 }
 0x3bd   : > { %4384 = vmatmul.msk.bf16.gmra.mxu1 %vm642_vm3, %v7871_v30  ;;  %v6702_v24 = vpop.xlane.xlu0 %1990 }
 0x3be   : > { %2134 = vmax.xlane.f32.xlu0 %v2133_v58  ;;  %v6714_v18 = vpack.c.b16 %v3475_v59, %v3473_v25  ;;  %v6716_v58 = vpack.c.b16 %v3476_v31, %v3474_v62  ;;  %v6734_v59 = vpop.xlane.xlu1 %2032  ;;  %v7878_v62 = vld [vmem:[#allocation48_spill] sm:$0xff] }
 0x3bf   : > { %v6704_v0 = vpop.f32.mrf.mxu3  ;;  %v2343_v34 = vsub.f32 %v7879_v12, %v6734_v59 }
 0x3c0   : > { %7872 = vst [vmem:[#allocation39_spill] sm:$0xff] %v6704_v0  ;;  %v2085_v11 = vmax.f32 %v6704_v0, %v6692_v15  ;;  %v7884_v15 = vld [vmem:[#allocation63_spill] sm:$0xff]  ;;  %v7886_v0 = vld [vmem:[#allocation62_spill] sm:$0xff] }
 0x3c1   : > { %v6708_v29 = vpop.xlane.xlu2 %1993 }
 0x3c2   : > { %v6712_v17 = vpop.f32.mrf.mxu1  ;;  %2086 = vmax.xlane.f32.xlu1 %v2085_v11 }
 0x3c3   : > { %7873 = vst [vmem:[#allocation23_spill] sm:$0xff] %v6712_v17  ;;  %v6718_v30 = vpop.f32.mrf.mxu0 }
 0x3c4   : > { %7874 = vst [vmem:[#allocation8_spill] sm:$0xff] %v6718_v30  ;;  %v2136_v51 = vmax.f32 %v6544_v9, %v6718_v30  ;;  %v7890_v9 = vld [vmem:[#allocation70_spill] sm:$0xff] }
 0x3c5   : > { %v6722_v41 = vpop.xlane.xlu0 %2044 }
 0x3c6   : > { %2137 = vmax.xlane.f32.xlu2 %v2136_v51 }
 0x3c7   : > { %v6724_v37 = vpop.f32.mrf.mxu3 }
 0x3c8   : > { %7875 = vst [vmem:[#allocation16_spill] sm:$0xff] %v6724_v37  ;;  %v2088_v63 = vmax.f32 %v6724_v37, %v6712_v17  ;;  %v2351_v17 = vsub.f32 %v7884_v15, %v6722_v41  ;;  %v2755_v37 = vmul.f32 1.442695, %v2349_v10 }
 0x3c9   : > { %v6726_v5 = vpop.xlane.xlu2 %2047 }
 0x3ca   : > { %v6730_v25 = vpop.f32.mrf.mxu1  ;;  %2089 = vmax.xlane.f32.xlu0 %v2088_v63  ;;  %v2347_v63 = vsub.f32 %v7880_v27, %v6684_v48 }
 0x3cb   : > { %7876 = vst [vmem:[#allocation7_spill] sm:$0xff] %v6730_v25  ;;  %v6732_v31 = vpop.f32.mrf.mxu0 }
 0x3cc   : > { %7877 = vst [vmem:[#allocation15_spill] sm:$0xff] %v6732_v31  ;;  %v2139_v11 = vmax.f32 %v6562_v32, %v6732_v31  ;;  %4377 = vmatmul.msk.bf16.gmra.mxu3 %vm642_vm3, %v7878_v62  ;;  %v2751_v27 = vmul.f32 1.442695, %v2347_v63  ;;  %v2353_v31 = vsub.f32 %v7886_v0, %v6726_v5 }
 0x3cd   : > { %4385 = vmatmul.msk.bf16.gmra.mxu1 %vm642_vm3, %v7878_v62  ;;  %v6742_v51 = vpop.xlane.xlu0 %1996 }
 0x3ce   : > { %2140 = vmax.xlane.f32.xlu2 %v2139_v11  ;;  %v2743_v11 = vmul.f32 1.442695, %v2343_v34  ;;  %v3323_v34 = vunpack.c.h.b16 %v6632_v38  ;;  %v2763_v63 = vmul.f32 1.442695, %v2353_v31 }
 0x3cf   : > { %v6748_v33 = vpop.f32.mrf.mxu3 }
 0x3d0   : > { %7881 = vst [vmem:[#allocation31_spill] sm:$0xff] %v6748_v33  ;;  %v2091_v4 = vmax.f32 %v6748_v33, %v6730_v25  ;;  %4791 = vpow2.f32 %v2743_v11  ;;  %v2759_v25 = vmul.f32 1.442695, %v2351_v17  ;;  %v7889_v17 = vld [vmem:[#allocation69_spill] sm:$0xff] }
 0x3d1   : > { %v6754_v1 = vpop.xlane.xlu2 %1999  ;;  %4793 = vpow2.f32 %v2751_v27  ;;  %v7892_v27 = vld [vmem:[#allocation66_spill] sm:$0xff] }
 0x3d2   : > { %v6756_v62 = vpop.f32.mrf.mxu1  ;;  %2092 = vmax.xlane.f32.xlu1 %v2091_v4  ;;  %4795 = vpow2.f32 %v2755_v37  ;;  %v7888_v4 = vld [vmem:[#allocation91_spill] sm:$0xff]  ;;  %v6780_v37 = vpack.c.b16 %v3210_v54, %v3210_v54 }
 0x3d3   : > { %7883 = vst [vmem:[#allocation67_spill] sm:$0xff] %v6756_v62  ;;  %v6760_v12 = vpop.f32.mrf.mxu0  ;;  %v2354_v10 = vsub.f32 %v7888_v4, %v6726_v5  ;;  %4797 = vpow2.f32 %v2759_v25  ;;  %v7894_v5 = vld [vmem:[#allocation50_spill] sm:$0xff] }
 0x3d4   : > { %7885 = vst [vmem:[#allocation71_spill] sm:$0xff] %v6760_v12  ;;  %v2142_v33 = vmax.f32 %v6586_v19, %v6760_v12  ;;  %v7891_v19 = vld [vmem:[#allocation72_spill] sm:$0xff]  ;;  %4799 = vpow2.f32 %v2763_v63 }
 0x3d5   : > { %v2003_v32 = vpop.xlane.xlu0 %2002 }
 0x3d6   : > { %v2323_v31 = vsub.f32 %v7894_v5, %v2003_v32 }
 0x3d7   : > { %v6768_v15 = vpop.f32.mrf.mxu3 }
 0x3d8   : > { %7887 = vst [vmem:[#allocation6_spill] sm:$0xff] %v6768_v15  ;;  %v2094_v22 = vmax.f32 %v6768_v15, %v6756_v62  ;;  %v7896_v62 = vld [vmem:[#allocation56_spill] sm:$0xff]  ;;  %v2703_v63 = vmul.f32 1.442695, %v2323_v31 }
 0x3d9   : > { %v2054_v30 = vpop.xlane.xlu1 %2053  ;;  %v2051_v0 = vpop.xlane.xlu2 %2050  ;;  %v2324_v15 = vsub.f32 %v7896_v62, %v2003_v32  ;;  %v7900_v62 = vld [vmem:[#allocation116_spill] sm:$0xff] }
 0x3da   : > { %v2357_v11 = vsub.f32 %v7889_v17, %v2054_v30  ;;  %v2358_v12 = vsub.f32 %v7890_v9, %v2054_v30  ;;  %v2355_v38 = vsub.f32 %v7891_v19, %v2051_v0  ;;  %v2356_v3 = vsub.f32 %v7892_v27, %v2051_v0  ;;  %v6778_v46 = vpop.f32.mrf.mxu1  ;;  %2095 = vmax.xlane.f32.xlu0 %v2094_v22  ;;  %v6786_v30 = vpop.eup %4791  ;;  %v7897_v0 = vld [vmem:[#allocation85_spill] sm:$0xff] }
 0x3db   : > { %7893 = vst [vmem:[#allocation29_spill] sm:$0xff] %v6778_v46  ;;  %v6783_v4 = vpop.f32.mrf.mxu0  ;;  %2143 = vmax.xlane.f32.xlu1 %v2142_v33  ;;  %v6788_v19 = vpack.c.b16 %v3323_v34, %v3323_v34  ;;  %v2352_v54 = vsub.f32 %v7897_v0, %v6722_v41  ;;  %v7898_v27 = vld [vmem:[#allocation53_spill] sm:$0xff]  ;;  %v6794_v5 = vpop.eup %4793  ;;  %v7899_v33 = vld [vmem:[#allocation100_spill] sm:$0xff]  ;;  %v2765_v22 = vmul.f32 1.442695, %v2354_v10 }
 0x3dc   : > { %7895 = vst [vmem:[#allocation44_spill] sm:$0xff] %v6783_v4  ;;  %v2771_v17 = vmul.f32 1.442695, %v2357_v11  ;;  %v2773_v47 = vmul.f32 1.442695, %v2358_v12  ;;  %4378 = vmatmul.msk.bf16.gmra.mxu3 %vm642_vm3, %v7898_v27  ;;  %v2350_v12 = vsub.f32 %v7900_v62, %v6690_v49  ;;  %v6802_v34 = vpop.eup %4795  ;;  %v2145_v11 = vmax.f32 %v6614_v6, %v6783_v4  ;;  %v7903_v49 = vld [vmem:[#allocation108_spill] sm:$0xff] }
 0x3dd   : > { %v2767_v9 = vmul.f32 1.442695, %v2355_v38  ;;  %v2769_v25 = vmul.f32 1.442695, %v2356_v3  ;;  %4386 = vmatmul.msk.bf16.gmra.mxu1 %vm642_vm3, %v7898_v27  ;;  %v7901_v3 = vld [vmem:[#allocation47_spill] sm:$0xff]  ;;  %v7902_v38 = vld [vmem:[#allocation82_spill] sm:$0xff]  ;;  %v2345_v10 = vsub.f32 %v7903_v49, %v6664_v28  ;;  %v6814_v27 = vpop.eup %4797 }
 0x3de   : > { %4801 = vpow2.f32 %v2771_v17  ;;  %v2705_v17 = vmul.f32 1.442695, %v2324_v15  ;;  %v2761_v32 = vmul.f32 1.442695, %v2352_v54  ;;  %v7905_v41 = vld [vmem:[#allocation57_spill] sm:$0xff]  ;;  %v4800_v43 = vpop.eup %4799  ;;  %v7908_v54 = vld [vmem:[#allocation52_spill] sm:$0xff] }
 0x3df   : > { %4803 = vpow2.f32 %v2773_v47  ;;  %v6812_v62 = vpop.f32.mrf.mxu3  ;;  %v2321_v31 = vsub.f32 %v7905_v41, %v6754_v1  ;;  %v2757_v4 = vmul.f32 1.442695, %v2350_v12  ;;  %v7906_v0 = vld [vmem:[#allocation89_spill] sm:$0xff]  ;;  %v2320_v40 = vsub.f32 %v7908_v54, %v6742_v51  ;;  %v7909_v41 = vld [vmem:[#allocation99_spill] sm:$0xff] }
 0x3e0   : > { %4805 = vpow2.f32 %v2767_v9  ;;  %7904 = vst [vmem:[#allocation37_spill] sm:$0xff] %v6812_v62  ;;  %v2097_v47 = vmax.f32 %v6812_v62, %v6778_v46  ;;  %v2319_v6 = vsub.f32 %v7906_v0, %v6742_v51  ;;  %v7907_v15 = vld [vmem:[#allocation93_spill] sm:$0xff]  ;;  %v7911_v0 = vld [vmem:[#allocation111_spill] sm:$0xff] }
 0x3e1   : > { %4807 = vpow2.f32 %v2769_v25  ;;  %v2322_v9 = vsub.f32 %v7907_v15, %v6754_v1  ;;  %v2006_v49 = vpop.xlane.xlu2 %2005  ;;  %v2346_v1 = vsub.f32 %v7911_v0, %v6664_v28  ;;  %v2747_v15 = vmul.f32 1.442695, %v2345_v10  ;;  %v7912_v62 = vld [vmem:[#allocation115_spill] sm:$0xff] }
 0x3e2   : > { %4809 = vpow2.f32 %v2765_v22  ;;  %v6824_v36 = vpop.f32.mrf.mxu1  ;;  %v2325_v25 = vsub.f32 %v6474_v55, %v2006_v49  ;;  %v2326_v46 = vsub.f32 %v7909_v41, %v2006_v49  ;;  %2098 = vmax.xlane.f32.xlu0 %v2097_v47  ;;  %v2348_v20 = vsub.f32 %v7912_v62, %v6684_v48  ;;  %v7913_v49 = vld [vmem:[#allocation84_spill] sm:$0xff] }
 0x3e3   : > { %4811 = vpow2.f32 %v2703_v63  ;;  %v6830_v12 = vpop.f32.mrf.mxu0  ;;  %2146 = vmax.xlane.f32.xlu1 %v2145_v11  ;;  %v2699_v51 = vmul.f32 1.442695, %v2321_v31  ;;  %v2317_v47 = vsub.f32 %v7913_v49, %v6708_v29  ;;  %v2701_v11 = vmul.f32 1.442695, %v2322_v9 }
 0x3e4   : > { %7910 = vst [vmem:[#allocation112_spill] sm:$0xff] %v6830_v12  ;;  %v4802_v22 = vpop.eup %4801  ;;  %4813 = vpow2.f32 %v2705_v17  ;;  %v2707_v63 = vmul.f32 1.442695, %v2325_v25  ;;  %v2709_v55 = vmul.f32 1.442695, %v2326_v46  ;;  %v2148_v48 = vmax.f32 %v6648_v42, %v6830_v12 }
 0x3e5   : > { %v4804_v16 = vpop.eup %4803  ;;  %4815 = vpow2.f32 %v2761_v32  ;;  %v2695_v21 = vmul.f32 1.442695, %v2319_v6  ;;  %v2697_v28 = vmul.f32 1.442695, %v2320_v40  ;;  %v2749_v31 = vmul.f32 1.442695, %v2346_v1 }
 0x3e6   : > { %v4806_v54 = vpop.eup %4805  ;;  %4817 = vpow2.f32 %v2757_v4  ;;  %v3046_v41 = vpack.c.bf16 %v4804_v16, %v4802_v22  ;;  %v2753_v25 = vmul.f32 1.442695, %v2348_v20  ;;  %v7914_v40 = vld [vmem:[#allocation45_spill] sm:$0xff] }
 0x3e7   : > { %v4808_v61 = vpop.eup %4807  ;;  %4819 = vpow2.f32 %v2707_v63  ;;  %v6840_v32 = vpop.f32.mrf.mxu3  ;;  %v2318_v9 = vsub.f32 %v7914_v40, %v6708_v29  ;;  %v7917_v1 = vld [vmem:[#allocation113_spill] sm:$0xff] }
 0x3e8   : > { %v4810_v10 = vpop.eup %4809  ;;  %v3045_v17 = vpack.c.bf16 %v4808_v61, %v4806_v54  ;;  %4821 = vpow2.f32 %v2709_v55  ;;  %v3600_v46 = vunpack.c.l.b16 %v3046_v41  ;;  %v3601_v62 = vunpack.c.h.b16 %v3046_v41  ;;  %v7916_v55 = vld [vmem:[#allocation51_spill] sm:$0xff] }
 0x3e9   : > { %v4812_v4 = vpop.eup %4811  ;;  %4823 = vpow2.f32 %v2699_v51  ;;  %v2100_v16 = vmax.f32 %v6840_v32, %v6824_v36  ;;  %v2315_v54 = vsub.f32 %v7916_v55, %v6702_v24  ;;  %v2316_v20 = vsub.f32 %v7917_v1, %v6702_v24 }
 0x3ea   : > { %v4814_v6 = vpop.eup %4813  ;;  %4825 = vpow2.f32 %v2701_v11  ;;  %v6846_v22 = vpop.f32.mrf.mxu1  ;;  %v3598_v61 = vunpack.c.l.b16 %v3045_v17  ;;  %v3599_v0 = vunpack.c.h.b16 %v3045_v17  ;;  %v2691_v51 = vmul.f32 1.442695, %v2317_v47  ;;  %2149 = vmax.xlane.f32.xlu0 %v2148_v48  ;;  %v7918_v17 = vld [vmem:[#allocation96_spill] sm:$0xff] }
 0x3eb   : > { %7915 = vst [vmem:[#allocation49_spill] sm:$0xff] %v6846_v22  ;;  %v4816_v63 = vpop.eup %4815  ;;  %4827 = vpow2.f32 %v2695_v21  ;;  %2101 = vmax.xlane.f32.xlu2 %v2100_v16  ;;  %v3204_v41 = vpop.f32.mrf.mxu0  ;;  %v3044_v40 = vpack.c.bf16 %v4810_v10, %v4800_v43  ;;  %v2339_v42 = vsub.f32 %v7918_v17, %v6593_v45  ;;  %v3029_v22 = vpack.c.bf16 %v4814_v6, %v4812_v4  ;;  %v7919_v21 = vld [vmem:[#allocation20_spill] sm:$0xff] }
 0x3ec   : > { %v4818_v49 = vpop.eup %4817  ;;  %4829 = vpow2.f32 %v2697_v28  ;;  %v3616_v29 = vpack.c.b16 %v3600_v46, %v3598_v61  ;;  %v3617_v11 = vpack.c.b16 %v3601_v62, %v3599_v0  ;;  %v6855_v55 = vadd.f32 %v3204_v41, %v6676_v53  ;;  %3316 = vmatmul.bf16.vlgmr.msrb.gmra.mxu3 %v6780_v37 }
 0x3ed   : > { %v4820_v12 = vpop.eup %4819  ;;  %4831 = vpow2.f32 %v2753_v25  ;;  %v2340_v47 = vsub.f32 %v7919_v21, %v6593_v45  ;;  %v2693_v28 = vmul.f32 1.442695, %v2318_v9  ;;  %v3043_v43 = vpack.c.bf16 %v4816_v63, %v6814_v27  ;;  %3429 = vmatmul.bf16.vlgmr.msra.gmra.mxu1 %v6788_v19 }
 0x3ee   : > { %v4822_v24 = vpop.eup %4821  ;;  %4833 = vpow2.f32 %v2747_v15  ;;  %3634 = vmatpush.bf16.xpose.msrb.mxu0 %v3616_v29  ;;  %3647 = vmatpush.bf16.xpose.msrb.mxu1 %v3617_v11  ;;  %v7920_v10 = vsub.f32 %v7902_v38, %v6734_v59  ;;  %v2687_v53 = vmul.f32 1.442695, %v2315_v54  ;;  %v2689_v4 = vmul.f32 1.442695, %v2316_v20 }
 0x3ef   : > { %v4824_v48 = vpop.eup %4823  ;;  %4835 = vpow2.f32 %v2749_v31  ;;  %v3030_v62 = vpack.c.bf16 %v4822_v24, %v4820_v12  ;;  %v6865_v45 = vpop.f32.mrf.mxu3  ;;  %v3596_v15 = vunpack.c.l.b16 %v3044_v40  ;;  %v3597_v25 = vunpack.c.h.b16 %v3044_v40 }
 0x3f0   : > { %v2745_v46 = vmul.f32 1.442695, %v7920_v10  ;;  %v4826_v37 = vpop.eup %4825  ;;  %4837 = vpow2.f32 %v2691_v51  ;;  %v3485_v6 = vunpack.c.l.b16 %v3029_v22  ;;  %v3486_v9 = vunpack.c.h.b16 %v3029_v22 }
 0x3f1   : > { %v4828_v16 = vpop.eup %4827  ;;  %v3487_v27 = vunpack.c.l.b16 %v3030_v62  ;;  %v3488_v61 = vunpack.c.h.b16 %v3030_v62  ;;  %v7921_v59 = vsub.f32 %v7899_v33, %v6710_v7  ;;  %4839 = vpow2.f32 %v2693_v28 }
 0x3f2   : > { %v4830_v0 = vpop.eup %4829  ;;  %v6870_v12 = vpop.f32.mrf.mxu1  ;;  %v3594_v19 = vunpack.c.l.b16 %v3043_v43  ;;  %v3595_v31 = vunpack.c.h.b16 %v3043_v43  ;;  %4841 = vpow2.f32 %v2687_v53  ;;  %v3028_v20 = vpack.c.bf16 %v4826_v37, %v4824_v48 }
 0x3f3   : > { %v2739_v38 = vmul.f32 1.442695, %v7921_v59  ;;  %7922 = vst [vmem:[#allocation41_spill] sm:$0xff] %v6870_v12  ;;  %v4832_v63 = vpop.eup %4831  ;;  %v3503_v54 = vpack.c.b16 %v3487_v27, %v3485_v6  ;;  %v3504_v1 = vpack.c.b16 %v3488_v61, %v3486_v9  ;;  %4843 = vpow2.f32 %v2689_v4  ;;  %v3206_v41 = vpop.f32.mrf.mxu0 }
 0x3f4   : > { %v4834_v51 = vpop.eup %4833  ;;  %v3614_v22 = vpack.c.b16 %v3596_v15, %v3594_v19  ;;  %v3615_v29 = vpack.c.b16 %v3597_v25, %v3595_v31  ;;  %v3042_v11 = vpack.c.bf16 %v4818_v49, %v6802_v34  ;;  %v7923_v33 = vsub.f32 %v7901_v3, %v6710_v7 }
 0x3f5   : > { %v4836_v40 = vpop.eup %4835  ;;  %4845 = vpow2.f32 %v2745_v46  ;;  %3521 = vmatpush.bf16.xpose.msra.mxu2 %v3503_v54  ;;  %3534 = vmatpush.bf16.xpose.msra.mxu3 %v3504_v1  ;;  %v3027_v24 = vpack.c.bf16 %v4830_v0, %v4828_v16  ;;  %v2735_v28 = vmul.f32 1.442695, %v2339_v42  ;;  %v3041_v43 = vpack.c.bf16 %v4832_v63, %v6794_v5 }
 0x3f6   : > { %v2741_v17 = vmul.f32 1.442695, %v7923_v33  ;;  %v4838_v21 = vpop.eup %4837  ;;  %3635 = vmatpush.bf16.xpose.msrb.mxu0 %v3614_v22  ;;  %3648 = vmatpush.bf16.xpose.msrb.mxu1 %v3615_v29  ;;  %v2737_v48 = vmul.f32 1.442695, %v2340_v47  ;;  %v3483_v10 = vunpack.c.l.b16 %v3028_v20  ;;  %v3484_v53 = vunpack.c.h.b16 %v3028_v20 }
 0x3f7   : > { %v4840_v62 = vpop.eup %4839  ;;  %4847 = vpow2.f32 %v2739_v38  ;;  %v6877_v34 = vpop.f32.mrf.mxu3  ;;  %v3592_v49 = vunpack.c.l.b16 %v3042_v11  ;;  %v3593_v7 = vunpack.c.h.b16 %v3042_v11  ;;  %v3481_v46 = vunpack.c.l.b16 %v3027_v24 }
 0x3f8   : > { %7924 = vst [vmem:[#allocation48_spill] sm:$0xff] %v6877_v34  ;;  %v4842_v3 = vpop.eup %4841  ;;  %4849 = vpow2.f32 %v2741_v17  ;;  %v3482_v37 = vunpack.c.h.b16 %v3027_v24  ;;  %v3590_v15 = vunpack.c.l.b16 %v3041_v43  ;;  %v3591_v25 = vunpack.c.h.b16 %v3041_v43 }
 0x3f9   : > { %v4844_v4 = vpop.eup %4843  ;;  %4851 = vpow2.f32 %v2735_v28  ;;  %v3501_v47 = vpack.c.b16 %v3483_v10, %v3481_v46  ;;  %v3026_v6 = vpack.c.bf16 %v4840_v62, %v4838_v21  ;;  %v3040_v61 = vpack.c.bf16 %v4836_v40, %v4834_v51 }
 0x3fa   : > { %v6879_v42 = vpop.f32.mrf.mxu1  ;;  %4853 = vpow2.f32 %v2737_v48  ;;  %v3502_v16 = vpack.c.b16 %v3484_v53, %v3482_v37  ;;  %v3612_v27 = vpack.c.b16 %v3592_v49, %v3590_v15  ;;  %v3613_v9 = vpack.c.b16 %v3593_v7, %v3591_v25 }
 0x3fb   : > { %v4846_v5 = vpop.eup %4845  ;;  %v3025_v0 = vpack.c.bf16 %v4844_v4, %v4842_v3  ;;  %v3479_v31 = vunpack.c.l.b16 %v3026_v6  ;;  %v3480_v63 = vunpack.c.h.b16 %v3026_v6  ;;  %v3588_v20 = vunpack.c.l.b16 %v3040_v61 }
 0x3fc   : > { %v3039_v38 = vpack.c.bf16 %v4846_v5, %v6786_v30  ;;  %v3589_v41 = vunpack.c.h.b16 %v3040_v61  ;;  %v6902_v61 = vpop.xlane.xlu2 %2062 }
 0x3fd   : > { %3522 = vmatpush.bf16.xpose.msra.mxu2 %v3501_v47  ;;  %3535 = vmatpush.bf16.xpose.msra.mxu3 %v3502_v16  ;;  %v4848_v59 = vpop.eup %4847  ;;  %v3477_v29 = vunpack.c.l.b16 %v3025_v0  ;;  %v3478_v11 = vunpack.c.h.b16 %v3025_v0 }
 0x3fe   : > { %3636 = vmatpush.bf16.xpose.msrb.mxu0 %v3612_v27  ;;  %3649 = vmatpush.bf16.xpose.msrb.mxu1 %v3613_v9  ;;  %v4850_v19 = vpop.eup %4849  ;;  %v3586_v40 = vunpack.c.l.b16 %v3039_v38  ;;  %v3587_v33 = vunpack.c.h.b16 %v3039_v38 }
 0x3ff   : > { %v4852_v54 = vpop.eup %4851  ;;  %v6882_v1 = vpop.f32.mrf.mxu3  ;;  %v3499_v17 = vpack.c.b16 %v3479_v31, %v3477_v29  ;;  %v3500_v24 = vpack.c.b16 %v3480_v63, %v3478_v11  ;;  %v3038_v21 = vpack.c.bf16 %v4850_v19, %v4848_v59 }
 0x400   : > { %v4854_v22 = vpop.eup %4853  ;;  %v3610_v28 = vpack.c.b16 %v3588_v20, %v3586_v40  ;;  %v3611_v30 = vpack.c.b16 %v3589_v41, %v3587_v33 }
 0x401   : > { %v3037_v43 = vpack.c.bf16 %v4854_v22, %v4852_v54  ;;  %v3584_v53 = vunpack.c.l.b16 %v3038_v21  ;;  %v3585_v46 = vunpack.c.h.b16 %v3038_v21 }
 0x402   : > { %v6884_v51 = vpop.f32.mrf.mxu1 }
 0x403   : > { %v3582_v7 = vunpack.c.l.b16 %v3037_v43  ;;  %v3583_v3 = vunpack.c.h.b16 %v3037_v43  ;;  %v7931_v43 = vld [vmem:[#allocation88_spill] sm:$0xff] }
 0x405   : > { %3523 = vmatpush.bf16.xpose.msra.mxu2 %v3499_v17  ;;  %3536 = vmatpush.bf16.xpose.msra.mxu3 %v3500_v24  ;;  %v2069_v48 = vpop.xlane.xlu1 %2068  ;;  %v3608_v25 = vpack.c.b16 %v3584_v53, %v3582_v7  ;;  %v3609_v5 = vpack.c.b16 %v3585_v46, %v3583_v3  ;;  %v7927_v17 = vld [vmem:[#allocation103_spill] sm:$0xff] }
 0x406   : > { %3637 = vmatpush.bf16.xpose.msrb.mxu0 %v3610_v28  ;;  %3650 = vmatpush.bf16.xpose.msrb.mxu1 %v3611_v30  ;;  %v2367_v10 = vsub.f32 %v6574_v2, %v2069_v48  ;;  %v2368_v62 = vsub.f32 %v6556_v52, %v2069_v48  ;;  %v7929_v28 = vld [vmem:[#allocation22_spill] sm:$0xff] }
 0x407   : > { %v6888_v49 = vpop.f32.mrf.mxu3 }
 0x408   : > { %v2791_v4 = vmul.f32 1.442695, %v2367_v10  ;;  %v2793_v15 = vmul.f32 1.442695, %v2368_v62 }
 0x40a   : > { %v6890_v37 = vpop.f32.mrf.mxu1  ;;  %4855 = vpow2.f32 %v2791_v4 }
 0x40b   : > { %4857 = vpow2.f32 %v2793_v15  ;;  %v7933_v15 = vld [vmem:[#allocation9_spill] sm:$0xff] }
 0x40d   : > { %3524 = vmatpush.bf16.xpose.msra.mxu2 %v6714_v18  ;;  %3537 = vmatpush.bf16.xpose.msra.mxu3 %v6716_v58  ;;  %v2072_v2 = vpop.xlane.xlu0 %2071 }
 0x40e   : > { %3638 = vmatpush.bf16.xpose.msrb.mxu0 %v3608_v25  ;;  %3651 = vmatpush.bf16.xpose.msrb.mxu1 %v3609_v5  ;;  %v2369_v52 = vsub.f32 %v6590_v57, %v2072_v2  ;;  %v2370_v47 = vsub.f32 %v6582_v26, %v2072_v2  ;;  %v7934_v25 = vld [vmem:[#allocation19_spill] sm:$0xff] }
 0x40f   : > { %v6896_v16 = vpop.f32.mrf.mxu3  ;;  %v616_v5 = vpack.c.bf16 %v7934_v25, %v7933_v15 }
 0x410   : > { %v2795_v6 = vmul.f32 1.442695, %v2369_v52  ;;  %v2797_v27 = vmul.f32 1.442695, %v2370_v47  ;;  %v4856_v18 = vpop.eup %4855  ;;  %v7935_v52 = vld [vmem:[#allocation105_spill] sm:$0xff] }
 0x411   : > { %v4858_v58 = vpop.eup %4857 }
 0x412   : > { %v6898_v9 = vpop.f32.mrf.mxu1  ;;  %4859 = vpow2.f32 %v2795_v6  ;;  %v3051_v19 = vpack.c.bf16 %v4858_v58, %v4856_v18  ;;  %v7936_v6 = vld [vmem:[#allocation68_spill] sm:$0xff] }
 0x413   : > { %4861 = vpow2.f32 %v2797_v27 }
 0x414   : > { %v3692_v20 = vunpack.c.h.b16 %v3051_v19 }
 0x415   : > { %3525 = vmatpush.bf16.xpose.msra.mxu2 %v6680_v23  ;;  %3538 = vmatpush.bf16.xpose.msra.mxu3 %v6682_v35  ;;  %v2075_v26 = vpop.xlane.xlu0 %2074 }
 0x416   : > { %3639 = vmatpush.bf16.xpose.msrb.mxu0 %v6608_v60  ;;  %3652 = vmatpush.bf16.xpose.msrb.mxu1 %v6610_v39  ;;  %v2371_v57 = vsub.f32 %v6616_v44, %v2075_v26  ;;  %v2372_v0 = vsub.f32 %v6598_v50, %v2075_v26  ;;  %v3691_v60 = vunpack.c.l.b16 %v3051_v19 }
 0x417   : > { %v6908_v59 = vpop.f32.mrf.mxu3 }
 0x418   : > { %v4860_v38 = vpop.eup %4859  ;;  %v2799_v23 = vmul.f32 1.442695, %v2371_v57  ;;  %v2801_v54 = vmul.f32 1.442695, %v2372_v0  ;;  %v7937_v0 = vld [vmem:[#allocation101_spill] sm:$0xff] }
 0x419   : > { %v4862_v31 = vpop.eup %4861 }
 0x41a   : > { %v6910_v63 = vpop.f32.mrf.mxu1  ;;  %v3052_v35 = vpack.c.bf16 %v4862_v31, %v4860_v38  ;;  %4863 = vpow2.f32 %v2799_v23  ;;  %v7938_v38 = vld [vmem:[#allocation46_spill] sm:$0xff] }
 0x41b   : > { %7925 = vst [vmem:[#allocation104_spill] sm:$0xff] %v6910_v63  ;;  %4865 = vpow2.f32 %v2801_v54  ;;  %v3436_v54 = vunpack.c.h.b16 %v616_v5 }
 0x41c   : > { %v3693_v39 = vunpack.c.l.b16 %v3052_v35  ;;  %v3694_v44 = vunpack.c.h.b16 %v3052_v35  ;;  %v3435_v35 = vunpack.c.l.b16 %v616_v5 }
 0x41d   : > { %3526 = vmatpush.bf16.xpose.msra.mxu2 %v6626_v14  ;;  %3539 = vmatpush.bf16.xpose.msra.mxu3 %v6628_v13  ;;  %v2078_v50 = vpop.xlane.xlu2 %2077 }
 0x41e   : > { %v2373_v41 = vsub.f32 %v6643_v56, %v2078_v50  ;;  %v2374_v22 = vsub.f32 %v6624_v8, %v2078_v50  ;;  %v6916_v29 = vpack.c.b16 %v3693_v39, %v3691_v60  ;;  %v6918_v11 = vpack.c.b16 %v3694_v44, %v3692_v20  ;;  %v7930_v8 = vld [vmem:[#allocation64_spill] sm:$0xff] }
 0x41f   : > { %v6920_v40 = vpop.f32.mrf.mxu3 }
 0x420   : > { %7926 = vst [vmem:[#allocation59_spill] sm:$0xff] %v6920_v40  ;;  %v2803_v14 = vmul.f32 1.442695, %v2373_v41  ;;  %v2805_v33 = vmul.f32 1.442695, %v2374_v22  ;;  %v4864_v56 = vpop.eup %4863 }
 0x421   : > { %v2129_v13 = vpop.xlane.xlu1 %2128  ;;  %v4866_v48 = vpop.eup %4865 }
 0x422   : > { %v2407_v24 = vsub.f32 %v7927_v17, %v2129_v13  ;;  %v6923_v21 = vpop.f32.mrf.mxu1  ;;  %4867 = vpow2.f32 %v2803_v14  ;;  %v2408_v30 = vsub.f32 %v7929_v28, %v2129_v13  ;;  %v3053_v46 = vpack.c.bf16 %v4866_v48, %v4864_v56  ;;  %v7939_v28 = vld [vmem:[#allocation34_spill] sm:$0xff]  ;;  %v7940_v56 = vld [vmem:[#allocation35_spill] sm:$0xff] }
 0x423   : > { %7928 = vst [vmem:[#allocation27_spill] sm:$0xff] %v6923_v21  ;;  %4869 = vpow2.f32 %v2805_v33  ;;  %v3437_v13 = vpack.c.b16 %v3435_v35, %v3435_v35  ;;  %v3438_v17 = vpack.c.b16 %v3436_v54, %v3436_v54 }
 0x424   : > { %v2871_v10 = vmul.f32 1.442695, %v2407_v24  ;;  %v2873_v53 = vmul.f32 1.442695, %v2408_v30  ;;  %v3695_v19 = vunpack.c.l.b16 %v3053_v46  ;;  %v3696_v60 = vunpack.c.h.b16 %v3053_v46 }
 0x425   : > { %3527 = vmatpush.bf16.xpose.msra.mxu2 %v7930_v8  ;;  %3540 = vmatpush.bf16.xpose.msra.mxu3 %v7931_v43  ;;  %v6946_v22 = vpop.xlane.xlu2 %2080 }
 0x426   : > { %4871 = vpow2.f32 %v2871_v10 }
 0x427   : > { %v6928_v62 = vpop.f32.mrf.mxu3  ;;  %4873 = vpow2.f32 %v2873_v53 }
 0x428   : > { %7932 = vst [vmem:[#allocation63_spill] sm:$0xff] %v6928_v62  ;;  %v4868_v7 = vpop.eup %4867 }
 0x429   : > { %v2132_v3 = vpop.xlane.xlu0 %2131  ;;  %v4870_v4 = vpop.eup %4869 }
 0x42a   : > { %v6932_v2 = vpop.f32.mrf.mxu0  ;;  %v2409_v47 = vsub.f32 %v7935_v52, %v2132_v3  ;;  %v2410_v27 = vsub.f32 %v7936_v6, %v2132_v3  ;;  %v6936_v18 = vpop.f32.mrf.mxu1  ;;  %v3054_v58 = vpack.c.bf16 %v4870_v4, %v4868_v7 }
 0x42c   : > { %v2875_v26 = vmul.f32 1.442695, %v2409_v47  ;;  %v2877_v57 = vmul.f32 1.442695, %v2410_v27  ;;  %v3697_v31 = vunpack.c.l.b16 %v3054_v58  ;;  %v3698_v23 = vunpack.c.h.b16 %v3054_v58  ;;  %v4872_v20 = vpop.eup %4871 }
 0x42d   : > { %3528 = vmatpush.bf16.xpose.msra.mxu2 %v7937_v0  ;;  %3541 = vmatpush.bf16.xpose.msra.mxu3 %v7938_v38  ;;  %v4874_v41 = vpop.eup %4873  ;;  %v6956_v53 = vpop.xlane.xlu1 %2083  ;;  %v7942_v0 = vld [vmem:[#allocation8_spill] sm:$0xff] }
 0x42e   : > { %4875 = vpow2.f32 %v2875_v26  ;;  %v6940_v39 = vpack.c.b16 %v3697_v31, %v3695_v19  ;;  %v6944_v50 = vpack.c.b16 %v3698_v23, %v3696_v60  ;;  %v3071_v7 = vpack.c.bf16 %v4874_v41, %v4872_v20  ;;  %v7941_v26 = vld [vmem:[#allocation95_spill] sm:$0xff] }
 0x42f   : > { %4877 = vpow2.f32 %v2877_v57  ;;  %v6942_v44 = vpop.f32.mrf.mxu3 }
 0x430   : > { %v2175_v14 = vmax.f32 %v6942_v44, %v6936_v18  ;;  %v3812_v5 = vunpack.c.l.b16 %v3071_v7  ;;  %v3813_v47 = vunpack.c.h.b16 %v3071_v7 }
 0x431   : > { %v2135_v33 = vpop.xlane.xlu0 %2134 }
 0x432   : > { %v3419_v24 = vpop.f32.mrf.mxu0  ;;  %v2411_v30 = vsub.f32 %v7939_v28, %v2135_v33  ;;  %v2412_v8 = vsub.f32 %v7940_v56, %v2135_v33  ;;  %v6952_v43 = vpop.f32.mrf.mxu1  ;;  %2176 = vmax.xlane.f32.xlu2 %v2175_v14 }
 0x433   : > { %v6954_v48 = vpop.f32.mrf.mxu2 }
 0x434   : > { %v4876_v10 = vpop.eup %4875  ;;  %3529 = vmatmul.bf16.vlgmr.msra.gmra.mxu2 %v3437_v13  ;;  %3542 = vmatmul.bf16.vlgmr.msra.gmra.mxu3 %v3438_v17  ;;  %v2879_v46 = vmul.f32 1.442695, %v2411_v30  ;;  %v2881_v15 = vmul.f32 1.442695, %v2412_v8 }
 0x435   : > { %v4878_v3 = vpop.eup %4877  ;;  %v6970_v20 = vpop.xlane.xlu1 %2086 }
 0x436   : > { %v3072_v4 = vpack.c.bf16 %v4878_v3, %v4876_v10  ;;  %4879 = vpow2.f32 %v2879_v46 }
 0x437   : > { %v6958_v25 = vpop.f32.mrf.mxu3  ;;  %4881 = vpow2.f32 %v2881_v15 }
 0x438   : > { %v3814_v52 = vunpack.c.l.b16 %v3072_v4  ;;  %v3815_v6 = vunpack.c.h.b16 %v3072_v4  ;;  %v2178_v27 = vmax.f32 %v6958_v25, %v6952_v43 }
 0x439   : > { %v2138_v58 = vpop.xlane.xlu2 %2137 }
 0x43a   : > { %v2413_v57 = vsub.f32 %v7941_v26, %v2138_v58  ;;  %v2414_v38 = vsub.f32 %v7942_v0, %v2138_v58  ;;  %v6964_v19 = vpack.c.b16 %v3814_v52, %v3812_v5  ;;  %v6966_v31 = vpack.c.b16 %v3815_v6, %v3813_v47  ;;  %v6968_v23 = vpop.f32.mrf.mxu1  ;;  %2179 = vmax.xlane.f32.xlu1 %v2178_v27  ;;  %v7949_v47 = vld [vmem:[#allocation42_spill] sm:$0xff]  ;;  %v7952_v26 = vld [vmem:[#allocation15_spill] sm:$0xff] }
 0x43b   : > { %7945 = vst [vmem:[#allocation69_spill] sm:$0xff] %v6968_v23  ;;  %v3306_v35 = vpop.f32.mrf.mxu2 }
 0x43c   : > { %7943 = vst [vmem:[#allocation62_spill] sm:$0xff] %v6964_v19  ;;  %v2883_v54 = vmul.f32 1.442695, %v2413_v57  ;;  %v2885_v60 = vmul.f32 1.442695, %v2414_v38  ;;  %v4880_v41 = vpop.eup %4879  ;;  %v7960_v19 = vld [vmem:[#allocation30_spill] sm:$0xff] }
 0x43d   : > { %7944 = vst [vmem:[#allocation91_spill] sm:$0xff] %v6966_v31  ;;  %v4882_v33 = vpop.eup %4881  ;;  %v6978_v56 = vpop.xlane.xlu0 %2089 }
 0x43e   : > { %4883 = vpow2.f32 %v2883_v54  ;;  %v3073_v28 = vpack.c.bf16 %v4882_v33, %v4880_v41  ;;  %v7954_v41 = vld [vmem:[#allocation61_spill] sm:$0xff] }
 0x43f   : > { %4885 = vpow2.f32 %v2885_v60  ;;  %v6972_v14 = vpop.f32.mrf.mxu3 }
 0x440   : > { %7946 = vst [vmem:[#allocation70_spill] sm:$0xff] %v6972_v14  ;;  %v2181_v13 = vmax.f32 %v6972_v14, %v6968_v23  ;;  %v3816_v46 = vunpack.c.l.b16 %v3073_v28  ;;  %v3817_v15 = vunpack.c.h.b16 %v3073_v28  ;;  %v7977_v23 = vld [vmem:[#allocation94_spill] sm:$0xff] }
 0x441   : > { %v2141_v7 = vpop.xlane.xlu2 %2140 }
 0x442   : > { %v6976_v17 = vpop.f32.mrf.mxu1  ;;  %2182 = vmax.xlane.f32.xlu1 %v2181_v13  ;;  %v2415_v6 = vsub.f32 %v7949_v47, %v2141_v7  ;;  %v2416_v57 = vsub.f32 %v7952_v26, %v2141_v7  ;;  %v7955_v13 = vld [vmem:[#allocation71_spill] sm:$0xff]  ;;  %v7957_v47 = vld [vmem:[#allocation37_spill] sm:$0xff] }
 0x443   : > { %7947 = vst [vmem:[#allocation72_spill] sm:$0xff] %v6976_v17 }
 0x444   : > { %v4884_v24 = vpop.eup %4883  ;;  %v2887_v38 = vmul.f32 1.442695, %v2415_v6  ;;  %v2889_v60 = vmul.f32 1.442695, %v2416_v57  ;;  %v2169_v57 = vmax.f32 %v6920_v40, %v6910_v63  ;;  %v7962_v63 = vld [vmem:[#allocation6_spill] sm:$0xff] }
 0x445   : > { %v4886_v30 = vpop.eup %4885  ;;  %v6980_v8 = vpop.xlane.xlu1 %2092 }
 0x446   : > { %v3074_v10 = vpack.c.bf16 %v4886_v30, %v4884_v24  ;;  %4887 = vpow2.f32 %v2887_v38  ;;  %v7958_v38 = vld [vmem:[#allocation29_spill] sm:$0xff] }
 0x447   : > { %v6982_v3 = vpop.f32.mrf.mxu3  ;;  %4889 = vpow2.f32 %v2889_v60 }
 0x448   : > { %7948 = vst [vmem:[#allocation66_spill] sm:$0xff] %v6982_v3  ;;  %v3818_v4 = vunpack.c.l.b16 %v3074_v10  ;;  %v3819_v5 = vunpack.c.h.b16 %v3074_v10  ;;  %v2184_v52 = vmax.f32 %v6982_v3, %v6976_v17 }
 0x44a   : > { %v6987_v27 = vpack.c.b16 %v3818_v4, %v3816_v46  ;;  %v6989_v58 = vpack.c.b16 %v3819_v5, %v3817_v15  ;;  %v6992_v0 = vpop.f32.mrf.mxu1  ;;  %2185 = vmax.xlane.f32.xlu0 %v2184_v52 }
 0x44b   : > { %7953 = vst [vmem:[#allocation85_spill] sm:$0xff] %v6992_v0 }
 0x44c   : > { %7950 = vst [vmem:[#allocation50_spill] sm:$0xff] %v6987_v27  ;;  %v4888_v15 = vpop.eup %4887 }
 0x44d   : > { %7951 = vst [vmem:[#allocation56_spill] sm:$0xff] %v6989_v58  ;;  %v2096_v35 = vpop.xlane.xlu0 %2095  ;;  %v4890_v52 = vpop.eup %4889  ;;  %v7961_v58 = vld [vmem:[#allocation86_spill] sm:$0xff] }
 0x44e   : > { %v2144_v54 = vpop.xlane.xlu1 %2143  ;;  %v2016_v27 = vmax.f32 %v7961_v58, %v7960_v19  ;;  %v2385_v40 = vsub.f32 %v7962_v63, %v2096_v35 }
 0x44f   : > { %v2417_v33 = vsub.f32 %v7954_v41, %v2144_v54  ;;  %v2418_v24 = vsub.f32 %v7955_v13, %v2144_v54  ;;  %v6996_v28 = vpop.f32.mrf.mxu3  ;;  %v3075_v13 = vpack.c.bf16 %v4890_v52, %v4888_v15 }
 0x450   : > { %7956 = vst [vmem:[#allocation53_spill] sm:$0xff] %v6996_v28  ;;  %v2187_v10 = vmax.f32 %v6996_v28, %v6992_v0  ;;  %v7980_v0 = vld [vmem:[#allocation77_spill] sm:$0xff] }
 0x451   : > { %v2891_v30 = vmul.f32 1.442695, %v2417_v33  ;;  %v2893_v46 = vmul.f32 1.442695, %v2418_v24  ;;  %v3820_v15 = vunpack.c.l.b16 %v3075_v13 }
 0x452   : > { %v7000_v7 = vpop.f32.mrf.mxu1  ;;  %2188 = vmax.xlane.f32.xlu0 %v2187_v10  ;;  %v7959_v10 = vld [vmem:[#allocation31_spill] sm:$0xff] }
 0x453   : > { %4891 = vpow2.f32 %v2891_v30 }
 0x454   : > { %4893 = vpow2.f32 %v2893_v46  ;;  %v2383_v46 = vsub.f32 %v7959_v10, %v6980_v8 }
 0x455   : > { %v2099_v4 = vpop.xlane.xlu0 %2098 }
 0x456   : > { %v2387_v6 = vsub.f32 %v7957_v47, %v2099_v4  ;;  %v2388_v54 = vsub.f32 %v7958_v38, %v2099_v4  ;;  %v7963_v4 = vld [vmem:[#allocation67_spill] sm:$0xff] }
 0x457   : > { %v7002_v5 = vpop.f32.mrf.mxu3  ;;  %v2386_v38 = vsub.f32 %v7963_v4, %v2096_v35 }
 0x458   : > { %v2190_v26 = vmax.f32 %v7002_v5, %v7000_v7  ;;  %v2831_v24 = vmul.f32 1.442695, %v2387_v6  ;;  %v2833_v47 = vmul.f32 1.442695, %v2388_v54  ;;  %v3821_v6 = vunpack.c.h.b16 %v3075_v13  ;;  %v7964_v54 = vld [vmem:[#allocation7_spill] sm:$0xff] }
 0x459   : > { %v4892_v60 = vpop.eup %4891  ;;  %v2829_v13 = vmul.f32 1.442695, %v2386_v38 }
 0x45a   : > { %v7010_v41 = vpop.f32.mrf.mxu1  ;;  %2191 = vmax.xlane.f32.xlu2 %v2190_v26  ;;  %2170 = vmax.xlane.f32.xlu0 %v2169_v57  ;;  %v4894_v33 = vpop.eup %4893  ;;  %4895 = vpow2.f32 %v2831_v24  ;;  %v2823_v24 = vmul.f32 1.442695, %v2383_v46 }
 0x45b   : > { %v3076_v30 = vpack.c.bf16 %v4894_v33, %v4892_v60  ;;  %v2384_v33 = vsub.f32 %v7964_v54, %v6980_v8  ;;  %4897 = vpow2.f32 %v2833_v47 }
 0x45d   : > { %v3822_v52 = vunpack.c.l.b16 %v3076_v30  ;;  %v3823_v60 = vunpack.c.h.b16 %v3076_v30  ;;  %v7967_v30 = vld [vmem:[#allocation39_spill] sm:$0xff]  ;;  %v2825_v47 = vmul.f32 1.442695, %v2384_v33 }
 0x45e   : > { %v2102_v31 = vpop.xlane.xlu2 %2101  ;;  %v2379_v8 = vsub.f32 %v7967_v30, %v6970_v20 }
 0x45f   : > { %v2389_v17 = vsub.f32 %v6840_v32, %v2102_v31  ;;  %v2390_v26 = vsub.f32 %v6824_v36, %v2102_v31  ;;  %v7020_v57 = vpop.f32.mrf.mxu3  ;;  %v7026_v4 = vpack.c.b16 %v3822_v52, %v3820_v15  ;;  %v7028_v32 = vpack.c.b16 %v3823_v60, %v3821_v6  ;;  %v7970_v60 = vld [vmem:[#allocation74_spill] sm:$0xff] }
 0x460   : > { %v2193_v63 = vmax.f32 %v7020_v57, %v7010_v41  ;;  %v2827_v36 = vmul.f32 1.442695, %v2385_v40  ;;  %v7969_v40 = vld [vmem:[#allocation23_spill] sm:$0xff]  ;;  %v2815_v38 = vmul.f32 1.442695, %v2379_v8  ;;  %v2380_v33 = vsub.f32 %v7970_v60, %v6970_v20 }
 0x461   : > { %v2835_v10 = vmul.f32 1.442695, %v2389_v17  ;;  %v2837_v35 = vmul.f32 1.442695, %v2390_v26  ;;  %7965 = vst [vmem:[#allocation100_spill] sm:$0xff] %v7026_v4  ;;  %v7968_v17 = vld [vmem:[#allocation16_spill] sm:$0xff]  ;;  %v4896_v26 = vpop.eup %4895  ;;  %v2382_v52 = vsub.f32 %v7969_v40, %v6978_v56 }
 0x462   : > { %7966 = vst [vmem:[#allocation116_spill] sm:$0xff] %v7028_v32  ;;  %v7030_v31 = vpop.f32.mrf.mxu1  ;;  %2194 = vmax.xlane.f32.xlu2 %v2193_v63  ;;  %2017 = vmax.xlane.f32.xlu0 %v2016_v27  ;;  %v2381_v54 = vsub.f32 %v7968_v17, %v6978_v56  ;;  %v4898_v15 = vpop.eup %4897  ;;  %v2172_v27 = vmax.f32 %v6928_v62, %v6923_v21  ;;  %v7971_v63 = vld [vmem:[#allocation109_spill] sm:$0xff]  ;;  %v2817_v32 = vmul.f32 1.442695, %v2380_v33  ;;  %v7976_v62 = vld [vmem:[#allocation98_spill] sm:$0xff] }
 0x463   : > { %4899 = vpow2.f32 %v2835_v10  ;;  %v2821_v8 = vmul.f32 1.442695, %v2382_v52  ;;  %v2064_v3 = vmax.f32 %v7977_v23, %v7976_v62 }
 0x464   : > { %4901 = vpow2.f32 %v2837_v35  ;;  %v2819_v10 = vmul.f32 1.442695, %v2381_v54  ;;  %v7972_v35 = vld [vmem:[#allocation75_spill] sm:$0xff] }
 0x465   : > { %4903 = vpow2.f32 %v2827_v36  ;;  %v2055_v36 = vmax.f32 %v7972_v35, %v7971_v63 }
 0x466   : > { %4905 = vpow2.f32 %v2829_v13  ;;  %v3061_v13 = vpack.c.bf16 %v4898_v15, %v4896_v26 }
 0x467   : > { %v7038_v6 = vpop.f32.mrf.mxu3  ;;  %4907 = vpow2.f32 %v2823_v24 }
 0x468   : > { %v2196_v46 = vmax.f32 %v7038_v6, %v7030_v31  ;;  %4909 = vpow2.f32 %v2825_v47  ;;  %v7973_v47 = vld [vmem:[#allocation38_spill] sm:$0xff]  ;;  %v3711_v15 = vunpack.c.l.b16 %v3061_v13 }
 0x469   : > { %v4900_v56 = vpop.eup %4899  ;;  %4911 = vrcp.f32 %v6855_v55  ;;  %v2377_v60 = vsub.f32 %v7973_v47, %v6956_v53 }
 0x46a   : > { %2173 = vmax.xlane.f32.xlu2 %v2172_v27  ;;  %2197 = vmax.xlane.f32.xlu1 %v2196_v46  ;;  %v4902_v30 = vpop.eup %4901  ;;  %v3430_v24 = vpop.f32.mrf.mxu1  ;;  %4913 = vpow2.f32 %v2815_v38  ;;  %v3712_v46 = vunpack.c.h.b16 %v3061_v13  ;;  %v7975_v38 = vld [vmem:[#allocation32_spill] sm:$0xff] }
 0x46b   : > { %2056 = vmax.xlane.f32.xlu0 %v2055_v36  ;;  %v4904_v17 = vpop.eup %4903  ;;  %v3062_v40 = vpack.c.bf16 %v4902_v30, %v4900_v56  ;;  %v7050_v20 = vadd.f32 %v3430_v24, %v6932_v2  ;;  %4915 = vpow2.f32 %v2819_v10  ;;  %v7974_v36 = vld [vmem:[#allocation73_spill] sm:$0xff]  ;;  %v2378_v56 = vsub.f32 %v7975_v38, %v6956_v53  ;;  %v7978_v13 = vld [vmem:[#allocation40_spill] sm:$0xff] }
 0x46c   : > { %v4906_v54 = vpop.eup %4905  ;;  %v2375_v21 = vsub.f32 %v7974_v36, %v6946_v22  ;;  %4917 = vpow2.f32 %v2821_v8  ;;  %v2376_v36 = vsub.f32 %v7980_v0, %v6946_v22  ;;  %v2811_v53 = vmul.f32 1.442695, %v2377_v60 }
 0x46d   : > { %v4908_v26 = vpop.eup %4907  ;;  %v3713_v27 = vunpack.c.l.b16 %v3062_v40  ;;  %v3714_v4 = vunpack.c.h.b16 %v3062_v40  ;;  %v3060_v33 = vpack.c.bf16 %v4906_v54, %v4904_v17  ;;  %v7979_v40 = vld [vmem:[#allocation54_spill] sm:$0xff]  ;;  %4919 = vpow2.f32 %v2817_v32 }
 0x46e   : > { %v4910_v52 = vpop.eup %4909  ;;  %v2121_v14 = vmax.f32 %v7979_v40, %v7978_v13  ;;  %v2813_v17 = vmul.f32 1.442695, %v2378_v56  ;;  %v2809_v0 = vmul.f32 1.442695, %v2376_v36  ;;  %v7986_v13 = vld [vmem:[#allocation114_spill] sm:$0xff] }
 0x46f   : > { %v3317_v2 = vpop.f32.mrf.mxu3  ;;  %v3729_v24 = vpack.c.b16 %v3713_v27, %v3711_v15  ;;  %v3730_v47 = vpack.c.b16 %v3714_v4, %v3712_v46  ;;  %v4912_v10 = vpop.eup %4911  ;;  %v3059_v4 = vpack.c.bf16 %v4910_v52, %v4908_v26  ;;  %v2807_v15 = vmul.f32 1.442695, %v2375_v21 }
 0x470   : > { %v3318_v30 = vadd.f32 %v3317_v2, %v6954_v48  ;;  %v4914_v28 = vpop.eup %4913  ;;  %v2166_v48 = vmax.f32 %v6908_v59, %v6898_v9  ;;  %v3709_v27 = vunpack.c.l.b16 %v3060_v33  ;;  %v3710_v46 = vunpack.c.h.b16 %v3060_v33 }
 0x471   : > { %3747 = vmatpush.bf16.xpose.msrb.mxu2 %v3729_v24  ;;  %3760 = vmatpush.bf16.xpose.msrb.mxu3 %v3730_v47  ;;  %v4916_v8 = vpop.eup %4915  ;;  %v3707_v32 = vunpack.c.l.b16 %v3059_v4  ;;  %v3708_v60 = vunpack.c.h.b16 %v3059_v4  ;;  %v4007_v2 = vperm.slane %v4912_v10, 4 }
 0x472   : > { %4921 = vrcp.f32 %v3318_v30  ;;  %v3432_v54 = vpop.f32.mrf.mxu1  ;;  %2122 = vmax.xlane.f32.xlu2 %v2121_v14  ;;  %2065 = vmax.xlane.f32.xlu1 %v2064_v3  ;;  %v4918_v22 = vpop.eup %4917  ;;  %v7981_v14 = vld [vmem:[#allocation58_spill] sm:$0xff]  ;;  %v7982_v3 = vld [vmem:[#allocation83_spill] sm:$0xff] }
 0x473   : > { %2167 = vmax.xlane.f32.xlu0 %v2166_v48  ;;  %4923 = vpow2.f32 %v2811_v53  ;;  %v4920_v38 = vpop.eup %4919  ;;  %v3727_v26 = vpack.c.b16 %v3709_v27, %v3707_v32  ;;  %v3728_v52 = vpack.c.b16 %v3710_v46, %v3708_v60  ;;  %v3058_v56 = vpack.c.bf16 %v4918_v22, %v4916_v8  ;;  %v7983_v48 = vld [vmem:[#allocation107_spill] sm:$0xff]  ;;  %v7984_v54 = vld [vmem:[#allocation102_spill] sm:$0xff] }
 0x474   : > { %4925 = vpow2.f32 %v2813_v17  ;;  %v2013_v21 = vmax.f32 %v7982_v3, %v7981_v14  ;;  %v2058_v33 = vmax.f32 %v7984_v54, %v7983_v48  ;;  %v7985_v53 = vld [vmem:[#allocation90_spill] sm:$0xff]  ;;  %v3057_v10 = vpack.c.bf16 %v4920_v38, %v4914_v28  ;;  %v7989_v38 = vld [vmem:[#allocation80_spill] sm:$0xff] }
 0x475   : > { %4927 = vpow2.f32 %v2807_v15  ;;  %v2115_v4 = vmax.f32 %v7986_v13, %v7985_v53  ;;  %v4015_v17 = vmul.f32 %v4007_v2, %v6855_v55  ;;  %v3705_v27 = vunpack.c.l.b16 %v3058_v56  ;;  %v7988_v28 = vld [vmem:[#allocation26_spill] sm:$0xff]  ;;  %v7991_v2 = vld [vmem:[#allocation92_spill] sm:$0xff] }
 0x476   : > { %4929 = vpow2.f32 %v2809_v0  ;;  %v3706_v46 = vunpack.c.h.b16 %v3058_v56  ;;  %v3703_v60 = vunpack.c.l.b16 %v3057_v10  ;;  %v2007_v55 = vmax.f32 %v7989_v38, %v7988_v28 }
 0x477   : > { %v3319_v24 = vpop.f32.mrf.mxu3 }
 0x478   : > { %v4922_v47 = vpop.eup %4921  ;;  %v3704_v24 = vunpack.c.h.b16 %v3057_v10  ;;  %v3725_v53 = vpack.c.b16 %v3705_v27, %v3703_v60  ;;  %v7992_v27 = vld [vmem:[#allocation12_spill] sm:$0xff]  ;;  %v2163_v60 = vmax.f32 %v6896_v16, %v6890_v37 }
 0x479   : > { %v4008_v36 = vperm.slane %v4922_v47, 4  ;;  %3748 = vmatpush.bf16.xpose.msrb.mxu2 %v3727_v26  ;;  %3761 = vmatpush.bf16.xpose.msrb.mxu3 %v3728_v52  ;;  %v4924_v8 = vpop.eup %4923 }
 0x47a   : > { %2059 = vmax.xlane.f32.xlu2 %v2058_v33  ;;  %2014 = vmax.xlane.f32.xlu1 %v2013_v21  ;;  %v4926_v22 = vpop.eup %4925  ;;  %v3726_v26 = vpack.c.b16 %v3706_v46, %v3704_v24  ;;  %v2160_v33 = vmax.f32 %v6888_v49, %v6884_v51  ;;  %v7993_v46 = vld [vmem:[#allocation87_spill] sm:$0xff]  ;;  %v7994_v24 = vld [vmem:[#allocation49_spill] sm:$0xff] }
 0x47b   : > { %v4016_v15 = vmul.f32 %v4008_v36, %v3318_v30  ;;  %2116 = vmax.xlane.f32.xlu0 %v2115_v4  ;;  %v4928_v0 = vpop.eup %4927  ;;  %v3056_v52 = vpack.c.bf16 %v4926_v22, %v4924_v8  ;;  %v7990_v30 = vld [vmem:[#allocation24_spill] sm:$0xff]  ;;  %v2118_v22 = vmax.f32 %v7993_v46, %v7992_v27 }
 0x47c   : > { %v4930_v47 = vpop.eup %4929  ;;  %v2124_v21 = vmax.f32 %v7991_v2, %v7990_v30 }
 0x47d   : > { %v7074_v32 = vpack.c.bf16 %v4016_v15, %v4015_v17  ;;  %v3055_v56 = vpack.c.bf16 %v4930_v47, %v4928_v0  ;;  %v3701_v36 = vunpack.c.l.b16 %v3056_v52  ;;  %v3702_v4 = vunpack.c.h.b16 %v3056_v52  ;;  %v7995_v0 = vld [vmem:[#allocation36_spill] sm:$0xff]  ;;  %v7996_v47 = vld [vmem:[#allocation81_spill] sm:$0xff] }
 0x47e   : > { %v7997_v52 = vld [vmem:[#allocation60_spill] sm:$0xff] }
 0x47f   : > { %7987 = vst [vmem:[#allocation47_spill] sm:$0xff] %v7074_v32  ;;  %v3699_v10 = vunpack.c.l.b16 %v3055_v56  ;;  %v3700_v17 = vunpack.c.h.b16 %v3055_v56  ;;  %v8000_v56 = vld [vmem:[#allocation76_spill] sm:$0xff] }
 0x481   : > { %3749 = vmatpush.bf16.xpose.msrb.mxu2 %v3725_v53  ;;  %3762 = vmatpush.bf16.xpose.msrb.mxu3 %v3726_v26  ;;  %v3723_v15 = vpack.c.b16 %v3701_v36, %v3699_v10  ;;  %v3724_v8 = vpack.c.b16 %v3702_v4, %v3700_v17  ;;  %v2151_v53 = vmax.f32 %v6865_v45, %v7994_v24  ;;  %v8001_v17 = vld [vmem:[#allocation97_spill] sm:$0xff] }
 0x482   : > { %2125 = vmax.xlane.f32.xlu1 %v2124_v21  ;;  %2008 = vmax.xlane.f32.xlu2 %v2007_v55  ;;  %v2010_v26 = vmax.f32 %v7996_v47, %v7995_v0  ;;  %v7998_v55 = vld [vmem:[#allocation79_spill] sm:$0xff]  ;;  %v2154_v4 = vmax.f32 %v6877_v34, %v6870_v12  ;;  %v2157_v10 = vmax.f32 %v6882_v1, %v6879_v42 }
 0x483   : > { %2161 = vmax.xlane.f32.xlu0 %v2160_v33  ;;  %v2109_v21 = vmax.f32 %v7998_v55, %v7997_v52  ;;  %v7999_v33 = vld [vmem:[#allocation78_spill] sm:$0xff] }
 0x484   : > { %v2106_v36 = vmax.f32 %v8000_v56, %v7999_v33 }
 0x489   : > { %3750 = vmatpush.bf16.xpose.msrb.mxu2 %v3723_v15  ;;  %3763 = vmatpush.bf16.xpose.msrb.mxu3 %v3724_v8  ;;  %v8002_v15 = vld [vmem:[#allocation13_spill] sm:$0xff] }
 0x48a   : > { %2164 = vmax.xlane.f32.xlu1 %v2163_v60  ;;  %2119 = vmax.xlane.f32.xlu2 %v2118_v22 }
 0x48b   : > { %2152 = vmax.xlane.f32.xlu0 %v2151_v53  ;;  %v8003_v53 = vld [vmem:[#allocation106_spill] sm:$0xff] }
 0x491   : > { %3751 = vmatpush.bf16.xpose.msrb.mxu2 %v6940_v39  ;;  %3764 = vmatpush.bf16.xpose.msrb.mxu3 %v6944_v50  ;;  %v2112_v39 = vmax.f32 %v8002_v15, %v8001_v17  ;;  %v7104_v50 = vpop.xlane.xlu1 %2146 }
 0x492   : > { %2011 = vmax.xlane.f32.xlu1 %v2010_v26  ;;  %2110 = vmax.xlane.f32.xlu2 %v2109_v21  ;;  %v8004_v26 = vld [vmem:[#allocation55_spill] sm:$0xff] }
 0x493   : > { %2107 = vmax.xlane.f32.xlu0 %v2106_v36  ;;  %v2103_v21 = vmax.f32 %v8004_v26, %v8003_v53  ;;  %v7113_v26 = vpop.xlane.xlu0 %2149 }
 0x499   : > { %3752 = vmatpush.bf16.xpose.msrb.mxu2 %v6916_v29  ;;  %3765 = vmatpush.bf16.xpose.msrb.mxu3 %v6918_v11 }
 0x49a   : > { %2158 = vmax.xlane.f32.xlu1 %v2157_v10  ;;  %2155 = vmax.xlane.f32.xlu2 %v2154_v4 }
 0x4a2   : > { %2113 = vmax.xlane.f32.xlu1 %v2112_v39 }
 0x4a5   : > { %v2177_v8 = vpop.xlane.xlu2 %2176 }
 0x4a6   : > { %v2439_v22 = vsub.f32 %v6942_v44, %v2177_v8  ;;  %v2440_v60 = vsub.f32 %v6936_v18, %v2177_v8 }
 0x4a8   : > { %v2935_v36 = vmul.f32 1.442695, %v2439_v22  ;;  %v2937_v29 = vmul.f32 1.442695, %v2440_v60 }
 0x4aa   : > { %2104 = vmax.xlane.f32.xlu1 %v2103_v21  ;;  %4931 = vpow2.f32 %v2935_v36 }
 0x4ab   : > { %4933 = vpow2.f32 %v2937_v29 }
 0x4ad   : > { %v2180_v11 = vpop.xlane.xlu1 %2179 }
 0x4ae   : > { %v2441_v4 = vsub.f32 %v6958_v25, %v2180_v11  ;;  %v2442_v10 = vsub.f32 %v6952_v43, %v2180_v11 }
 0x4b0   : > { %v2939_v39 = vmul.f32 1.442695, %v2441_v4  ;;  %v2941_v32 = vmul.f32 1.442695, %v2442_v10  ;;  %v4932_v44 = vpop.eup %4931 }
 0x4b1   : > { %v4934_v33 = vpop.eup %4933 }
 0x4b2   : > { %4935 = vpow2.f32 %v2939_v39  ;;  %v3087_v21 = vpack.c.bf16 %v4934_v33, %v4932_v44 }
 0x4b3   : > { %4937 = vpow2.f32 %v2941_v32 }
 0x4b4   : > { %4939 = vrcp.f32 %v7050_v20  ;;  %v3925_v43 = vunpack.c.l.b16 %v3087_v21  ;;  %v3926_v11 = vunpack.c.h.b16 %v3087_v21 }
 0x4b7   : > { %v3530_v18 = vpop.f32.mrf.mxu2  ;;  %v3543_v8 = vpop.f32.mrf.mxu3 }
 0x4b8   : > { %v3544_v22 = vadd.f32 %v3543_v8, %v3530_v18  ;;  %v4936_v60 = vpop.eup %4935 }
 0x4b9   : > { %v4938_v53 = vpop.eup %4937 }
 0x4ba   : > { %4941 = vrcp.f32 %v3544_v22  ;;  %v3088_v36 = vpack.c.bf16 %v4938_v53, %v4936_v60  ;;  %v4940_v25 = vpop.eup %4939 }
 0x4bb   : > { %v4009_v32 = vperm.slane %v4940_v25, 4 }
 0x4bc   : > { %v3927_v29 = vunpack.c.l.b16 %v3088_v36  ;;  %v3928_v4 = vunpack.c.h.b16 %v3088_v36  ;;  %v7128_v36 = vpop.xlane.xlu1 %2182 }
 0x4bd   : > { %v4017_v33 = vmul.f32 %v4009_v32, %v7050_v20  ;;  %v7120_v53 = vpop.xlane.xlu0 %2185 }
 0x4be   : > { %v7115_v56 = vpack.c.b16 %v3927_v29, %v3925_v43  ;;  %v7117_v52 = vpack.c.b16 %v3928_v4, %v3926_v11  ;;  %v8006_v4 = vld [vmem:[#allocation110_spill] sm:$0xff] }
 0x4bf   : > { %v3532_v10 = vpop.f32.mrf.mxu2  ;;  %v3545_v39 = vpop.f32.mrf.mxu3  ;;  %v2363_v20 = vsub.f32 %v8006_v4, %v6902_v61 }
 0x4c0   : > { %v4942_v18 = vpop.eup %4941  ;;  %v8008_v10 = vld [vmem:[#allocation17_spill] sm:$0xff] }
 0x4c1   : > { %v4010_v8 = vperm.slane %v4942_v18, 4  ;;  %v2419_v39 = vsub.f32 %v8008_v10, %v7104_v50 }
 0x4c3   : > { %v4018_v44 = vmul.f32 %v4010_v8, %v3544_v22  ;;  %v8007_v22 = vld [vmem:[#allocation65_spill] sm:$0xff]  ;;  %v2783_v8 = vmul.f32 1.442695, %v2363_v20  ;;  %v2895_v17 = vmul.f32 1.442695, %v2419_v39 }
 0x4c4   : > { %v2364_v32 = vsub.f32 %v8007_v22, %v6902_v61 }
 0x4c5   : > { %v7122_v60 = vpack.c.bf16 %v4018_v44, %v4017_v33  ;;  %v7126_v21 = vpop.xlane.xlu0 %2188  ;;  %v8009_v44 = vld [vmem:[#allocation44_spill] sm:$0xff]  ;;  %4943 = vpow2.f32 %v2783_v8 }
 0x4c6   : > { %v2785_v33 = vmul.f32 1.442695, %v2364_v32 }
 0x4c7   : > { %8005 = vst [vmem:[#allocation82_spill] sm:$0xff] %v7122_v60  ;;  %v2420_v60 = vsub.f32 %v8009_v44, %v7104_v50 }
 0x4c8   : > { %4945 = vpow2.f32 %v2785_v33 }
 0x4c9   : > { %v2897_v20 = vmul.f32 1.442695, %v2420_v60  ;;  %4947 = vpow2.f32 %v2895_v17 }
 0x4cd   : > { %v7124_v55 = vpop.xlane.xlu2 %2191  ;;  %v7130_v43 = vpop.xlane.xlu0 %2170 }
 0x4d5   : > { %v2195_v25 = vpop.xlane.xlu2 %2194  ;;  %v2018_v18 = vpop.xlane.xlu0 %2017 }
 0x4d6   : > { %v2333_v15 = vsub.f32 %v7961_v58, %v2018_v18  ;;  %v2334_v4 = vsub.f32 %v7960_v19, %v2018_v18  ;;  %v2451_v22 = vsub.f32 %v7020_v57, %v2195_v25  ;;  %v2452_v58 = vsub.f32 %v7010_v41, %v2195_v25 }
 0x4d8   : > { %v2723_v50 = vmul.f32 1.442695, %v2333_v15  ;;  %v2725_v39 = vmul.f32 1.442695, %v2334_v4  ;;  %v2959_v44 = vmul.f32 1.442695, %v2451_v22 }
 0x4dd   : > { %v2198_v29 = vpop.xlane.xlu1 %2197  ;;  %v7132_v11 = vpop.xlane.xlu2 %2173 }
 0x4de   : > { %v2057_v34 = vpop.xlane.xlu0 %2056  ;;  %v2453_v19 = vsub.f32 %v7038_v6, %v2198_v29  ;;  %v2454_v57 = vsub.f32 %v7030_v31, %v2198_v29 }
 0x4df   : > { %v2359_v17 = vsub.f32 %v7972_v35, %v2057_v34  ;;  %v2360_v6 = vsub.f32 %v7971_v63, %v2057_v34  ;;  %v2449_v34 = vsub.f32 %v7002_v5, %v7124_v55 }
 0x4e0   : > { %v2963_v8 = vmul.f32 1.442695, %v2453_v19 }
 0x4e1   : > { %v2777_v63 = vmul.f32 1.442695, %v2360_v6 }
 0x4e5   : > { %v2066_v24 = vpop.xlane.xlu1 %2065  ;;  %v7143_v27 = vpop.xlane.xlu2 %2122 }
 0x4e6   : > { %v2365_v12 = vsub.f32 %v7977_v23, %v2066_v24  ;;  %v2366_v61 = vsub.f32 %v7976_v62, %v2066_v24  ;;  %v4944_v62 = vpop.eup %4943  ;;  %v2961_v23 = vmul.f32 1.442695, %v2452_v58 }
 0x4e7   : > { %v4946_v60 = vpop.eup %4945 }
 0x4e8   : > { %v2787_v32 = vmul.f32 1.442695, %v2365_v12  ;;  %v2789_v10 = vmul.f32 1.442695, %v2366_v61  ;;  %v7155_v25 = vpop.eup %4947  ;;  %v2965_v61 = vmul.f32 1.442695, %v2454_v57 }
 0x4ea   : > { %4949 = vpow2.f32 %v2787_v32 }
 0x4eb   : > { %4951 = vpow2.f32 %v2789_v10 }
 0x4ec   : > { %4953 = vpow2.f32 %v2897_v20 }
 0x4ed   : > { %4955 = vpow2.f32 %v2723_v50  ;;  %v2015_v24 = vpop.xlane.xlu1 %2014  ;;  %v2060_v12 = vpop.xlane.xlu2 %2059 }
 0x4ee   : > { %4957 = vpow2.f32 %v2725_v39  ;;  %v2331_v41 = vsub.f32 %v7982_v3, %v2015_v24  ;;  %v2332_v15 = vsub.f32 %v7981_v14, %v2015_v24  ;;  %v2361_v31 = vsub.f32 %v7984_v54, %v2060_v12  ;;  %v8010_v39 = vld [vmem:[#allocation43_spill] sm:$0xff] }
 0x4ef   : > { %4959 = vpow2.f32 %v2959_v44  ;;  %v2362_v35 = vsub.f32 %v7983_v48, %v2060_v12  ;;  %v2775_v3 = vmul.f32 1.442695, %v2359_v17  ;;  %v3049_v14 = vpack.c.bf16 %v4946_v60, %v4944_v62  ;;  %v8011_v12 = vld [vmem:[#allocation112_spill] sm:$0xff] }
 0x4f0   : > { %v4950_v18 = vpop.eup %4949  ;;  %v2719_v33 = vmul.f32 1.442695, %v2331_v41  ;;  %v2721_v4 = vmul.f32 1.442695, %v2332_v15  ;;  %4961 = vpow2.f32 %v2961_v23  ;;  %v2450_v54 = vsub.f32 %v7000_v7, %v7124_v55  ;;  %v8012_v7 = vld [vmem:[#allocation53_spill] sm:$0xff] }
 0x4f1   : > { %v4952_v29 = vpop.eup %4951  ;;  %v2779_v50 = vmul.f32 1.442695, %v2361_v31  ;;  %v2421_v44 = vsub.f32 %v8010_v39, %v7113_v26  ;;  %v2781_v19 = vmul.f32 1.442695, %v2362_v35  ;;  %v3687_v5 = vunpack.c.l.b16 %v3049_v14  ;;  %v8013_v15 = vld [vmem:[#allocation85_spill] sm:$0xff]  ;;  %v8015_v35 = vld [vmem:[#allocation66_spill] sm:$0xff] }
 0x4f2   : > { %v7160_v22 = vpop.eup %4953  ;;  %4963 = vpow2.f32 %v2719_v33  ;;  %v3050_v20 = vpack.c.bf16 %v4952_v29, %v4950_v18  ;;  %v3688_v57 = vunpack.c.h.b16 %v3049_v14  ;;  %v2422_v60 = vsub.f32 %v8011_v12, %v7113_v26 }
 0x4f3   : > { %v4956_v32 = vpop.eup %4955  ;;  %4965 = vpow2.f32 %v2721_v4  ;;  %v2447_v55 = vsub.f32 %v8012_v7, %v7126_v21  ;;  %v2955_v17 = vmul.f32 1.442695, %v2449_v34  ;;  %v2448_v6 = vsub.f32 %v8013_v15, %v7126_v21 }
 0x4f4   : > { %v4958_v10 = vpop.eup %4957  ;;  %4967 = vpow2.f32 %v2963_v8  ;;  %v3689_v58 = vunpack.c.l.b16 %v3050_v20  ;;  %v3690_v23 = vunpack.c.h.b16 %v3050_v20  ;;  %v2957_v18 = vmul.f32 1.442695, %v2450_v54 }
 0x4f5   : > { %v4960_v48 = vpop.eup %4959  ;;  %4969 = vpow2.f32 %v2965_v61  ;;  %v7168_v62 = vpop.xlane.xlu1 %2125  ;;  %v2899_v4 = vmul.f32 1.442695, %v2421_v44  ;;  %v8014_v61 = vld [vmem:[#allocation70_spill] sm:$0xff]  ;;  %v3034_v20 = vpack.c.bf16 %v4958_v10, %v4956_v32 }
 0x4f6   : > { %4971 = vpow2.f32 %v2775_v3  ;;  %v4962_v24 = vpop.eup %4961  ;;  %v3717_v8 = vpack.c.b16 %v3689_v58, %v3687_v5  ;;  %v3718_v31 = vpack.c.b16 %v3690_v23, %v3688_v57  ;;  %v2443_v26 = vsub.f32 %v8014_v61, %v7128_v36  ;;  %v2009_v21 = vpop.xlane.xlu2 %2008  ;;  %v8017_v5 = vld [vmem:[#allocation72_spill] sm:$0xff] }
 0x4f7   : > { %4973 = vpow2.f32 %v2777_v63  ;;  %v2445_v3 = vsub.f32 %v8015_v35, %v7120_v53  ;;  %v2951_v63 = vmul.f32 1.442695, %v2447_v55  ;;  %v2953_v58 = vmul.f32 1.442695, %v2448_v6 }
 0x4f8   : > { %v4964_v41 = vpop.eup %4963  ;;  %4975 = vpow2.f32 %v2779_v50  ;;  %3753 = vmatpush.bf16.xpose.msrb.mxu2 %v3717_v8  ;;  %3766 = vmatpush.bf16.xpose.msrb.mxu3 %v3718_v31  ;;  %v2901_v50 = vmul.f32 1.442695, %v2422_v60  ;;  %v2446_v57 = vsub.f32 %v8017_v5, %v7120_v53  ;;  %v2943_v7 = vmul.f32 1.442695, %v2443_v26  ;;  %v8018_v8 = vld [vmem:[#allocation11_spill] sm:$0xff] }
 0x4f9   : > { %v4966_v33 = vpop.eup %4965  ;;  %4977 = vpow2.f32 %v2781_v19  ;;  %v8016_v19 = vld [vmem:[#allocation69_spill] sm:$0xff]  ;;  %v2947_v55 = vmul.f32 1.442695, %v2445_v3  ;;  %v3576_v60 = vunpack.c.l.b16 %v3034_v20  ;;  %v2328_v6 = vsub.f32 %v7988_v28, %v2009_v21 }
 0x4fa   : > { %v4968_v29 = vpop.eup %4967  ;;  %v3033_v14 = vpack.c.bf16 %v4966_v33, %v4964_v41  ;;  %4979 = vpow2.f32 %v2955_v17  ;;  %v2444_v23 = vsub.f32 %v8016_v19, %v7128_v36  ;;  %v2327_v17 = vsub.f32 %v7989_v38, %v2009_v21  ;;  %v8019_v36 = vld [vmem:[#allocation25_spill] sm:$0xff] }
 0x4fb   : > { %v4970_v34 = vpop.eup %4969  ;;  %4981 = vpow2.f32 %v2957_v18  ;;  %v3577_v18 = vunpack.c.h.b16 %v3034_v20  ;;  %v7190_v33 = vpack.c.bf16 %v8019_v36, %v8018_v8  ;;  %v2949_v61 = vmul.f32 1.442695, %v2446_v57 }
 0x4fc   : > { %v4972_v54 = vpop.eup %4971  ;;  %v3574_v39 = vunpack.c.l.b16 %v3033_v14  ;;  %4983 = vpow2.f32 %v2899_v4  ;;  %v3575_v32 = vunpack.c.h.b16 %v3033_v14  ;;  %v3094_v15 = vpack.c.bf16 %v4970_v34, %v4968_v29  ;;  %v7192_v14 = vpop.xlane.xlu0 %2167 }
 0x4fd   : > { %v4974_v44 = vpop.eup %4973  ;;  %v7184_v12 = vpop.xlane.xlu1 %2164  ;;  %4985 = vpow2.f32 %v2951_v63  ;;  %v3093_v26 = vpack.c.bf16 %v4962_v24, %v4960_v48  ;;  %v2945_v3 = vmul.f32 1.442695, %v2444_v23  ;;  %v2711_v29 = vmul.f32 1.442695, %v2327_v17 }
 0x4fe   : > { %v4976_v10 = vpop.eup %4975  ;;  %4987 = vpow2.f32 %v2953_v58  ;;  %v3604_v53 = vpack.c.b16 %v3576_v60, %v3574_v39  ;;  %v3047_v4 = vpack.c.bf16 %v4974_v44, %v4972_v54  ;;  %v3605_v35 = vpack.c.b16 %v3577_v18, %v3575_v32 }
 0x4ff   : > { %v4978_v41 = vpop.eup %4977  ;;  %4989 = vpow2.f32 %v2901_v50  ;;  %v2713_v34 = vmul.f32 1.442695, %v2328_v6  ;;  %v3939_v63 = vunpack.c.l.b16 %v3094_v15  ;;  %v3940_v21 = vunpack.c.h.b16 %v3094_v15 }
 0x500   : > { %v4980_v31 = vpop.eup %4979  ;;  %4991 = vpow2.f32 %v2943_v7  ;;  %3640 = vmatpush.bf16.xpose.msrb.mxu0 %v3604_v53  ;;  %v3048_v28 = vpack.c.bf16 %v4978_v41, %v4976_v10  ;;  %3653 = vmatpush.bf16.xpose.msrb.mxu1 %v3605_v35  ;;  %v3683_v54 = vunpack.c.l.b16 %v3047_v4  ;;  %v3684_v50 = vunpack.c.h.b16 %v3047_v4  ;;  %v8020_v53 = vld [vmem:[#allocation59_spill] sm:$0xff] }
 0x501   : > { %v4982_v38 = vpop.eup %4981  ;;  %4993 = vpow2.f32 %v2947_v55  ;;  %v3937_v24 = vunpack.c.l.b16 %v3093_v26  ;;  %v3938_v44 = vunpack.c.h.b16 %v3093_v26  ;;  %v3661_v15 = vunpack.c.l.b16 %v7190_v33 }
 0x502   : > { %v4984_v20 = vpop.eup %4983  ;;  %v3685_v58 = vunpack.c.l.b16 %v3048_v28  ;;  %v3686_v39 = vunpack.c.h.b16 %v3048_v28  ;;  %4995 = vpow2.f32 %v2949_v61  ;;  %v3092_v23 = vpack.c.bf16 %v4982_v38, %v4980_v31 }
 0x503   : > { %v4986_v48 = vpop.eup %4985  ;;  %4997 = vpow2.f32 %v2711_v29  ;;  %v3955_v55 = vpack.c.b16 %v3939_v63, %v3937_v24  ;;  %v3956_v17 = vpack.c.b16 %v3940_v21, %v3938_v44  ;;  %v3662_v6 = vunpack.c.h.b16 %v7190_v33  ;;  %v8022_v63 = vld [vmem:[#allocation27_spill] sm:$0xff] }
 0x504   : > { %v4988_v5 = vpop.eup %4987  ;;  %v3715_v57 = vpack.c.b16 %v3685_v58, %v3683_v54  ;;  %v3716_v32 = vpack.c.b16 %v3686_v39, %v3684_v50  ;;  %4999 = vpow2.f32 %v2713_v34  ;;  %v2435_v4 = vsub.f32 %v8020_v53, %v7130_v43  ;;  %v7202_v29 = vpop.xlane.xlu0 %2116 }
 0x505   : > { %v2012_v19 = vpop.xlane.xlu1 %2011  ;;  %v4990_v7 = vpop.eup %4989  ;;  %5001 = vpow2.f32 %v2945_v3  ;;  %v3935_v26 = vunpack.c.l.b16 %v3092_v23  ;;  %v3936_v33 = vunpack.c.h.b16 %v3092_v23  ;;  %v3663_v38 = vpack.c.b16 %v3661_v15, %v3661_v15 }
 0x506   : > { %v2329_v10 = vsub.f32 %v7996_v47, %v2012_v19  ;;  %v2330_v60 = vsub.f32 %v7995_v0, %v2012_v19  ;;  %v4992_v41 = vpop.eup %4991  ;;  %3754 = vmatpush.bf16.xpose.msrb.mxu2 %v3715_v57  ;;  %3767 = vmatpush.bf16.xpose.msrb.mxu3 %v3716_v32  ;;  %v3091_v47 = vpack.c.bf16 %v4988_v5, %v4986_v48  ;;  %v8021_v0 = vld [vmem:[#allocation63_spill] sm:$0xff]  ;;  %v8023_v48 = vld [vmem:[#allocation104_spill] sm:$0xff]  ;;  %v2927_v44 = vmul.f32 1.442695, %v2435_v4  ;;  %v7210_v19 = vpop.xlane.xlu2 %2119 }
 0x507   : > { %v4994_v8 = vpop.eup %4993  ;;  %v2437_v61 = vsub.f32 %v8021_v0, %v7132_v11  ;;  %v3664_v3 = vpack.c.b16 %v3662_v6, %v3662_v6  ;;  %v3077_v34 = vpack.c.bf16 %v7160_v22, %v7155_v25  ;;  %v2438_v21 = vsub.f32 %v8022_v63, %v7132_v11  ;;  %v8024_v22 = vld [vmem:[#allocation10_spill] sm:$0xff] }
 0x508   : > { %v2715_v18 = vmul.f32 1.442695, %v2329_v10  ;;  %v2717_v36 = vmul.f32 1.442695, %v2330_v60  ;;  %v4996_v31 = vpop.eup %4995  ;;  %v3933_v54 = vunpack.c.l.b16 %v3091_v47  ;;  %v3934_v58 = vunpack.c.h.b16 %v3091_v47  ;;  %v8025_v10 = vld [vmem:[#allocation21_spill] sm:$0xff] }
 0x509   : > { %v4998_v35 = vpop.eup %4997  ;;  %v3078_v39 = vpack.c.bf16 %v4990_v7, %v4984_v20  ;;  %v2436_v24 = vsub.f32 %v8023_v48, %v7130_v43  ;;  %v2931_v23 = vmul.f32 1.442695, %v2437_v61  ;;  %v3090_v32 = vpack.c.bf16 %v4996_v31, %v4994_v8 }
 0x50a   : > { %5003 = vpow2.f32 %v2715_v18  ;;  %v5000_v28 = vpop.eup %4999  ;;  %v3953_v5 = vpack.c.b16 %v3935_v26, %v3933_v54  ;;  %v3954_v57 = vpack.c.b16 %v3936_v33, %v3934_v58  ;;  %v617_v11 = vpack.c.bf16 %v8025_v10, %v8024_v22 }
 0x50b   : > { %5005 = vpow2.f32 %v2717_v36  ;;  %v5002_v50 = vpop.eup %5001  ;;  %v2933_v60 = vmul.f32 1.442695, %v2438_v21  ;;  %v3824_v43 = vunpack.c.l.b16 %v3077_v34  ;;  %v3825_v7 = vunpack.c.h.b16 %v3077_v34 }
 0x50c   : > { %v3089_v20 = vpack.c.bf16 %v5002_v50, %v4992_v41  ;;  %5007 = vpow2.f32 %v2927_v44  ;;  %v2929_v15 = vmul.f32 1.442695, %v2436_v24  ;;  %v3826_v18 = vunpack.c.l.b16 %v3078_v39  ;;  %v7216_v33 = vpop.xlane.xlu0 %2161 }
 0x50d   : > { %3755 = vmatmul.bf16.vlgmr.msrb.gmra.mxu2 %v3663_v38  ;;  %3768 = vmatmul.bf16.vlgmr.msrb.gmra.mxu3 %v3664_v3  ;;  %5009 = vpow2.f32 %v2931_v23  ;;  %v3931_v36 = vunpack.c.l.b16 %v3090_v32  ;;  %v3932_v47 = vunpack.c.h.b16 %v3090_v32  ;;  %v3827_v8 = vunpack.c.h.b16 %v3078_v39 }
 0x50e   : > { %3973 = vmatpush.bf16.xpose.msra.mxu2 %v3955_v55  ;;  %3986 = vmatpush.bf16.xpose.msra.mxu3 %v3956_v17  ;;  %v3031_v55 = vpack.c.bf16 %v5000_v28, %v4998_v35  ;;  %5011 = vpow2.f32 %v2933_v60  ;;  %v2431_v61 = vsub.f32 %v6896_v16, %v7184_v12  ;;  %v3929_v26 = vunpack.c.l.b16 %v3089_v20  ;;  %v7224_v58 = vpop.xlane.xlu2 %2110 }
 0x50f   : > { %v3930_v41 = vunpack.c.h.b16 %v3089_v20  ;;  %5013 = vpow2.f32 %v2929_v15  ;;  %v2432_v35 = vsub.f32 %v6890_v37, %v7184_v12  ;;  %v2433_v28 = vsub.f32 %v6908_v59, %v7192_v14  ;;  %v8026_v59 = vld [vmem:[#allocation40_spill] sm:$0xff] }
 0x510   : > { %v5004_v25 = vpop.eup %5003  ;;  %v3570_v53 = vunpack.c.l.b16 %v3031_v55  ;;  %v3571_v31 = vunpack.c.h.b16 %v3031_v55  ;;  %v3951_v34 = vpack.c.b16 %v3931_v36, %v3929_v26  ;;  %v3548_v54 = vunpack.c.l.b16 %v617_v11  ;;  %v8029_v26 = vld [vmem:[#allocation48_spill] sm:$0xff] }
 0x511   : > { %v5006_v17 = vpop.eup %5005  ;;  %v3952_v63 = vpack.c.b16 %v3932_v47, %v3930_v41  ;;  %v2434_v16 = vsub.f32 %v6898_v9, %v7192_v14  ;;  %v3842_v50 = vpack.c.b16 %v3826_v18, %v3824_v43  ;;  %v3843_v39 = vpack.c.b16 %v3827_v8, %v3825_v7  ;;  %v8028_v18 = vld [vmem:[#allocation116_spill] sm:$0xff] }
 0x512   : > { %v3032_v6 = vpack.c.bf16 %v5006_v17, %v5004_v25  ;;  %v5008_v21 = vpop.eup %5007  ;;  %v3549_v37 = vunpack.c.h.b16 %v617_v11  ;;  %v2403_v12 = vsub.f32 %v7979_v40, %v7143_v27  ;;  %v2919_v24 = vmul.f32 1.442695, %v2431_v61 }
 0x513   : > { %v5010_v48 = vpop.eup %5009  ;;  %v2404_v44 = vsub.f32 %v8026_v59, %v7143_v27  ;;  %v2921_v23 = vmul.f32 1.442695, %v2432_v35  ;;  %v2923_v14 = vmul.f32 1.442695, %v2433_v28  ;;  %v3550_v25 = vpack.c.b16 %v3548_v54, %v3548_v54  ;;  %v8030_v35 = vld [vmem:[#allocation41_spill] sm:$0xff] }
 0x514   : > { %v3572_v4 = vunpack.c.l.b16 %v3032_v6  ;;  %v3573_v0 = vunpack.c.h.b16 %v3032_v6  ;;  %v5012_v9 = vpop.eup %5011  ;;  %v2925_v22 = vmul.f32 1.442695, %v2434_v16  ;;  %v2406_v40 = vsub.f32 %v7990_v30, %v7168_v62  ;;  %v2153_v7 = vpop.xlane.xlu0 %2152  ;;  %v8027_v6 = vld [vmem:[#allocation100_spill] sm:$0xff]  ;;  %v8032_v16 = vld [vmem:[#allocation90_spill] sm:$0xff] }
 0x515   : > { %v5014_v32 = vpop.eup %5013  ;;  %v3551_v10 = vpack.c.b16 %v3549_v37, %v3549_v37  ;;  %v2863_v11 = vmul.f32 1.442695, %v2403_v12  ;;  %5015 = vpow2.f32 %v2919_v24  ;;  %v2865_v55 = vmul.f32 1.442695, %v2404_v44 }
 0x516   : > { %3974 = vmatpush.bf16.xpose.msra.mxu2 %v3953_v5  ;;  %3987 = vmatpush.bf16.xpose.msra.mxu3 %v3954_v57  ;;  %v3602_v38 = vpack.c.b16 %v3572_v4, %v3570_v53  ;;  %v3603_v3 = vpack.c.b16 %v3573_v0, %v3571_v31  ;;  %v2159_v5 = vpop.xlane.xlu1 %2158  ;;  %v2405_v57 = vsub.f32 %v7991_v2, %v7168_v62  ;;  %5017 = vpow2.f32 %v2921_v23  ;;  %v2156_v15 = vpop.xlane.xlu2 %2155 }
 0x517   : > { %v2427_v27 = vsub.f32 %v6882_v1, %v2159_v5  ;;  %v2428_v17 = vsub.f32 %v6879_v42, %v2159_v5  ;;  %v3086_v60 = vpack.c.bf16 %v5012_v9, %v5010_v48  ;;  %5019 = vpow2.f32 %v2923_v14  ;;  %v8034_v9 = vld [vmem:[#allocation50_spill] sm:$0xff] }
 0x518   : > { %3641 = vmatpush.bf16.xpose.msrb.mxu0 %v3602_v38  ;;  %3654 = vmatpush.bf16.xpose.msrb.mxu1 %v3603_v3  ;;  %v2867_v20 = vmul.f32 1.442695, %v2405_v57  ;;  %v2429_v2 = vsub.f32 %v6888_v49, %v7216_v33  ;;  %v3085_v43 = vpack.c.bf16 %v5014_v32, %v5008_v21  ;;  %5021 = vpow2.f32 %v2925_v22 }
 0x519   : > { %v2869_v30 = vmul.f32 1.442695, %v2406_v40  ;;  %v2430_v62 = vsub.f32 %v6884_v51, %v7216_v33  ;;  %5023 = vpow2.f32 %v2863_v11  ;;  %v2399_v1 = vsub.f32 %v7986_v13, %v7202_v29  ;;  %v8036_v11 = vld [vmem:[#allocation13_spill] sm:$0xff] }
 0x51a   : > { %v2911_v42 = vmul.f32 1.442695, %v2427_v27  ;;  %5025 = vpow2.f32 %v2865_v55  ;;  %v2913_v49 = vmul.f32 1.442695, %v2428_v17  ;;  %v3923_v36 = vunpack.c.l.b16 %v3086_v60 }
 0x51b   : > { %v3924_v47 = vunpack.c.h.b16 %v3086_v60  ;;  %v5016_v51 = vpop.eup %5015  ;;  %5027 = vpow2.f32 %v2867_v20  ;;  %v2915_v8 = vmul.f32 1.442695, %v2429_v2  ;;  %v2423_v53 = vsub.f32 %v6865_v45, %v2153_v7  ;;  %v8037_v20 = vld [vmem:[#allocation97_spill] sm:$0xff] }
 0x51c   : > { %v3921_v13 = vunpack.c.l.b16 %v3085_v43  ;;  %v5018_v4 = vpop.eup %5017  ;;  %5029 = vpow2.f32 %v2869_v30  ;;  %v3922_v31 = vunpack.c.h.b16 %v3085_v43  ;;  %v2855_v61 = vmul.f32 1.442695, %v2399_v1  ;;  %v8038_v1 = vld [vmem:[#allocation79_spill] sm:$0xff] }
 0x51d   : > { %v5020_v0 = vpop.eup %5019  ;;  %5031 = vpow2.f32 %v2911_v42  ;;  %v2425_v41 = vsub.f32 %v8029_v26, %v2156_v15  ;;  %v2426_v38 = vsub.f32 %v8030_v35, %v2156_v15  ;;  %v3083_v54 = vpack.c.bf16 %v5018_v4, %v5016_v51  ;;  %v8041_v4 = vld [vmem:[#allocation91_spill] sm:$0xff] }
 0x51e   : > { %3975 = vmatpush.bf16.xpose.msra.mxu2 %v3951_v34  ;;  %3988 = vmatpush.bf16.xpose.msra.mxu3 %v3952_v63  ;;  %v5022_v33 = vpop.eup %5021  ;;  %5033 = vpow2.f32 %v2913_v49  ;;  %v3947_v3 = vpack.c.b16 %v3923_v36, %v3921_v13  ;;  %v3948_v28 = vpack.c.b16 %v3924_v47, %v3922_v31  ;;  %v2903_v34 = vmul.f32 1.442695, %v2423_v53  ;;  %v8031_v63 = vld [vmem:[#allocation12_spill] sm:$0xff]  ;;  %v2114_v59 = vpop.xlane.xlu1 %2113  ;;  %v8040_v13 = vld [vmem:[#allocation62_spill] sm:$0xff] }
 0x51f   : > { %3642 = vmatmul.bf16.vlgmr.msrb.gmra.mxu0 %v3550_v25  ;;  %3655 = vmatmul.bf16.vlgmr.msrb.gmra.mxu1 %v3551_v10  ;;  %v5024_v45 = vpop.eup %5023  ;;  %5035 = vpow2.f32 %v2915_v8  ;;  %v2402_v21 = vsub.f32 %v8031_v63, %v7210_v19  ;;  %v2907_v24 = vmul.f32 1.442695, %v2425_v41  ;;  %v3084_v44 = vpack.c.bf16 %v5022_v33, %v5020_v0  ;;  %v8042_v63 = vld [vmem:[#allocation76_spill] sm:$0xff] }
 0x520   : > { %3860 = vmatpush.bf16.xpose.msra.mxu0 %v3842_v50  ;;  %3873 = vmatpush.bf16.xpose.msra.mxu1 %v3843_v39  ;;  %v2400_v50 = vsub.f32 %v8032_v16, %v7202_v29  ;;  %v8033_v39 = vld [vmem:[#allocation49_spill] sm:$0xff]  ;;  %v2909_v5 = vmul.f32 1.442695, %v2426_v38  ;;  %v3917_v57 = vunpack.c.l.b16 %v3083_v54  ;;  %v3918_v32 = vunpack.c.h.b16 %v3083_v54  ;;  %v8043_v54 = vld [vmem:[#allocation55_spill] sm:$0xff] }
 0x521   : > { %v2424_v48 = vsub.f32 %v8033_v39, %v2153_v7  ;;  %v2861_v29 = vmul.f32 1.442695, %v2402_v21  ;;  %v2397_v27 = vsub.f32 %v8036_v11, %v2114_v59  ;;  %v3919_v55 = vunpack.c.l.b16 %v3084_v44  ;;  %v8044_v39 = vld [vmem:[#allocation106_spill] sm:$0xff] }
 0x522   : > { %v2857_v22 = vmul.f32 1.442695, %v2400_v50  ;;  %v3920_v17 = vunpack.c.h.b16 %v3084_v44  ;;  %v2398_v2 = vsub.f32 %v8037_v20, %v2114_v59  ;;  %v2395_v42 = vsub.f32 %v8038_v1, %v7224_v58 }
 0x523   : > { %v2905_v40 = vmul.f32 1.442695, %v2424_v48  ;;  %v3945_v43 = vpack.c.b16 %v3919_v55, %v3917_v57  ;;  %v2851_v47 = vmul.f32 1.442695, %v2397_v27 }
 0x524   : > { %v3946_v30 = vpack.c.b16 %v3920_v17, %v3918_v32  ;;  %v2853_v53 = vmul.f32 1.442695, %v2398_v2  ;;  %v2847_v41 = vmul.f32 1.442695, %v2395_v42  ;;  %v8046_v2 = vld [vmem:[#allocation18_spill] sm:$0xff] }
 0x526   : > { %3976 = vmatpush.bf16.xpose.msra.mxu2 %v7115_v56  ;;  %3989 = vmatpush.bf16.xpose.msra.mxu3 %v7117_v52  ;;  %v2917_v56 = vmul.f32 1.442695, %v2430_v62  ;;  %v2401_v52 = vsub.f32 %v7993_v46, %v7210_v19  ;;  %v5026_v46 = vpop.eup %5025  ;;  %v8035_v19 = vld [vmem:[#allocation56_spill] sm:$0xff]  ;;  %v2105_v31 = vpop.xlane.xlu1 %2104 }
 0x527   : > { %v5028_v12 = vpop.eup %5027  ;;  %v3069_v49 = vpack.c.bf16 %v5026_v46, %v5024_v45  ;;  %v2391_v46 = vsub.f32 %v8043_v54, %v2105_v31  ;;  %v2392_v48 = vsub.f32 %v8044_v39, %v2105_v31 }
 0x528   : > { %3861 = vmatpush.bf16.xpose.msra.mxu0 %v8027_v6  ;;  %3874 = vmatpush.bf16.xpose.msra.mxu1 %v8028_v18  ;;  %5037 = vpow2.f32 %v2917_v56  ;;  %v2859_v37 = vmul.f32 1.442695, %v2401_v52  ;;  %v5030_v23 = vpop.eup %5029  ;;  %v8039_v18 = vld [vmem:[#allocation60_spill] sm:$0xff]  ;;  %v2108_v52 = vpop.xlane.xlu0 %2107 }
 0x529   : > { %5039 = vpow2.f32 %v2855_v61  ;;  %v5032_v14 = vpop.eup %5031  ;;  %v3070_v15 = vpack.c.bf16 %v5030_v23, %v5028_v12  ;;  %v2396_v36 = vsub.f32 %v8039_v18, %v7224_v58  ;;  %v3808_v33 = vunpack.c.l.b16 %v3069_v49 }
 0x52a   : > { %5041 = vpow2.f32 %v2903_v34  ;;  %v5034_v25 = vpop.eup %5033  ;;  %v2393_v21 = vsub.f32 %v8042_v63, %v2108_v52  ;;  %v3809_v16 = vunpack.c.h.b16 %v3069_v49  ;;  %v2841_v32 = vmul.f32 1.442695, %v2392_v48  ;;  %v8049_v63 = vld [vmem:[#allocation28_spill] sm:$0xff] }
 0x52b   : > { %5043 = vpow2.f32 %v2859_v37  ;;  %v5036_v10 = vpop.eup %5035  ;;  %v3081_v62 = vpack.c.bf16 %v5034_v25, %v5032_v14  ;;  %v3810_v35 = vunpack.c.l.b16 %v3070_v15  ;;  %v3811_v58 = vunpack.c.h.b16 %v3070_v15 }
 0x52c   : > { %5045 = vpow2.f32 %v2907_v24  ;;  %v2839_v14 = vmul.f32 1.442695, %v2391_v46 }
 0x52d   : > { %5047 = vpow2.f32 %v2909_v5  ;;  %v3913_v0 = vunpack.c.l.b16 %v3081_v62  ;;  %v3914_v61 = vunpack.c.h.b16 %v3081_v62  ;;  %v3834_v59 = vpack.c.b16 %v3810_v35, %v3808_v33  ;;  %v8045_v5 = vld [vmem:[#allocation78_spill] sm:$0xff] }
 0x52e   : > { %3977 = vmatpush.bf16.xpose.msra.mxu2 %v3947_v3  ;;  %3990 = vmatpush.bf16.xpose.msra.mxu3 %v3948_v28  ;;  %v5038_v60 = vpop.eup %5037  ;;  %5049 = vpow2.f32 %v2861_v29  ;;  %v2849_v3 = vmul.f32 1.442695, %v2396_v36  ;;  %v3835_v44 = vpack.c.b16 %v3811_v58, %v3809_v16 }
 0x52f   : > { %v5040_v7 = vpop.eup %5039  ;;  %5051 = vpow2.f32 %v2905_v40  ;;  %v3082_v51 = vpack.c.bf16 %v5038_v60, %v5036_v10  ;;  %v2843_v10 = vmul.f32 1.442695, %v2393_v21 }
 0x530   : > { %3862 = vmatpush.bf16.xpose.msra.mxu0 %v8034_v9  ;;  %3875 = vmatpush.bf16.xpose.msra.mxu1 %v8035_v19  ;;  %v5042_v6 = vpop.eup %5041  ;;  %5053 = vpow2.f32 %v2857_v22  ;;  %v2394_v9 = vsub.f32 %v8045_v5, %v2108_v52 }
 0x531   : > { %v5044_v8 = vpop.eup %5043  ;;  %5055 = vpow2.f32 %v2851_v47  ;;  %v3915_v28 = vunpack.c.l.b16 %v3082_v51  ;;  %v3916_v45 = vunpack.c.h.b16 %v3082_v51 }
 0x532   : > { %v5046_v56 = vpop.eup %5045  ;;  %5057 = vpow2.f32 %v2853_v53  ;;  %v2845_v55 = vmul.f32 1.442695, %v2394_v9 }
 0x533   : > { %v5048_v26 = vpop.eup %5047  ;;  %v3943_v37 = vpack.c.b16 %v3915_v28, %v3913_v0  ;;  %v3944_v12 = vpack.c.b16 %v3916_v45, %v3914_v61  ;;  %5059 = vpow2.f32 %v2847_v41 }
 0x534   : > { %v5050_v38 = vpop.eup %5049  ;;  %v3080_v24 = vpack.c.bf16 %v5048_v26, %v5046_v56  ;;  %5061 = vpow2.f32 %v2849_v3 }
 0x535   : > { %v5052_v34 = vpop.eup %5051  ;;  %v3068_v23 = vpack.c.bf16 %v5050_v38, %v5044_v8  ;;  %5063 = vpow2.f32 %v2839_v14 }
 0x536   : > { %3978 = vmatpush.bf16.xpose.msra.mxu2 %v3945_v43  ;;  %3991 = vmatpush.bf16.xpose.msra.mxu3 %v3946_v30  ;;  %v5054_v50 = vpop.eup %5053  ;;  %v3079_v19 = vpack.c.bf16 %v5052_v34, %v5042_v6  ;;  %v3911_v25 = vunpack.c.l.b16 %v3080_v24  ;;  %v3912_v22 = vunpack.c.h.b16 %v3080_v24  ;;  %v8047_v43 = vld [vmem:[#allocation33_spill] sm:$0xff]  ;;  %5065 = vpow2.f32 %v2841_v32  ;;  %v8048_v34 = vld [vmem:[#allocation14_spill] sm:$0xff] }
 0x537   : > { %v3067_v29 = vpack.c.bf16 %v5054_v50, %v5040_v7  ;;  %v5056_v57 = vpop.eup %5055  ;;  %v3806_v11 = vunpack.c.l.b16 %v3068_v23  ;;  %v3807_v27 = vunpack.c.h.b16 %v3068_v23  ;;  %v620_v30 = vpack.c.bf16 %v8047_v43, %v8046_v2 }
 0x538   : > { %3863 = vmatpush.bf16.xpose.msra.mxu0 %v8040_v13  ;;  %3876 = vmatpush.bf16.xpose.msra.mxu1 %v8041_v4  ;;  %v5058_v40 = vpop.eup %5057  ;;  %v3909_v17 = vunpack.c.l.b16 %v3079_v19  ;;  %v3910_v60 = vunpack.c.h.b16 %v3079_v19  ;;  %5067 = vpow2.f32 %v2843_v10  ;;  %v619_v21 = vpack.c.bf16 %v8049_v63, %v8048_v34 }
 0x539   : > { %v5060_v20 = vpop.eup %5059  ;;  %v3804_v62 = vunpack.c.l.b16 %v3067_v29  ;;  %v3805_v1 = vunpack.c.h.b16 %v3067_v29  ;;  %v3066_v18 = vpack.c.bf16 %v5058_v40, %v5056_v57  ;;  %5069 = vpow2.f32 %v2845_v55 }
 0x53a   : > { %v5062_v42 = vpop.eup %5061  ;;  %v3941_v7 = vpack.c.b16 %v3911_v25, %v3909_v17  ;;  %v3942_v49 = vpack.c.b16 %v3912_v22, %v3910_v60  ;;  %v3887_v36 = vunpack.c.l.b16 %v620_v30  ;;  %v3888_v47 = vunpack.c.h.b16 %v620_v30 }
 0x53b   : > { %v3832_v15 = vpack.c.b16 %v3806_v11, %v3804_v62  ;;  %v3833_v6 = vpack.c.b16 %v3807_v27, %v3805_v1  ;;  %v3065_v51 = vpack.c.bf16 %v5062_v42, %v5060_v20  ;;  %v5064_v8 = vpop.eup %5063  ;;  %v3802_v53 = vunpack.c.l.b16 %v3066_v18 }
 0x53c   : > { %v3803_v13 = vunpack.c.h.b16 %v3066_v18  ;;  %v5066_v4 = vpop.eup %5065  ;;  %v3889_v52 = vpack.c.b16 %v3887_v36, %v3887_v36  ;;  %v3890_v31 = vpack.c.b16 %v3888_v47, %v3888_v47  ;;  %v3774_v16 = vunpack.c.l.b16 %v619_v21  ;;  %v8050_v36 = vld [vmem:[#allocation82_spill] sm:$0xff]  ;;  %v4414_v47 = vld [vmem:[%s7337_s4] sm:$0xff] }
 0x53d   : > { %v3800_v0 = vunpack.c.l.b16 %v3065_v51  ;;  %v3801_v61 = vunpack.c.h.b16 %v3065_v51  ;;  %v3063_v35 = vpack.c.bf16 %v5066_v4, %v5064_v8  ;;  %v3775_v50 = vunpack.c.h.b16 %v619_v21  ;;  %v4415_v51 = vld [vmem:[%s7337_s4 + $0x8] sm:$0xff]  ;;  %v8051_v8 = vld [vmem:[#allocation47_spill] sm:$0xff] }
 0x53e   : > { %3979 = vmatpush.bf16.xpose.msra.mxu2 %v3943_v37  ;;  %3992 = vmatpush.bf16.xpose.msra.mxu3 %v3944_v12  ;;  %v5068_v56 = vpop.eup %5067  ;;  %v3776_v39 = vpack.c.b16 %v3774_v16, %v3774_v16 }
 0x53f   : > { %v5070_v26 = vpop.eup %5069  ;;  %v3830_v41 = vpack.c.b16 %v3802_v53, %v3800_v0  ;;  %v3831_v33 = vpack.c.b16 %v3803_v13, %v3801_v61  ;;  %v3796_v38 = vunpack.c.l.b16 %v3063_v35  ;;  %v3797_v3 = vunpack.c.h.b16 %v3063_v35  ;;  %v5079_v13 = vld [vmem:[%s5302_s11] sm:$0xff]  ;;  %v5081_v61 = vld [vmem:[%s5302_s11 + $0x8] sm:$0xff] }
 0x540   : > { %3864 = vmatpush.bf16.xpose.msra.mxu0 %v3834_v59  ;;  %3877 = vmatpush.bf16.xpose.msra.mxu1 %v3835_v44  ;;  %v3064_v58 = vpack.c.bf16 %v5070_v26, %v5068_v56  ;;  %v3777_v48 = vpack.c.b16 %v3775_v50, %v3775_v50 }
 0x542   : > { %v3798_v28 = vunpack.c.l.b16 %v3064_v58  ;;  %v3799_v45 = vunpack.c.h.b16 %v3064_v58 }
 0x544   : > { %v3828_v54 = vpack.c.b16 %v3798_v28, %v3796_v38  ;;  %v3829_v46 = vpack.c.b16 %v3799_v45, %v3797_v3 }
 0x546   : > { %3980 = vmatpush.bf16.xpose.msra.mxu2 %v3941_v7  ;;  %3993 = vmatpush.bf16.xpose.msra.mxu3 %v3942_v49 }
 0x548   : > { %3865 = vmatpush.bf16.xpose.msra.mxu0 %v3832_v15  ;;  %3878 = vmatpush.bf16.xpose.msra.mxu1 %v3833_v6 }
 0x54d   : > { %3981 = vmatmul.bf16.vlgmr.msra.gmra.mxu2 %v3889_v52  ;;  %3994 = vmatmul.bf16.vlgmr.msra.gmra.mxu3 %v3890_v31  ;;  %v5080_v52 = vld [vmem:[%s5302_s11 + $0x10] sm:$0xff] }
 0x550   : > { %3866 = vmatpush.bf16.xpose.msra.mxu0 %v3830_v41  ;;  %3879 = vmatpush.bf16.xpose.msra.mxu1 %v3831_v33  ;;  %v5082_v33 = vld [vmem:[%s5302_s11 + $0x18] sm:$0xff] }
 0x558   : > { %3867 = vmatpush.bf16.xpose.msra.mxu0 %v3828_v54  ;;  %3880 = vmatpush.bf16.xpose.msra.mxu1 %v3829_v46 }
 0x55f   : > { %3868 = vmatmul.bf16.vlgmr.msra.gmra.mxu0 %v3776_v39  ;;  %3881 = vmatmul.bf16.vlgmr.msra.gmra.mxu1 %v3777_v48 }
 0x590   : > { %v3756_v37 = vpop.f32.mrf.mxu2  ;;  %v3769_v12 = vpop.f32.mrf.mxu3 }
 0x591   : > { %v3770_v24 = vadd.f32 %v3769_v12, %v3756_v37 }
 0x598   : > { %v3758_v59 = vpop.f32.mrf.mxu2  ;;  %v3771_v44 = vpop.f32.mrf.mxu3 }
 0x59c   : > { %v3643_v23 = vpop.f32.mrf.mxu0  ;;  %v3656_v5 = vpop.f32.mrf.mxu1 }
 0x59d   : > { %v3657_v32 = vadd.f32 %v3656_v5, %v3643_v23 }
 0x5a4   : > { %v3645_v9 = vpop.f32.mrf.mxu0  ;;  %v3658_v19 = vpop.f32.mrf.mxu1 }
 0x5d0   : > { %v3982_v14 = vpop.f32.mrf.mxu2  ;;  %v3995_v29 = vpop.f32.mrf.mxu3 }
 0x5d1   : > { %v3996_v57 = vadd.f32 %v3995_v29, %v3982_v14 }
 0x5d3   : > { %5071 = vrcp.f32 %v3996_v57 }
 0x5d4   : > { %5073 = vrcp.f32 %v3657_v32 }
 0x5d5   : > { %5075 = vrcp.f32 %v3770_v24 }
 0x5d8   : > { %v3984_v25 = vpop.f32.mrf.mxu2  ;;  %v3997_v22 = vpop.f32.mrf.mxu3 }
 0x5d9   : > { %v5072_v27 = vpop.eup %5071 }
 0x5da   : > { %v5074_v55 = vpop.eup %5073  ;;  %v4014_v60 = vperm.slane %v5072_v27, 4 }
 0x5db   : > { %v5076_v17 = vpop.eup %5075  ;;  %v4011_v30 = vperm.slane %v5074_v55, 4 }
 0x5dc   : > { %v3869_v40 = vpop.f32.mrf.mxu0  ;;  %v3882_v10 = vpop.f32.mrf.mxu1  ;;  %v4012_v1 = vperm.slane %v5076_v17, 4  ;;  %v4022_v42 = vmul.f32 %v4014_v60, %v3996_v57 }
 0x5dd   : > { %v3883_v11 = vadd.f32 %v3882_v10, %v3869_v40  ;;  %v4019_v49 = vmul.f32 %v4011_v30, %v3657_v32 }
 0x5de   : > { %v4020_v6 = vmul.f32 %v4012_v1, %v3770_v24 }
 0x5df   : > { %5077 = vrcp.f32 %v3883_v11 }
 0x5e0   : > { %v4025_v18 = vpack.c.bf16 %v4020_v6, %v4019_v49 }
 0x5e4   : > { %v3871_v20 = vpop.f32.mrf.mxu0  ;;  %v3884_v2 = vpop.f32.mrf.mxu1 }
 0x5e5   : > { %v5078_v43 = vpop.eup %5077 }
 0x5e6   : > { %v4013_v62 = vperm.slane %v5078_v43, 4 }
 0x5e8   : > { %v4021_v7 = vmul.f32 %v4013_v62, %v3883_v11 }
 0x5ea   : > { %v4026_v15 = vpack.c.bf16 %v4022_v42, %v4021_v7 }
 0x5ec   : > { %4052 = vmatpush.bf16.msrb.mxu0 %v4026_v15  ;;  %4417 = vmatpush.bf16.msrb.mxu2 %v4026_v15 }
 0x5f0   : > { %4053 = vmatpush.bf16.msrb.mxu0 %v4025_v18  ;;  %4418 = vmatpush.bf16.msrb.mxu2 %v4025_v18 }
 0x5f4   : > { %4054 = vmatpush.bf16.msrb.mxu0 %v8050_v36  ;;  %4419 = vmatpush.bf16.msrb.mxu2 %v8050_v36 }
 0x5f8   : > { %4055 = vmatpush.bf16.msrb.mxu0 %v8051_v8  ;;  %4420 = vmatpush.bf16.msrb.mxu2 %v8051_v8 }
 0x5fb   : > { %4395 = vmatmul.msk.bf16.vlgmr.msrb.gmra.mxu0 %vm4041_vm4, %v4414_v47  ;;  %4396 = vmatmul.msk.bf16.vlgmr.msrb.gmra.mxu2 %vm4041_vm4, %v4415_v51 }
 0x678   : > { %v4057_v53 = vpop.f32.mrf.mxu0 }
 0x679   : > { %v4058_v4 = vadd.f32 %v5079_v13, %v4057_v53 }
 0x67b   : > { %4067 = vst [vmem:[%s306_s26] sm:$0xff] %v4058_v4 }
 0x67e   : > { %v4062_v56 = vpop.f32.mrf.mxu2 }
 0x67f   : > { %v4063_v31 = vadd.f32 %v5080_v52, %v4062_v56 }
 0x680   : > { %v4059_v0 = vpop.f32.mrf.mxu0 }
 0x681   : > { %4069 = vst [vmem:[%s306_s26 + $0x10] sm:$0xff] %v4063_v31  ;;  %v4060_v26 = vadd.f32 %v5081_v61, %v4059_v0 }
 0x683   : > { %4068 = vst [vmem:[%s306_s26 + $0x8] sm:$0xff] %v4060_v26 }
 0x686   : > { %v4064_v41 = vpop.f32.mrf.mxu2 }
 0x687   : > { %v4065_v35 = vadd.f32 %v5082_v33, %v4064_v41 }
 0x689   : > { %4070 = vst [vmem:[%s306_s26 + $0x18] sm:$0xff] %v4065_v35 }
 0x68a   : > { %5110 = shalt.err (!%p5107_p10)
}
 0x68b   : > { %s5180_s6 = smov 128   ;;  %s5181_s11 = smov 256  }
 0x68c   : > { %s5182_s26 = smov 8  }
 0x68d   : > { %4425 = dma.vmem_to_hbm [thread:$0]  (%p5273_p8), %s4086_s13, 512, %s4088_s14, %s4072_s21, %s5180_s6, %s5181_s11, %s5182_s26  }
 0x68e PF: > { %p4431_p11 = scmp.ge.s32.totalorder %s5177_s25, 2  ;;  %s4102_s22 = sand.u32 1, %s5149_s18  }
 0x68f   : > { %s4103_s15 = scalar_lea.sflag [#allocation4], %s4102_s22 }
 0x690   : > { %p4428_p12 = pnand %p4431_p11, %p5277_p9 }
 0x692   : > { %p4429_p13 = pneg %p4428_p12 }
 0x694   : > { %5144 = dma.done.wait (%p4429_p13), %s4103_s15, 512  }
 0x695   : > { %5146 = vsyncadd (%p4429_p13), %s4103_s15, 4294966784  ;;  %s18_s25 = sadd.s32 1, %s5177_s25   ;;  %s8052_s18 = smov %s5153_s19 }
 0x696   : > { %p15_p0 = scmp.ge.s32.totalorder %s18_s25, 6   ;;  %s8053_s19 = smov %s5157_s20 }
 0x697   : > { %s8054_s20 = smov %s5285_s12  ;;  %s8055_s21 = smov %s5169_s23 }
 0x698   : > { %s8056_s22 = smov %s5173_s24  ;;  %s8057_s23 = smov %s8060_s28 }
 0x699   : > { %s8058_s24 = smov %s8064_s29  ;;  %17 = sbr.rel (!%p15_p0) target bundleno = 5 (0x5), region = 121 }
 0x69e   :  { %4109 = vsyncpa [#allocation4], 1 }
 0x69f   :  { %4111 = vsyncpa [#allocation4 + $0x1], 1 }

</bundles_post_ra>
